<compile_context>
chip_gen: v5e
topology: v5e:2x2
jax: 0.10.0
libtpu: 0.0.40
codegen_flags: <defaults>
</compile_context>

<pallas_src>
import functools

import jax
import jax.numpy as jnp
from jax import lax
from jax.experimental import pallas as pl
from jax.experimental.pallas import tpu as pltpu


# ----------------------------- fused kernel -----------------------------

def _fused_kernel(x_ref, w_ref, bc_ref, pool_ref, w1a_ref, w1b_ref, b1_ref,
                  w2_ref, b2_ref, o_ref, stack_ref, *, shifts, cp, nl, batch):
    # x_ref    : (Cp, NL)      all B*2 regions; channels on sublanes,
    #                          batch*region*spatial flattened on lanes.
    # w_ref    : (F, K3*Cp)    lane-dense conv weights (offset-major, chan-minor).
    # bc_ref   : (F, 1)        conv bias.
    # pool_ref : (NL, 2B)      per-segment masked-mean pooling matrix ({0, 1/P}).
    # w1a_ref  : (F, HID)      classifier layer-1 weights, region-0 half.
    # w1b_ref  : (F, HID)      classifier layer-1 weights, region-1 half.
    # b1_ref   : (1, HID)  w2_ref: (HID, VP)  b2_ref: (1, VP)
    # o_ref    : (B, VP)       lane-dense logits slab.
    # stack_ref: (K3*Cp, NL)   VMEM scratch holding the rolled-input stack.
    x = x_ref[...]

    # im2col-by-roll: one lane roll per conv offset (XLU), stored tile-aligned.
    for oi, s in enumerate(shifts):
        xs = x if s == 0 else pltpu.roll(x, shift=(nl - s) % nl, axis=1)
        stack_ref[oi * cp:(oi + 1) * cp, :] = xs

    # Whole conv (all offsets, regions, batch elements) as ONE MXU matmul.
    conv = jnp.dot(w_ref[...], stack_ref[...],
                   preferred_element_type=jnp.float32)          # (F, NL)
    acts = jnp.maximum(conv + bc_ref[...], 0.0)                 # bias + ReLU

    # Masked global mean pool per (batch, region) segment, fused into a matmul.
    # Roll-wrapped / out-of-window lanes hit zero pool weights.
    pooled = jnp.dot(acts, pool_ref[...],
                     preferred_element_type=jnp.float32)        # (F, 2B)

    # Classifier layer 1: broadcast-multiply + sublane reduce per batch element
    # (latent[b] = [feat[b, region0] ; feat[b, region1]]).
    h_rows = []
    for b in range(batch):
        h = (jnp.sum(pooled[:, 2 * b:2 * b + 1] * w1a_ref[...],
                     axis=0, keepdims=True)
             + jnp.sum(pooled[:, 2 * b + 1:2 * b + 2] * w1b_ref[...],
                       axis=0, keepdims=True)
             + b1_ref[...])
        h_rows.append(jnp.maximum(h, 0.0))
    h_all = jnp.concatenate(h_rows, axis=0)                     # (B, HID)

    # Classifier layer 2 + single lane-dense slab store.
    o_ref[...] = (jnp.dot(h_all, w2_ref[...],
                          preferred_element_type=jnp.float32) + b2_ref[...])


# --------------------------- NeighborLoc forward ---------------------------

def neighbor_loc_forward(x, params):
    # x: (B, 2, C, W, H, D) -> logits (B, V)
    B, two, C, W, H, D = x.shape
    assert two == 2 and W == H == D
    k = params["k"]
    wc = params["w_conv"]                                       # (F, C, k, k, k)
    F = wc.shape[0]
    HID = params["w1"].shape[1]
    V = params["w2"].shape[1]
    K3 = k ** 3
    S3 = W * H * D
    ow = oh = od = W - k + 1
    P = ow * oh * od
    VP = 128                                                    # lane-dense logits
    CP = -(-C // 8) * 8                                         # channels -> sublane tile
    NL = B * 2 * S3                                             # lanes: batch*region*spatial

    # Flat-index shift for each conv offset (di, dj, dl), offset-major order.
    shifts = tuple(i * H * D + j * D + l
                   for i in range(k) for j in range(k) for l in range(k))
    # Every roll-wrapped lane must land on a masked-invalid output position.
    assert (ow - 1) * H * D + (oh - 1) * D + (od - 1) + max(shifts) < S3

    f32 = jnp.float32

    # Input: (C, B*2*S3); channel axis padded to a sublane-tile multiple.
    x2 = jnp.transpose(x.reshape(B * 2, C, S3), (1, 0, 2)).reshape(C, NL)
    xp = jnp.zeros((CP, NL), f32).at[:C].set(x2.astype(f32))

    # Conv weights, lane-dense: w_flat[f, oi*CP + c] = wc[f, c, offset oi].
    wr = jnp.transpose(wc.reshape(F, C, K3), (0, 2, 1)).astype(f32)  # (F, K3, C)
    w_flat = jnp.zeros((F, K3, CP), f32).at[..., :C].set(wr).reshape(F, K3 * CP)
    bc = params["b_conv"].astype(f32).reshape(F, 1)

    # Pooling matrix: column n holds 1/P on segment n's valid conv-output lanes.
    p = jnp.arange(S3)
    valid = (((p // (H * D)) < ow) & (((p // D) % H) < oh) & ((p % D) < od))
    col = jnp.where(valid, 1.0 / P, 0.0).astype(f32)                 # (S3,)
    pool_mat = (jnp.eye(B * 2, dtype=f32)[:, None, :]
                * col[None, :, None]).reshape(NL, B * 2)             # (NL, 2B)

    w1 = params["w1"].astype(f32)
    w1a, w1b = w1[:F], w1[F:2 * F]
    b1 = params["b1"].astype(f32).reshape(1, HID)
    w2p = jnp.zeros((HID, VP), f32).at[:, :V].set(params["w2"].astype(f32))
    b2p = jnp.zeros((1, VP), f32).at[:, :V].set(
        params["b2"].astype(f32).reshape(1, V))

    kernel = functools.partial(_fused_kernel, shifts=shifts, cp=CP, nl=NL,
                               batch=B)

    out = pl.pallas_call(
        kernel,
        out_shape=jax.ShapeDtypeStruct((B, VP), f32),
        grid=(1,),
        in_specs=[
            pl.BlockSpec((CP, NL), lambda i: (0, 0)),
            pl.BlockSpec((F, K3 * CP), lambda i: (0, 0)),
            pl.BlockSpec((F, 1), lambda i: (0, 0)),
            pl.BlockSpec((NL, B * 2), lambda i: (0, 0)),
            pl.BlockSpec((F, HID), lambda i: (0, 0)),
            pl.BlockSpec((F, HID), lambda i: (0, 0)),
            pl.BlockSpec((1, HID), lambda i: (0, 0)),
            pl.BlockSpec((HID, VP), lambda i: (0, 0)),
            pl.BlockSpec((1, VP), lambda i: (0, 0)),
        ],
        out_specs=pl.BlockSpec((B, VP), lambda i: (0, 0)),
        scratch_shapes=[pltpu.VMEM((K3 * CP, NL), f32)],
        compiler_params=pltpu.CompilerParams(
            dimension_semantics=("arbitrary",)),
    )(xp, w_flat, bc, pool_mat, w1a, w1b, b1, w2p, b2p)

    return out[:, :V]


# ------------------------------ pure-JAX reference ------------------------------

def neighbor_loc_reference(x, params):
    B, two, C, W, H, D = x.shape
    xr = x.reshape(B * two, C, W, H, D)
    conv = lax.conv_general_dilated(
        xr, params["w_conv"], window_strides=(1, 1, 1), padding="VALID",
        dimension_numbers=("NCDHW", "OIDHW", "NCDHW"))
    conv = jnp.maximum(conv + params["b_conv"][None, :, None, None, None], 0.0)
    feat = conv.mean(axis=(2, 3, 4))
    latent = feat.reshape(B, -1)
    h = jnp.maximum(latent @ params["w1"] + params["b1"], 0.0)
    return h @ params["w2"] + params["b2"]


# ------------------------------------ main ------------------------------------

if __name__ == "__main__":
    B, C, S = 2, 4, 8           # batch, atom-type channels, cube side (W=H=D)
    K3, F = 3, 8                # conv kernel size, conv filters
    HID, V = 32, 6              # classifier hidden width, number of views

    key = jax.random.PRNGKey(0)
    kx, kw, kb, k1, kb1, k2, kb2 = jax.random.split(key, 7)

    x = jax.random.normal(kx, (B, 2, C, S, S, S), dtype=jnp.float32)

    params = {
        "k": K3,
        "w_conv": 0.1 * jax.random.normal(kw, (F, C, K3, K3, K3), jnp.float32),
        "b_conv": 0.1 * jax.random.normal(kb, (F,), jnp.float32),
        "w1": 0.1 * jax.random.normal(k1, (2 * F, HID), jnp.float32),
        "b1": 0.1 * jax.random.normal(kb1, (HID,), jnp.float32),
        "w2": 0.1 * jax.random.normal(k2, (HID, V), jnp.float32),
        "b2": 0.1 * jax.random.normal(kb2, (V,), jnp.float32),
    }

    logits = jax.block_until_ready(neighbor_loc_forward(x, params))
    ref = jax.block_until_ready(neighbor_loc_reference(x, params))

    assert logits.shape == (B, V), logits.shape
    assert jnp.allclose(logits, ref, rtol=1e-4, atol=1e-4), (logits, ref)
    print("KERNEL_OK")
</pallas_src>

<mosaic_0001>
module attributes {stable_mosaic.version = 11 : i64} {
  func.func @_fused_kernel(%arg0: i32, %arg1: memref<8x2048xf32, #tpu.memory_space<vmem>>, %arg2: memref<8x216xf32, #tpu.memory_space<vmem>>, %arg3: memref<8x1xf32, #tpu.memory_space<vmem>>, %arg4: memref<2048x4xf32, #tpu.memory_space<vmem>>, %arg5: memref<8x32xf32, #tpu.memory_space<vmem>>, %arg6: memref<8x32xf32, #tpu.memory_space<vmem>>, %arg7: memref<1x32xf32, #tpu.memory_space<vmem>>, %arg8: memref<32x128xf32, #tpu.memory_space<vmem>>, %arg9: memref<1x128xf32, #tpu.memory_space<vmem>>, %arg10: memref<2x128xf32, #tpu.memory_space<vmem>>, %arg11: memref<216x2048xf32, #tpu.memory_space<vmem>>) attributes {dimension_semantics = [#tpu.dimension_semantics<arbitrary>], iteration_bounds = array<i64: 1>, scalar_prefetch = 0 : i64, scratch_operands = 1 : i64, tpu.core_type = #tpu.core_type<tc>, window_params = [{pipeline_mode = #tpu.pipeline_mode<synchronous>, transform_indices = @transform_0, window_bounds = array<i64: 8, 2048>}, {pipeline_mode = #tpu.pipeline_mode<synchronous>, transform_indices = @transform_1, window_bounds = array<i64: 8, 216>}, {pipeline_mode = #tpu.pipeline_mode<synchronous>, transform_indices = @transform_2, window_bounds = array<i64: 8, 1>}, {pipeline_mode = #tpu.pipeline_mode<synchronous>, transform_indices = @transform_3, window_bounds = array<i64: 2048, 4>}, {pipeline_mode = #tpu.pipeline_mode<synchronous>, transform_indices = @transform_4, window_bounds = array<i64: 8, 32>}, {pipeline_mode = #tpu.pipeline_mode<synchronous>, transform_indices = @transform_5, window_bounds = array<i64: 8, 32>}, {pipeline_mode = #tpu.pipeline_mode<synchronous>, transform_indices = @transform_6, window_bounds = array<i64: 1, 32>}, {pipeline_mode = #tpu.pipeline_mode<synchronous>, transform_indices = @transform_7, window_bounds = array<i64: 32, 128>}, {pipeline_mode = #tpu.pipeline_mode<synchronous>, transform_indices = @transform_8, window_bounds = array<i64: 1, 128>}, {pipeline_mode = #tpu.pipeline_mode<synchronous>, transform_indices = @transform_9, window_bounds = array<i64: 2, 128>}]} {
    %c0 = arith.constant 0 : index
    %c0_0 = arith.constant 0 : index
    %0 = vector.load %arg1[%c0, %c0_0] : memref<8x2048xf32, #tpu.memory_space<vmem>>, vector<8x2048xf32>
    %c0_1 = arith.constant 0 : index
    %c0_2 = arith.constant 0 : index
    %1 = vector.load %arg11[%c0_1, %c0_2] : memref<216x2048xf32, #tpu.memory_space<vmem>>, vector<8x2048xf32>
    tpu.vector_store %arg11[%c0_1, %c0_2], %0 {strides = array<i32>} : memref<216x2048xf32, #tpu.memory_space<vmem>>, vector<8x2048xf32>,
    %c2047_i32 = arith.constant 2047 : i32
    %2 = tpu.dynamic_rotate %0 by %c2047_i32 dim 1 : vector<8x2048xf32>, i32 -> vector<8x2048xf32>
    %c8 = arith.constant 8 : index
    %c0_3 = arith.constant 0 : index
    %3 = vector.load %arg11[%c8, %c0_3] : memref<216x2048xf32, #tpu.memory_space<vmem>>, vector<8x2048xf32>
    tpu.vector_store %arg11[%c8, %c0_3], %2 {strides = array<i32>} : memref<216x2048xf32, #tpu.memory_space<vmem>>, vector<8x2048xf32>,
    %c2046_i32 = arith.constant 2046 : i32
    %4 = tpu.dynamic_rotate %0 by %c2046_i32 dim 1 : vector<8x2048xf32>, i32 -> vector<8x2048xf32>
    %c16 = arith.constant 16 : index
    %c0_4 = arith.constant 0 : index
    %5 = vector.load %arg11[%c16, %c0_4] : memref<216x2048xf32, #tpu.memory_space<vmem>>, vector<8x2048xf32>
    tpu.vector_store %arg11[%c16, %c0_4], %4 {strides = array<i32>} : memref<216x2048xf32, #tpu.memory_space<vmem>>, vector<8x2048xf32>,
    %c2040_i32 = arith.constant 2040 : i32
    %6 = tpu.dynamic_rotate %0 by %c2040_i32 dim 1 : vector<8x2048xf32>, i32 -> vector<8x2048xf32>
    %c24 = arith.constant 24 : index
    %c0_5 = arith.constant 0 : index
    %7 = vector.load %arg11[%c24, %c0_5] : memref<216x2048xf32, #tpu.memory_space<vmem>>, vector<8x2048xf32>
    tpu.vector_store %arg11[%c24, %c0_5], %6 {strides = array<i32>} : memref<216x2048xf32, #tpu.memory_space<vmem>>, vector<8x2048xf32>,
    %c2039_i32 = arith.constant 2039 : i32
    %8 = tpu.dynamic_rotate %0 by %c2039_i32 dim 1 : vector<8x2048xf32>, i32 -> vector<8x2048xf32>
    %c32 = arith.constant 32 : index
    %c0_6 = arith.constant 0 : index
    %9 = vector.load %arg11[%c32, %c0_6] : memref<216x2048xf32, #tpu.memory_space<vmem>>, vector<8x2048xf32>
    tpu.vector_store %arg11[%c32, %c0_6], %8 {strides = array<i32>} : memref<216x2048xf32, #tpu.memory_space<vmem>>, vector<8x2048xf32>,
    %c2038_i32 = arith.constant 2038 : i32
    %10 = tpu.dynamic_rotate %0 by %c2038_i32 dim 1 : vector<8x2048xf32>, i32 -> vector<8x2048xf32>
    %c40 = arith.constant 40 : index
    %c0_7 = arith.constant 0 : index
    %11 = vector.load %arg11[%c40, %c0_7] : memref<216x2048xf32, #tpu.memory_space<vmem>>, vector<8x2048xf32>
    tpu.vector_store %arg11[%c40, %c0_7], %10 {strides = array<i32>} : memref<216x2048xf32, #tpu.memory_space<vmem>>, vector<8x2048xf32>,
    %c2032_i32 = arith.constant 2032 : i32
    %12 = tpu.dynamic_rotate %0 by %c2032_i32 dim 1 : vector<8x2048xf32>, i32 -> vector<8x2048xf32>
    %c48 = arith.constant 48 : index
    %c0_8 = arith.constant 0 : index
    %13 = vector.load %arg11[%c48, %c0_8] : memref<216x2048xf32, #tpu.memory_space<vmem>>, vector<8x2048xf32>
    tpu.vector_store %arg11[%c48, %c0_8], %12 {strides = array<i32>} : memref<216x2048xf32, #tpu.memory_space<vmem>>, vector<8x2048xf32>,
    %c2031_i32 = arith.constant 2031 : i32
    %14 = tpu.dynamic_rotate %0 by %c2031_i32 dim 1 : vector<8x2048xf32>, i32 -> vector<8x2048xf32>
    %c56 = arith.constant 56 : index
    %c0_9 = arith.constant 0 : index
    %15 = vector.load %arg11[%c56, %c0_9] : memref<216x2048xf32, #tpu.memory_space<vmem>>, vector<8x2048xf32>
    tpu.vector_store %arg11[%c56, %c0_9], %14 {strides = array<i32>} : memref<216x2048xf32, #tpu.memory_space<vmem>>, vector<8x2048xf32>,
    %c2030_i32 = arith.constant 2030 : i32
    %16 = tpu.dynamic_rotate %0 by %c2030_i32 dim 1 : vector<8x2048xf32>, i32 -> vector<8x2048xf32>
    %c64 = arith.constant 64 : index
    %c0_10 = arith.constant 0 : index
    %17 = vector.load %arg11[%c64, %c0_10] : memref<216x2048xf32, #tpu.memory_space<vmem>>, vector<8x2048xf32>
    tpu.vector_store %arg11[%c64, %c0_10], %16 {strides = array<i32>} : memref<216x2048xf32, #tpu.memory_space<vmem>>, vector<8x2048xf32>,
    %c1984_i32 = arith.constant 1984 : i32
    %18 = tpu.dynamic_rotate %0 by %c1984_i32 dim 1 : vector<8x2048xf32>, i32 -> vector<8x2048xf32>
    %c72 = arith.constant 72 : index
    %c0_11 = arith.constant 0 : index
    %19 = vector.load %arg11[%c72, %c0_11] : memref<216x2048xf32, #tpu.memory_space<vmem>>, vector<8x2048xf32>
    tpu.vector_store %arg11[%c72, %c0_11], %18 {strides = array<i32>} : memref<216x2048xf32, #tpu.memory_space<vmem>>, vector<8x2048xf32>,
    %c1983_i32 = arith.constant 1983 : i32
    %20 = tpu.dynamic_rotate %0 by %c1983_i32 dim 1 : vector<8x2048xf32>, i32 -> vector<8x2048xf32>
    %c80 = arith.constant 80 : index
    %c0_12 = arith.constant 0 : index
    %21 = vector.load %arg11[%c80, %c0_12] : memref<216x2048xf32, #tpu.memory_space<vmem>>, vector<8x2048xf32>
    tpu.vector_store %arg11[%c80, %c0_12], %20 {strides = array<i32>} : memref<216x2048xf32, #tpu.memory_space<vmem>>, vector<8x2048xf32>,
    %c1982_i32 = arith.constant 1982 : i32
    %22 = tpu.dynamic_rotate %0 by %c1982_i32 dim 1 : vector<8x2048xf32>, i32 -> vector<8x2048xf32>
    %c88 = arith.constant 88 : index
    %c0_13 = arith.constant 0 : index
    %23 = vector.load %arg11[%c88, %c0_13] : memref<216x2048xf32, #tpu.memory_space<vmem>>, vector<8x2048xf32>
    tpu.vector_store %arg11[%c88, %c0_13], %22 {strides = array<i32>} : memref<216x2048xf32, #tpu.memory_space<vmem>>, vector<8x2048xf32>,
    %c1976_i32 = arith.constant 1976 : i32
    %24 = tpu.dynamic_rotate %0 by %c1976_i32 dim 1 : vector<8x2048xf32>, i32 -> vector<8x2048xf32>
    %c96 = arith.constant 96 : index
    %c0_14 = arith.constant 0 : index
    %25 = vector.load %arg11[%c96, %c0_14] : memref<216x2048xf32, #tpu.memory_space<vmem>>, vector<8x2048xf32>
    tpu.vector_store %arg11[%c96, %c0_14], %24 {strides = array<i32>} : memref<216x2048xf32, #tpu.memory_space<vmem>>, vector<8x2048xf32>,
    %c1975_i32 = arith.constant 1975 : i32
    %26 = tpu.dynamic_rotate %0 by %c1975_i32 dim 1 : vector<8x2048xf32>, i32 -> vector<8x2048xf32>
    %c104 = arith.constant 104 : index
    %c0_15 = arith.constant 0 : index
    %27 = vector.load %arg11[%c104, %c0_15] : memref<216x2048xf32, #tpu.memory_space<vmem>>, vector<8x2048xf32>
    tpu.vector_store %arg11[%c104, %c0_15], %26 {strides = array<i32>} : memref<216x2048xf32, #tpu.memory_space<vmem>>, vector<8x2048xf32>,
    %c1974_i32 = arith.constant 1974 : i32
    %28 = tpu.dynamic_rotate %0 by %c1974_i32 dim 1 : vector<8x2048xf32>, i32 -> vector<8x2048xf32>
    %c112 = arith.constant 112 : index
    %c0_16 = arith.constant 0 : index
    %29 = vector.load %arg11[%c112, %c0_16] : memref<216x2048xf32, #tpu.memory_space<vmem>>, vector<8x2048xf32>
    tpu.vector_store %arg11[%c112, %c0_16], %28 {strides = array<i32>} : memref<216x2048xf32, #tpu.memory_space<vmem>>, vector<8x2048xf32>,
    %c1968_i32 = arith.constant 1968 : i32
    %30 = tpu.dynamic_rotate %0 by %c1968_i32 dim 1 : vector<8x2048xf32>, i32 -> vector<8x2048xf32>
    %c120 = arith.constant 120 : index
    %c0_17 = arith.constant 0 : index
    %31 = vector.load %arg11[%c120, %c0_17] : memref<216x2048xf32, #tpu.memory_space<vmem>>, vector<8x2048xf32>
    tpu.vector_store %arg11[%c120, %c0_17], %30 {strides = array<i32>} : memref<216x2048xf32, #tpu.memory_space<vmem>>, vector<8x2048xf32>,
    %c1967_i32 = arith.constant 1967 : i32
    %32 = tpu.dynamic_rotate %0 by %c1967_i32 dim 1 : vector<8x2048xf32>, i32 -> vector<8x2048xf32>
    %c128 = arith.constant 128 : index
    %c0_18 = arith.constant 0 : index
    %33 = vector.load %arg11[%c128, %c0_18] : memref<216x2048xf32, #tpu.memory_space<vmem>>, vector<8x2048xf32>
    tpu.vector_store %arg11[%c128, %c0_18], %32 {strides = array<i32>} : memref<216x2048xf32, #tpu.memory_space<vmem>>, vector<8x2048xf32>,
    %c1966_i32 = arith.constant 1966 : i32
    %34 = tpu.dynamic_rotate %0 by %c1966_i32 dim 1 : vector<8x2048xf32>, i32 -> vector<8x2048xf32>
    %c136 = arith.constant 136 : index
    %c0_19 = arith.constant 0 : index
    %35 = vector.load %arg11[%c136, %c0_19] : memref<216x2048xf32, #tpu.memory_space<vmem>>, vector<8x2048xf32>
    tpu.vector_store %arg11[%c136, %c0_19], %34 {strides = array<i32>} : memref<216x2048xf32, #tpu.memory_space<vmem>>, vector<8x2048xf32>,
    %c1920_i32 = arith.constant 1920 : i32
    %36 = tpu.dynamic_rotate %0 by %c1920_i32 dim 1 : vector<8x2048xf32>, i32 -> vector<8x2048xf32>
    %c144 = arith.constant 144 : index
    %c0_20 = arith.constant 0 : index
    %37 = vector.load %arg11[%c144, %c0_20] : memref<216x2048xf32, #tpu.memory_space<vmem>>, vector<8x2048xf32>
    tpu.vector_store %arg11[%c144, %c0_20], %36 {strides = array<i32>} : memref<216x2048xf32, #tpu.memory_space<vmem>>, vector<8x2048xf32>,
    %c1919_i32 = arith.constant 1919 : i32
    %38 = tpu.dynamic_rotate %0 by %c1919_i32 dim 1 : vector<8x2048xf32>, i32 -> vector<8x2048xf32>
    %c152 = arith.constant 152 : index
    %c0_21 = arith.constant 0 : index
    %39 = vector.load %arg11[%c152, %c0_21] : memref<216x2048xf32, #tpu.memory_space<vmem>>, vector<8x2048xf32>
    tpu.vector_store %arg11[%c152, %c0_21], %38 {strides = array<i32>} : memref<216x2048xf32, #tpu.memory_space<vmem>>, vector<8x2048xf32>,
    %c1918_i32 = arith.constant 1918 : i32
    %40 = tpu.dynamic_rotate %0 by %c1918_i32 dim 1 : vector<8x2048xf32>, i32 -> vector<8x2048xf32>
    %c160 = arith.constant 160 : index
    %c0_22 = arith.constant 0 : index
    %41 = vector.load %arg11[%c160, %c0_22] : memref<216x2048xf32, #tpu.memory_space<vmem>>, vector<8x2048xf32>
    tpu.vector_store %arg11[%c160, %c0_22], %40 {strides = array<i32>} : memref<216x2048xf32, #tpu.memory_space<vmem>>, vector<8x2048xf32>,
    %c1912_i32 = arith.constant 1912 : i32
    %42 = tpu.dynamic_rotate %0 by %c1912_i32 dim 1 : vector<8x2048xf32>, i32 -> vector<8x2048xf32>
    %c168 = arith.constant 168 : index
    %c0_23 = arith.constant 0 : index
    %43 = vector.load %arg11[%c168, %c0_23] : memref<216x2048xf32, #tpu.memory_space<vmem>>, vector<8x2048xf32>
    tpu.vector_store %arg11[%c168, %c0_23], %42 {strides = array<i32>} : memref<216x2048xf32, #tpu.memory_space<vmem>>, vector<8x2048xf32>,
    %c1911_i32 = arith.constant 1911 : i32
    %44 = tpu.dynamic_rotate %0 by %c1911_i32 dim 1 : vector<8x2048xf32>, i32 -> vector<8x2048xf32>
    %c176 = arith.constant 176 : index
    %c0_24 = arith.constant 0 : index
    %45 = vector.load %arg11[%c176, %c0_24] : memref<216x2048xf32, #tpu.memory_space<vmem>>, vector<8x2048xf32>
    tpu.vector_store %arg11[%c176, %c0_24], %44 {strides = array<i32>} : memref<216x2048xf32, #tpu.memory_space<vmem>>, vector<8x2048xf32>,
    %c1910_i32 = arith.constant 1910 : i32
    %46 = tpu.dynamic_rotate %0 by %c1910_i32 dim 1 : vector<8x2048xf32>, i32 -> vector<8x2048xf32>
    %c184 = arith.constant 184 : index
    %c0_25 = arith.constant 0 : index
    %47 = vector.load %arg11[%c184, %c0_25] : memref<216x2048xf32, #tpu.memory_space<vmem>>, vector<8x2048xf32>
    tpu.vector_store %arg11[%c184, %c0_25], %46 {strides = array<i32>} : memref<216x2048xf32, #tpu.memory_space<vmem>>, vector<8x2048xf32>,
    %c1904_i32 = arith.constant 1904 : i32
    %48 = tpu.dynamic_rotate %0 by %c1904_i32 dim 1 : vector<8x2048xf32>, i32 -> vector<8x2048xf32>
    %c192 = arith.constant 192 : index
    %c0_26 = arith.constant 0 : index
    %49 = vector.load %arg11[%c192, %c0_26] : memref<216x2048xf32, #tpu.memory_space<vmem>>, vector<8x2048xf32>
    tpu.vector_store %arg11[%c192, %c0_26], %48 {strides = array<i32>} : memref<216x2048xf32, #tpu.memory_space<vmem>>, vector<8x2048xf32>,
    %c1903_i32 = arith.constant 1903 : i32
    %50 = tpu.dynamic_rotate %0 by %c1903_i32 dim 1 : vector<8x2048xf32>, i32 -> vector<8x2048xf32>
    %c200 = arith.constant 200 : index
    %c0_27 = arith.constant 0 : index
    %51 = vector.load %arg11[%c200, %c0_27] : memref<216x2048xf32, #tpu.memory_space<vmem>>, vector<8x2048xf32>
    tpu.vector_store %arg11[%c200, %c0_27], %50 {strides = array<i32>} : memref<216x2048xf32, #tpu.memory_space<vmem>>, vector<8x2048xf32>,
    %c1902_i32 = arith.constant 1902 : i32
    %52 = tpu.dynamic_rotate %0 by %c1902_i32 dim 1 : vector<8x2048xf32>, i32 -> vector<8x2048xf32>
    %c208 = arith.constant 208 : index
    %c0_28 = arith.constant 0 : index
    %53 = vector.load %arg11[%c208, %c0_28] : memref<216x2048xf32, #tpu.memory_space<vmem>>, vector<8x2048xf32>
    tpu.vector_store %arg11[%c208, %c0_28], %52 {strides = array<i32>} : memref<216x2048xf32, #tpu.memory_space<vmem>>, vector<8x2048xf32>,
    %c0_29 = arith.constant 0 : index
    %c0_30 = arith.constant 0 : index
    %54 = vector.load %arg2[%c0_29, %c0_30] : memref<8x216xf32, #tpu.memory_space<vmem>>, vector<8x216xf32>
    %c0_31 = arith.constant 0 : index
    %c0_32 = arith.constant 0 : index
    %55 = vector.load %arg11[%c0_31, %c0_32] : memref<216x2048xf32, #tpu.memory_space<vmem>>, vector<216x2048xf32>
    %cst = arith.constant dense<0.000000e+00> : vector<8x2048xf32>
    %56 = tpu.matmul %54, %55, %cst {dimension_numbers = #tpu.dot_dimension_numbers<[1], [0], [0], [1], [0, 0, 1, 1], [], []>} : vector<8x216xf32>, vector<216x2048xf32>, vector<8x2048xf32> -> vector<8x2048xf32>
    %c0_33 = arith.constant 0 : index
    %c0_34 = arith.constant 0 : index
    %57 = vector.load %arg3[%c0_33, %c0_34] : memref<8x1xf32, #tpu.memory_space<vmem>>, vector<8x1xf32>
    %58 = vector.broadcast %57 : vector<8x1xf32> to vector<8x2048xf32>
    %59 = arith.addf %56, %58 : vector<8x2048xf32>
    %cst_35 = arith.constant 0.000000e+00 : f32
    %60 = vector.broadcast %cst_35 : f32 to vector<8x2048xf32>
    %61 = arith.maximumf %59, %60 : vector<8x2048xf32>
    %c0_36 = arith.constant 0 : index
    %c0_37 = arith.constant 0 : index
    %62 = vector.load %arg4[%c0_36, %c0_37] : memref<2048x4xf32, #tpu.memory_space<vmem>>, vector<2048x4xf32>
    %cst_38 = arith.constant dense<0.000000e+00> : vector<8x4xf32>
    %63 = tpu.matmul %61, %62, %cst_38 {dimension_numbers = #tpu.dot_dimension_numbers<[1], [0], [0], [1], [0, 0, 1, 1], [], []>} : vector<8x2048xf32>, vector<2048x4xf32>, vector<8x4xf32> -> vector<8x4xf32>
    %64 = vector.extract_strided_slice %63 {offsets = [0, 0], sizes = [8, 1], strides = [1, 1]} : vector<8x4xf32> to vector<8x1xf32>
    %c0_39 = arith.constant 0 : index
    %c0_40 = arith.constant 0 : index
    %65 = vector.load %arg5[%c0_39, %c0_40] : memref<8x32xf32, #tpu.memory_space<vmem>>, vector<8x32xf32>
    %66 = vector.broadcast %64 : vector<8x1xf32> to vector<8x32xf32>
    %67 = arith.mulf %66, %65 : vector<8x32xf32>
    %cst_41 = arith.constant dense<0.000000e+00> : vector<32xf32>
    %68 = vector.multi_reduction <add>, %67, %cst_41 [0] : vector<8x32xf32> to vector<32xf32>
    %69 = vector.shape_cast %68 : vector<32xf32> to vector<1x32xf32>
    %70 = vector.extract_strided_slice %63 {offsets = [0, 1], sizes = [8, 1], strides = [1, 1]} : vector<8x4xf32> to vector<8x1xf32>
    %c0_42 = arith.constant 0 : index
    %c0_43 = arith.constant 0 : index
    %71 = vector.load %arg6[%c0_42, %c0_43] : memref<8x32xf32, #tpu.memory_space<vmem>>, vector<8x32xf32>
    %72 = vector.broadcast %70 : vector<8x1xf32> to vector<8x32xf32>
    %73 = arith.mulf %72, %71 : vector<8x32xf32>
    %cst_44 = arith.constant dense<0.000000e+00> : vector<32xf32>
    %74 = vector.multi_reduction <add>, %73, %cst_44 [0] : vector<8x32xf32> to vector<32xf32>
    %75 = vector.shape_cast %74 : vector<32xf32> to vector<1x32xf32>
    %76 = arith.addf %69, %75 : vector<1x32xf32>
    %c0_45 = arith.constant 0 : index
    %c0_46 = arith.constant 0 : index
    %77 = vector.load %arg7[%c0_45, %c0_46] : memref<1x32xf32, #tpu.memory_space<vmem>>, vector<1x32xf32>
    %78 = arith.addf %76, %77 : vector<1x32xf32>
    %cst_47 = arith.constant 0.000000e+00 : f32
    %79 = vector.broadcast %cst_47 : f32 to vector<1x32xf32>
    %80 = arith.maximumf %78, %79 : vector<1x32xf32>
    %81 = vector.extract_strided_slice %63 {offsets = [0, 2], sizes = [8, 1], strides = [1, 1]} : vector<8x4xf32> to vector<8x1xf32>
    %c0_48 = arith.constant 0 : index
    %c0_49 = arith.constant 0 : index
    %82 = vector.load %arg5[%c0_48, %c0_49] : memref<8x32xf32, #tpu.memory_space<vmem>>, vector<8x32xf32>
    %83 = vector.broadcast %81 : vector<8x1xf32> to vector<8x32xf32>
    %84 = arith.mulf %83, %82 : vector<8x32xf32>
    %cst_50 = arith.constant dense<0.000000e+00> : vector<32xf32>
    %85 = vector.multi_reduction <add>, %84, %cst_50 [0] : vector<8x32xf32> to vector<32xf32>
    %86 = vector.shape_cast %85 : vector<32xf32> to vector<1x32xf32>
    %87 = vector.extract_strided_slice %63 {offsets = [0, 3], sizes = [8, 1], strides = [1, 1]} : vector<8x4xf32> to vector<8x1xf32>
    %c0_51 = arith.constant 0 : index
    %c0_52 = arith.constant 0 : index
    %88 = vector.load %arg6[%c0_51, %c0_52] : memref<8x32xf32, #tpu.memory_space<vmem>>, vector<8x32xf32>
    %89 = vector.broadcast %87 : vector<8x1xf32> to vector<8x32xf32>
    %90 = arith.mulf %89, %88 : vector<8x32xf32>
    %cst_53 = arith.constant dense<0.000000e+00> : vector<32xf32>
    %91 = vector.multi_reduction <add>, %90, %cst_53 [0] : vector<8x32xf32> to vector<32xf32>
    %92 = vector.shape_cast %91 : vector<32xf32> to vector<1x32xf32>
    %93 = arith.addf %86, %92 : vector<1x32xf32>
    %c0_54 = arith.constant 0 : index
    %c0_55 = arith.constant 0 : index
    %94 = vector.load %arg7[%c0_54, %c0_55] : memref<1x32xf32, #tpu.memory_space<vmem>>, vector<1x32xf32>
    %95 = arith.addf %93, %94 : vector<1x32xf32>
    %cst_56 = arith.constant 0.000000e+00 : f32
    %96 = vector.broadcast %cst_56 : f32 to vector<1x32xf32>
    %97 = arith.maximumf %95, %96 : vector<1x32xf32>
    %98 = tpu.concatenate %80, %97 in 0 : vector<1x32xf32>, vector<1x32xf32> -> vector<2x32xf32>
    %c0_57 = arith.constant 0 : index
    %c0_58 = arith.constant 0 : index
    %99 = vector.load %arg8[%c0_57, %c0_58] : memref<32x128xf32, #tpu.memory_space<vmem>>, vector<32x128xf32>
    %cst_59 = arith.constant dense<0.000000e+00> : vector<2x128xf32>
    %100 = tpu.matmul %98, %99, %cst_59 {dimension_numbers = #tpu.dot_dimension_numbers<[1], [0], [0], [1], [0, 0, 1, 1], [], []>} : vector<2x32xf32>, vector<32x128xf32>, vector<2x128xf32> -> vector<2x128xf32>
    %c0_60 = arith.constant 0 : index
    %c0_61 = arith.constant 0 : index
    %101 = vector.load %arg9[%c0_60, %c0_61] : memref<1x128xf32, #tpu.memory_space<vmem>>, vector<1x128xf32>
    %102 = vector.broadcast %101 : vector<1x128xf32> to vector<2x128xf32>
    %103 = arith.addf %100, %102 : vector<2x128xf32>
    %c0_62 = arith.constant 0 : index
    %c0_63 = arith.constant 0 : index
    %104 = vector.load %arg10[%c0_62, %c0_63] : memref<2x128xf32, #tpu.memory_space<vmem>>, vector<2x128xf32>
    tpu.vector_store %arg10[%c0_62, %c0_63], %103 {strides = array<i32>} : memref<2x128xf32, #tpu.memory_space<vmem>>, vector<2x128xf32>,
    return
  }
  func.func @transform_0(%arg0: i32) -> (i32, i32) {
    %c0_i32 = arith.constant 0 : i32
    %c0_i32_0 = arith.constant 0 : i32
    %c0_i32_1 = arith.constant 0 : i32
    return %c0_i32, %c0_i32_0 : i32, i32
  }
  func.func @transform_1(%arg0: i32) -> (i32, i32) {
    %c0_i32 = arith.constant 0 : i32
    %c0_i32_0 = arith.constant 0 : i32
    %c0_i32_1 = arith.constant 0 : i32
    return %c0_i32, %c0_i32_0 : i32, i32
  }
  func.func @transform_2(%arg0: i32) -> (i32, i32) {
    %c0_i32 = arith.constant 0 : i32
    %c0_i32_0 = arith.constant 0 : i32
    %c0_i32_1 = arith.constant 0 : i32
    return %c0_i32, %c0_i32_0 : i32, i32
  }
  func.func @transform_3(%arg0: i32) -> (i32, i32) {
    %c0_i32 = arith.constant 0 : i32
    %c0_i32_0 = arith.constant 0 : i32
    %c0_i32_1 = arith.constant 0 : i32
    return %c0_i32, %c0_i32_0 : i32, i32
  }
  func.func @transform_4(%arg0: i32) -> (i32, i32) {
    %c0_i32 = arith.constant 0 : i32
    %c0_i32_0 = arith.constant 0 : i32
    %c0_i32_1 = arith.constant 0 : i32
    return %c0_i32, %c0_i32_0 : i32, i32
  }
  func.func @transform_5(%arg0: i32) -> (i32, i32) {
    %c0_i32 = arith.constant 0 : i32
    %c0_i32_0 = arith.constant 0 : i32
    %c0_i32_1 = arith.constant 0 : i32
    return %c0_i32, %c0_i32_0 : i32, i32
  }
  func.func @transform_6(%arg0: i32) -> (i32, i32) {
    %c0_i32 = arith.constant 0 : i32
    %c0_i32_0 = arith.constant 0 : i32
    %c0_i32_1 = arith.constant 0 : i32
    return %c0_i32, %c0_i32_0 : i32, i32
  }
  func.func @transform_7(%arg0: i32) -> (i32, i32) {
    %c0_i32 = arith.constant 0 : i32
    %c0_i32_0 = arith.constant 0 : i32
    %c0_i32_1 = arith.constant 0 : i32
    return %c0_i32, %c0_i32_0 : i32, i32
  }
  func.func @transform_8(%arg0: i32) -> (i32, i32) {
    %c0_i32 = arith.constant 0 : i32
    %c0_i32_0 = arith.constant 0 : i32
    %c0_i32_1 = arith.constant 0 : i32
    return %c0_i32, %c0_i32_0 : i32, i32
  }
  func.func @transform_9(%arg0: i32) -> (i32, i32) {
    %c0_i32 = arith.constant 0 : i32
    %c0_i32_0 = arith.constant 0 : i32
    %c0_i32_1 = arith.constant 0 : i32
    return %c0_i32, %c0_i32_0 : i32, i32
  }
}

</mosaic_0001>

<bundles_post_ra>
// kernel: tpu_custom_call.1
= control target key start
LH: loop header
LB: loop body
LE: loop exit
PB: predicated region body
PF: predicated region fallthrough
CT: control target
= control target key end

     0   :  { %s3880_s21 = smov 127   ;;  %s7375_s0 = inlined_call_operand.vmem [shape: f32[8,2048], index: 0, kind: input, shape index: {}]   ;;  %s7376_s1 = inlined_call_operand.vmem [shape: f32[8,216], index: 1, kind: input, shape index: {}]   ;;  %s7377_s2 = inlined_call_operand.vmem [shape: f32[8,1], index: 2, kind: input, shape index: {}]   ;;  %s7378_s3 = inlined_call_operand.vmem [shape: f32[2048,4], index: 3, kind: input, shape index: {}]   ;;  %s7379_s4 = inlined_call_operand.vmem [shape: f32[8,32], index: 4, kind: input, shape index: {}]   ;;  %s7380_s5 = inlined_call_operand.vmem [shape: f32[8,32], index: 5, kind: input, shape index: {}]   ;;  %s7381_s6 = inlined_call_operand.vmem [shape: f32[1,32], index: 6, kind: input, shape index: {}]   ;;  %s7382_s7 = inlined_call_operand.vmem [shape: f32[32,128], index: 7, kind: input, shape index: {}]   ;;  %s7383_s8 = inlined_call_operand.vmem [shape: f32[1,128], index: 8, kind: input, shape index: {}]   ;;  %s7384_s9 = inlined_call_operand.hbm [shape: f32[2,128], index: 9, kind: output, shape index: {}]  }
   0x1   :  { %v41_v0 = vld [vmem:[%s7375_s0 + $0x40] sm:$0xff]  ;;  %v42_v1 = vld [vmem:[%s7375_s0 + $0x48] sm:$0xff]  ;;  %v43_v9 = vld [vmem:[%s7375_s0 + $0x50] sm:$0xff] }
   0x2   :  { %v37_v2 = vld [vmem:[%s7375_s0 + $0x20] sm:$0xff]  ;;  %v3961_v3 = vpack.i.bf16 %v42_v1, %v41_v0  ;;  %v38_v4 = vld [vmem:[%s7375_s0 + $0x28] sm:$0xff]  ;;  %v3987_v10 = vld [vmem:[%s7375_s0 + $0x58] sm:$0xff] }
   0x3   :  { %v3969_v5 = vld [vmem:[%s7375_s0] sm:$0xff]  ;;  %v3974_v6 = vld [vmem:[%s7375_s0 + $0x8] sm:$0xff]  ;;  %v3976_v7 = vpack.i.bf16 %v38_v4, %v37_v2  ;;  %v39_v11 = vld [vmem:[%s7375_s0 + $0x30] sm:$0xff] }
   0x4   :  { %v3143_v8 = vpack.i.bf16 %v3974_v6, %v3969_v5  ;;  %3164 = vrot.lane.b32.xlu2 %v3961_v3, %s3880_s21  ;;  %v40_v12 = vld [vmem:[%s7375_s0 + $0x38] sm:$0xff]  ;;  %v3999_v13 = vld [vmem:[%s7375_s0 + $0x10] sm:$0xff] }
   0x5   :  { %3154 = vrot.lane.b32.xlu1 %v3976_v7, %s3880_s21  ;;  %v4004_v14 = vld [vmem:[%s7375_s0 + $0x18] sm:$0xff] }
   0x6   :  { %3144 = vrot.lane.b32.xlu0 %v3143_v8, %s3880_s21 }
   0x7   :  { %14 = vsyncpa [#allocation4], 0  ;;  %v4007_v15 = vpack.i.bf16 %v3987_v10, %v43_v9  ;;  %v4009_v16 = vpack.i.bf16 %v40_v12, %v39_v11  ;;  %v4013_v17 = vpack.i.bf16 %v4004_v14, %v3999_v13  ;;  %v47_v18 = vld [vmem:[%s7375_s0 + $0x70] sm:$0xff]  ;;  %v48_v19 = vld [vmem:[%s7375_s0 + $0x78] sm:$0xff]  ;;  %s3881_s22 = smov 126   ;;  %s3882_s23 = smov 120   ;;  %v4048_v24 = vpack.i.bf16 %v3999_v13, %v3974_v6 }
   0x8   :  { %v45_v20 = vld [vmem:[%s7375_s0 + $0x60] sm:$0xff]  ;;  %v46_v21 = vld [vmem:[%s7375_s0 + $0x68] sm:$0xff]  ;;  %v3178_v22 = vpack.i.bf16 %v48_v19, %v47_v18  ;;  %s3884_s24 = smov 118   ;;  %s3885_s25 = smov 48   ;;  %v97_v26 = vlaneseq  ;;  %v4070_v32 = vpack.i.bf16 %v3969_v5, %v4004_v14  ;;  %v3363_v37 = vpack.i.bf16 %v3969_v5, %v3974_v6 }
   0x9   :  { %v3173_v23 = vpack.i.bf16 %v46_v21, %v45_v20  ;;  %s3886_s26 = smov 111   ;;  %s3887_s27 = smov 54  }
   0xa   :  { %v4058_v27 = vand.u32 127, %v97_v26  ;;  %s3888_s28 = smov 110   ;;  %s3889_s29 = smov 112  }
   0xb   :  { %s3890_s30 = smov 55   ;;  %s3891_s10 = smov 56  }
   0xc   :  { %3169 = vrot.lane.b32.xlu2 %v4007_v15, %s3880_s21  ;;  %vm99_vm0 = vcmp.lt.s32.totalorder %v4058_v27, 127  ;;  %s3892_s11 = smov 62   ;;  %vm164_vm1 = vcmp.lt.s32.totalorder %v4058_v27, 126  ;;  %s3893_s12 = smov 63   ;;  %vm229_vm2 = vcmp.lt.s32.totalorder %v4058_v27, 120  ;;  %vm294_vm3 = vcmp.lt.s32.totalorder %v4058_v27, 119 }
   0xd   :  { %3159 = vrot.lane.b32.xlu1 %v4009_v16, %s3880_s21  ;;  %s3894_s13 = smov 64   ;;  %s3895_s14 = smov 47   ;;  %vm1009_vm4 = vcmp.lt.s32.totalorder %v4058_v27, 48  ;;  %vm359_vm5 = vcmp.lt.s32.totalorder %v4058_v27, 118  ;;  %vm944_vm6 = vcmp.lt.s32.totalorder %v4058_v27, 54  ;;  %vm554_vm7 = vcmp.lt.s32.totalorder %v4058_v27, 110 }
   0xe   :  { %3149 = vrot.lane.b32.xlu0 %v4013_v17, %s3880_s21  ;;  %s3896_s15 = smov 46   ;;  %vm489_vm8 = vcmp.lt.s32.totalorder %v4058_v27, 111  ;;  %vm424_vm9 = vcmp.lt.s32.totalorder %v4058_v27, 112  ;;  %vm879_vm10 = vcmp.lt.s32.totalorder %v4058_v27, 55  ;;  %vm814_vm11 = vcmp.lt.s32.totalorder %v4058_v27, 56 }
   0xf   :  { %vm749_vm12 = vcmp.lt.s32.totalorder %v4058_v27, 62  ;;  %vm684_vm13 = vcmp.lt.s32.totalorder %v4058_v27, 63  ;;  %vm619_vm14 = vcmp.lt.s32.totalorder %v4058_v27, 64  ;;  %vm1139_vm15 = vcmp.lt.s32.totalorder %v4058_v27, 46 }
  0x14   :  { %3184 = vrot.lane.b32.xlu2 %v3143_v8, %s3881_s22 }
  0x15   :  { %3179 = vrot.lane.b32.xlu1 %v3178_v22, %s3880_s21 }
  0x16   :  { %3174 = vrot.lane.b32.xlu0 %v3173_v23, %s3880_s21  ;;  %s3883_s21 = smov 119  }
  0x1c   :  { %3199 = vrot.lane.b32.xlu2 %v4009_v16, %s3881_s22 }
  0x1d   :  { %3194 = vrot.lane.b32.xlu1 %v3976_v7, %s3881_s22 }
  0x1e   :  { %3189 = vrot.lane.b32.xlu0 %v4013_v17, %s3881_s22 }
  0x24   :  { %3214 = vrot.lane.b32.xlu2 %v3173_v23, %s3881_s22 }
  0x25   :  { %3209 = vrot.lane.b32.xlu1 %v4007_v15, %s3881_s22 }
  0x26   :  { %3204 = vrot.lane.b32.xlu0 %v3961_v3, %s3881_s22 }
  0x2c   :  { %3229 = vrot.lane.b32.xlu2 %v4013_v17, %s3882_s23 }
  0x2d   :  { %3224 = vrot.lane.b32.xlu1 %v3143_v8, %s3882_s23 }
  0x2e   :  { %3219 = vrot.lane.b32.xlu0 %v3178_v22, %s3881_s22 }
  0x34   :  { %3244 = vrot.lane.b32.xlu2 %v3961_v3, %s3882_s23 }
  0x35   :  { %3239 = vrot.lane.b32.xlu1 %v4009_v16, %s3882_s23 }
  0x36   :  { %3234 = vrot.lane.b32.xlu0 %v3976_v7, %s3882_s23 }
  0x3c   :  { %3259 = vrot.lane.b32.xlu2 %v3178_v22, %s3882_s23 }
  0x3d   :  { %3254 = vrot.lane.b32.xlu1 %v3173_v23, %s3882_s23 }
  0x3e   :  { %3249 = vrot.lane.b32.xlu0 %v4007_v15, %s3882_s23 }
  0x44   :  { %3274 = vrot.lane.b32.xlu2 %v3976_v7, %s3883_s21 }
  0x45   :  { %3269 = vrot.lane.b32.xlu1 %v4013_v17, %s3883_s21 }
  0x46   :  { %3264 = vrot.lane.b32.xlu0 %v3143_v8, %s3883_s21 }
  0x4c   :  { %3289 = vrot.lane.b32.xlu2 %v4007_v15, %s3883_s21 }
  0x4d   :  { %3284 = vrot.lane.b32.xlu1 %v3961_v3, %s3883_s21 }
  0x4e   :  { %3279 = vrot.lane.b32.xlu0 %v4009_v16, %s3883_s21 }
  0x54   :  { %3304 = vrot.lane.b32.xlu2 %v3143_v8, %s3884_s24 }
  0x55   :  { %3299 = vrot.lane.b32.xlu1 %v3178_v22, %s3883_s21 }
  0x56   :  { %3294 = vrot.lane.b32.xlu0 %v3173_v23, %s3883_s21 }
  0x5c   :  { %3319 = vrot.lane.b32.xlu2 %v4048_v24, %s3885_s25 }
  0x5d   :  { %3314 = vrot.lane.b32.xlu1 %v3976_v7, %s3884_s24 }
  0x5e   :  { %3309 = vrot.lane.b32.xlu0 %v4013_v17, %s3884_s24  ;;  %v3165_v25 = vpop.permute.xlu2 %3164 }
  0x5f   :  { %v3167_v28 = vunpack.i.h.bf16 %v3165_v25  ;;  %v3166_v29 = vunpack.i.l.bf16 %v3165_v25 }
  0x61   :  { %v4074_v33 = vsel %vm99_vm0, %v3166_v29, %v3167_v28 }
  0x62   :  { %7530 = vst [vmem:[#allocation6_spill] sm:$0xff] %v4074_v33 }
  0x64   :  { %3334 = vrot.lane.b32.xlu2 %v4013_v17, %s3886_s26 }
  0x65   :  { %3329 = vrot.lane.b32.xlu1 %v4048_v24, %s3887_s27 }
  0x66   :  { %3324 = vrot.lane.b32.xlu0 %v4013_v17, %s3888_s28  ;;  %v4064_v30 = vpop.permute.xlu2 %3169 }
  0x67   :  { %v3171_v31 = vunpack.i.l.bf16 %v4064_v30  ;;  %v3172_v35 = vunpack.i.h.bf16 %v4064_v30 }
  0x69   :  { %v4078_v34 = vsel %vm99_vm0, %v3167_v28, %v3171_v31  ;;  %v4093_v38 = vsel %vm99_vm0, %v3171_v31, %v3172_v35 }
  0x6a   :  { %7531 = vst [vmem:[#allocation7_spill] sm:$0xff] %v4078_v34 }
  0x6b   :  { %7532 = vst [vmem:[#allocation8_spill] sm:$0xff] %v4093_v38 }
  0x6c   :  { %3349 = vrot.lane.b32.xlu2 %v4013_v17, %s3889_s29 }
  0x6d   :  { %3344 = vrot.lane.b32.xlu1 %v4070_v32, %s3885_s25 }
  0x6e   :  { %3339 = vrot.lane.b32.xlu0 %v4048_v24, %s3890_s30  ;;  %v4087_v36 = vpop.permute.xlu2 %3184 }
  0x6f   :  { %v7387_v22 = vunpack.i.h.bf16 %v4087_v36 }
  0x74   :  { %3364 = vrot.lane.b32.xlu2 %v3363_v37, %s3888_s28 }
  0x75   :  { %3359 = vrot.lane.b32.xlu1 %v4070_v32, %s3887_s27 }
  0x76   :  { %3354 = vrot.lane.b32.xlu0 %v4048_v24, %s3891_s10  ;;  %v4100_v39 = vpop.permute.xlu2 %3199 }
  0x77   :  { %v3155_v40 = vpop.permute.xlu1 %3154  ;;  %v3202_v45 = vunpack.i.h.bf16 %v4100_v39  ;;  %v3201_v47 = vunpack.i.l.bf16 %v4100_v39 }
  0x78   :  { %v4102_v41 = vpop.permute.xlu0 %3144  ;;  %v3157_v42 = vunpack.i.h.bf16 %v3155_v40  ;;  %v3156_v43 = vunpack.i.l.bf16 %v3155_v40 }
  0x79   :  { %v7386_v48 = vunpack.i.h.bf16 %v4102_v41  ;;  %v4127_v55 = vsel %vm164_vm1, %v3201_v47, %v3202_v45  ;;  %v7385_v11 = vunpack.i.l.bf16 %v4102_v41 }
  0x7a   :  { %v4106_v44 = vsel %vm99_vm0, %v3156_v43, %v3157_v42  ;;  %7533 = vst [vmem:[#allocation9_spill] sm:$0xff] %v4127_v55 }
  0x7c   :  { %3379 = vrot.lane.b32.xlu2 %v3363_v37, %s3886_s26 }
  0x7d   :  { %3374 = vrot.lane.b32.xlu1 %v4070_v32, %s3890_s30 }
  0x7e   :  { %3369 = vrot.lane.b32.xlu0 %v4048_v24, %s3892_s11  ;;  %v4114_v46 = vpop.permute.xlu2 %3214 }
  0x7f   :  { %v3160_v49 = vpop.permute.xlu1 %3159  ;;  %v3217_v61 = vunpack.i.h.bf16 %v4114_v46  ;;  %v3216_v63 = vunpack.i.l.bf16 %v4114_v46 }
  0x80   :  { %v4118_v50 = vpop.permute.xlu0 %3149  ;;  %v3162_v51 = vunpack.i.h.bf16 %v3160_v49  ;;  %v3161_v52 = vunpack.i.l.bf16 %v3160_v49 }
  0x81   :  { %v7389_v53 = vunpack.i.h.bf16 %v4118_v50  ;;  %v7388_v54 = vunpack.i.l.bf16 %v4118_v50  ;;  %v4169_v12 = vsel %vm164_vm1, %v3216_v63, %v3217_v61 }
  0x82   :  { %v4145_v58 = vsel %vm99_vm0, %v3161_v52, %v3162_v51  ;;  %v4149_v59 = vsel %vm99_vm0, %v3157_v42, %v3161_v52  ;;  %v4154_v60 = vsel %vm99_vm0, %v3162_v51, %v3166_v29  ;;  %7537 = vst [vmem:[#allocation13_spill] sm:$0xff] %v4169_v12 }
  0x83   :  { %v4135_v56 = vsel %vm99_vm0, %v7386_v48, %v7388_v54  ;;  %v4141_v57 = vsel %vm99_vm0, %v7389_v53, %v3156_v43  ;;  %7534 = vst [vmem:[#allocation10_spill] sm:$0xff] %v4145_v58 }
  0x84   :  { %7535 = vst [vmem:[#allocation11_spill] sm:$0xff] %v4149_v59  ;;  %3394 = vrot.lane.b32.xlu2 %v3363_v37, %s3889_s29 }
  0x85   :  { %7536 = vst [vmem:[#allocation12_spill] sm:$0xff] %v4154_v60  ;;  %3389 = vrot.lane.b32.xlu1 %v4070_v32, %s3891_s10 }
  0x86   :  { %3384 = vrot.lane.b32.xlu0 %v4048_v24, %s3893_s12  ;;  %v4161_v62 = vpop.permute.xlu2 %3229 }
  0x87   :  { %v3180_v0 = vpop.permute.xlu1 %3179  ;;  %v7395_v39 = vunpack.i.l.bf16 %v4161_v62 }
  0x88   :  { %v3175_v1 = vpop.permute.xlu0 %3174  ;;  %v3182_v2 = vunpack.i.h.bf16 %v3180_v0  ;;  %v3181_v4 = vunpack.i.l.bf16 %v3180_v0 }
  0x89   :  { %v3177_v8 = vunpack.i.h.bf16 %v3175_v1  ;;  %v3176_v9 = vunpack.i.l.bf16 %v3175_v1 }
  0x8a   :  { %v4185_v20 = vsel %vm99_vm0, %v3181_v4, %v3182_v2  ;;  %v4191_v21 = vsel %vm99_vm0, %v3182_v2, %v7385_v11  ;;  %v7391_v11 = vunpack.i.l.bf16 %v4087_v36 }
  0x8b   :  { %v4173_v17 = vsel %vm99_vm0, %v3172_v35, %v3176_v9  ;;  %v4177_v18 = vsel %vm99_vm0, %v3176_v9, %v3177_v8  ;;  %v4181_v19 = vsel %vm99_vm0, %v3177_v8, %v3181_v4  ;;  %7541 = vst [vmem:[#allocation17_spill] sm:$0xff] %v4185_v20 }
  0x8c   :  { %7538 = vst [vmem:[#allocation14_spill] sm:$0xff] %v4173_v17  ;;  %3409 = vrot.lane.b32.xlu2 %v3976_v7, %s3885_s25 }
  0x8d   :  { %7539 = vst [vmem:[#allocation15_spill] sm:$0xff] %v4177_v18  ;;  %3404 = vrot.lane.b32.xlu1 %v4070_v32, %s3892_s11 }
  0x8e   :  { %7540 = vst [vmem:[#allocation16_spill] sm:$0xff] %v4181_v19  ;;  %3399 = vrot.lane.b32.xlu0 %v4048_v24, %s3894_s13  ;;  %v4200_v23 = vpop.permute.xlu2 %3244 }
  0x8f   :  { %7542 = vst [vmem:[#allocation18_spill] sm:$0xff] %v4191_v21  ;;  %v3195_v25 = vpop.permute.xlu1 %3194  ;;  %v7396_v43 = vunpack.i.h.bf16 %v4200_v23  ;;  %v3246_v51 = vunpack.i.l.bf16 %v4200_v23 }
  0x90   :  { %v4202_v26 = vpop.permute.xlu0 %3189  ;;  %v3197_v28 = vunpack.i.h.bf16 %v3195_v25  ;;  %v3196_v29 = vunpack.i.l.bf16 %v3195_v25 }
  0x91   :  { %v7394_v30 = vunpack.i.h.bf16 %v4202_v26  ;;  %v7393_v31 = vunpack.i.l.bf16 %v4202_v26  ;;  %v4243_v8 = vsel %vm229_vm2, %v3246_v51, %v7396_v43 }
  0x92   :  { %v4222_v40 = vsel %vm164_vm1, %v3196_v29, %v3197_v28  ;;  %v4226_v42 = vsel %vm164_vm1, %v3197_v28, %v3201_v47  ;;  %7544 = vst [vmem:[#allocation20_spill] sm:$0xff] %v4243_v8 }
  0x93   :  { %v4212_v35 = vsel %vm164_vm1, %v7387_v22, %v7393_v31  ;;  %v4218_v37 = vsel %vm164_vm1, %v7394_v30, %v3196_v29  ;;  %7543 = vst [vmem:[#allocation19_spill] sm:$0xff] %v4226_v42 }
  0x94   :  { %3424 = vrot.lane.b32.xlu2 %v4070_v32, %s3894_s13 }
  0x95   :  { %3419 = vrot.lane.b32.xlu1 %v3976_v7, %s3887_s27 }
  0x96   :  { %3414 = vrot.lane.b32.xlu0 %v4070_v32, %s3893_s12  ;;  %v4235_v49 = vpop.permute.xlu2 %3259 }
  0x97   :  { %v3210_v52 = vpop.permute.xlu1 %3209  ;;  %v3261_v48 = vunpack.i.l.bf16 %v4235_v49 }
  0x98   :  { %v3205_v0 = vpop.permute.xlu0 %3204  ;;  %v3212_v47 = vunpack.i.h.bf16 %v3210_v52  ;;  %v3211_v1 = vunpack.i.l.bf16 %v3210_v52  ;;  %v3262_v52 = vunpack.i.h.bf16 %v4235_v49 }
  0x99   :  { %v3207_v2 = vunpack.i.h.bf16 %v3205_v0  ;;  %v3206_v4 = vunpack.i.l.bf16 %v3205_v0 }
  0x9a   :  { %v4261_v28 = vsel %vm164_vm1, %v3211_v1, %v3212_v47  ;;  %v4265_v29 = vsel %vm164_vm1, %v3212_v47, %v3216_v63 }
  0x9b   :  { %v4249_v32 = vsel %vm164_vm1, %v3202_v45, %v3206_v4  ;;  %v4253_v9 = vsel %vm164_vm1, %v3206_v4, %v3207_v2  ;;  %v4257_v25 = vsel %vm164_vm1, %v3207_v2, %v3211_v1  ;;  %7548 = vst [vmem:[#allocation24_spill] sm:$0xff] %v4261_v28 }
  0x9c   :  { %7545 = vst [vmem:[#allocation21_spill] sm:$0xff] %v4249_v32  ;;  %3439 = vrot.lane.b32.xlu2 %v3976_v7, %s3892_s11 }
  0x9d   :  { %7546 = vst [vmem:[#allocation22_spill] sm:$0xff] %v4253_v9  ;;  %3434 = vrot.lane.b32.xlu1 %v3976_v7, %s3891_s10 }
  0x9e   :  { %7547 = vst [vmem:[#allocation23_spill] sm:$0xff] %v4257_v25  ;;  %3429 = vrot.lane.b32.xlu0 %v3976_v7, %s3890_s30  ;;  %v4274_v45 = vpop.permute.xlu2 %3274 }
  0x9f   :  { %7549 = vst [vmem:[#allocation25_spill] sm:$0xff] %v4265_v29  ;;  %v4277_v0 = vpop.permute.xlu1 %3224  ;;  %v7399_v22 = vunpack.i.h.bf16 %v4274_v45  ;;  %v3276_v46 = vunpack.i.l.bf16 %v4274_v45 }
  0xa0   :  { %v3220_v1 = vpop.permute.xlu0 %3219  ;;  %v7390_v63 = vunpack.i.h.bf16 %v4277_v0  ;;  %v7392_v47 = vunpack.i.l.bf16 %v4277_v0 }
  0xa1   :  { %v3222_v2 = vunpack.i.h.bf16 %v3220_v1  ;;  %v3221_v4 = vunpack.i.l.bf16 %v3220_v1 }
  0xa2   :  { %v4290_v54 = vsel %vm229_vm2, %v7390_v63, %v7395_v39  ;;  %v4306_v49 = vsel %vm229_vm2, %v3262_v52, %v7392_v47 }
  0xa3   :  { %v4296_v53 = vsel %vm164_vm1, %v3217_v61, %v3221_v4  ;;  %v4300_v1 = vsel %vm164_vm1, %v3221_v4, %v3222_v2  ;;  %7552 = vst [vmem:[#allocation28_spill] sm:$0xff] %v4306_v49  ;;  %v4312_v63 = vsel %vm164_vm1, %v3222_v2, %v7391_v11  ;;  %v4319_v61 = vsel %vm229_vm2, %v3261_v48, %v3262_v52 }
  0xa4   :  { %7550 = vst [vmem:[#allocation26_spill] sm:$0xff] %v4296_v53  ;;  %3454 = vrot.lane.b32.xlu2 %v4048_v24, %s3895_s14  ;;  %v7400_v2 = vunpack.i.h.bf16 %v4161_v62  ;;  %v4333_v11 = vsel %vm294_vm3, %v3276_v46, %v7399_v22 }
  0xa5   :  { %7551 = vst [vmem:[#allocation27_spill] sm:$0xff] %v4300_v1  ;;  %3449 = vrot.lane.b32.xlu1 %v3976_v7, %s3893_s12  ;;  %v7560_v1 = vunpack.i.h.bf16 %v4200_v23 }
  0xa6   :  { %7553 = vst [vmem:[#allocation29_spill] sm:$0xff] %v4312_v63  ;;  %3444 = vrot.lane.b32.xlu0 %v4048_v24, %s3896_s15  ;;  %v4327_v4 = vpop.permute.xlu2 %3289  ;;  %v3463_v24 = vpack.i.bf16 %v4004_v14, %v3969_v5 }
  0xa7   :  { %7554 = vst [vmem:[#allocation30_spill] sm:$0xff] %v4319_v61  ;;  %v3240_v52 = vpop.permute.xlu1 %3239  ;;  %v3292_v14 = vunpack.i.h.bf16 %v4327_v4 }
  0xa8   :  { %v3235_v47 = vpop.permute.xlu0 %3234  ;;  %v3242_v31 = vunpack.i.h.bf16 %v3240_v52  ;;  %v3241_v30 = vunpack.i.l.bf16 %v3240_v52  ;;  %v3291_v52 = vunpack.i.l.bf16 %v4327_v4 }
  0xa9   :  { %v3237_v39 = vunpack.i.h.bf16 %v3235_v47  ;;  %v3236_v43 = vunpack.i.l.bf16 %v3235_v47 }
  0xaa   :  { %v4349_v22 = vsel %vm229_vm2, %v3241_v30, %v3242_v31  ;;  %v4357_v5 = vsel %vm229_vm2, %v3242_v31, %v3246_v51  ;;  %v4370_v20 = vsel %vm294_vm3, %v3291_v52, %v3292_v14 }
  0xab   :  { %v4341_v21 = vsel %vm229_vm2, %v7400_v2, %v3236_v43  ;;  %v4345_v63 = vsel %vm229_vm2, %v3236_v43, %v3237_v39  ;;  %7555 = vst [vmem:[#allocation31_spill] sm:$0xff] %v4349_v22  ;;  %v4353_v47 = vsel %vm229_vm2, %v3237_v39, %v3241_v30 }
  0xac   :  { %7556 = vst [vmem:[#allocation32_spill] sm:$0xff] %v4353_v47  ;;  %3469 = vrot.lane.b32.xlu2 %v3976_v7, %s3888_s28 }
  0xad   :  { %7557 = vst [vmem:[#allocation33_spill] sm:$0xff] %v4357_v5  ;;  %3464 = vrot.lane.b32.xlu1 %v3463_v24, %s3896_s15 }
  0xae   :  { %3459 = vrot.lane.b32.xlu0 %v3976_v7, %s3894_s13  ;;  %v4365_v43 = vpop.permute.xlu2 %3304  ;;  %7559 = vst [vmem:[#allocation35_spill] sm:$0xff] %v4370_v20 }
  0xaf   :  { %7558 = vst [vmem:[#allocation34_spill] sm:$0xff] %v4365_v43  ;;  %v3255_v30 = vpop.permute.xlu1 %3254 }
  0xb0   :  { %v3250_v39 = vpop.permute.xlu0 %3249  ;;  %v3257_v2 = vunpack.i.h.bf16 %v3255_v30  ;;  %v3256_v49 = vunpack.i.l.bf16 %v3255_v30 }
  0xb1   :  { %v3252_v31 = vunpack.i.h.bf16 %v3250_v39  ;;  %v3251_v51 = vunpack.i.l.bf16 %v3250_v39 }
  0xb2   :  { %v4388_v30 = vsel %vm229_vm2, %v3256_v49, %v3257_v2  ;;  %v4392_v39 = vsel %vm229_vm2, %v3257_v2, %v3261_v48 }
  0xb3   :  { %v4376_v61 = vsel %vm229_vm2, %v7560_v1, %v3251_v51  ;;  %v4380_v19 = vsel %vm229_vm2, %v3251_v51, %v3252_v31  ;;  %v4384_v4 = vsel %vm229_vm2, %v3252_v31, %v3256_v49  ;;  %7564 = vst [vmem:[#allocation39_spill] sm:$0xff] %v4388_v30 }
  0xb4   :  { %7561 = vst [vmem:[#allocation36_spill] sm:$0xff] %v4376_v61  ;;  %3484 = vrot.lane.b32.xlu2 %v3976_v7, %s3889_s29 }
  0xb5   :  { %7562 = vst [vmem:[#allocation37_spill] sm:$0xff] %v4380_v19  ;;  %3479 = vrot.lane.b32.xlu1 %v3976_v7, %s3886_s26 }
  0xb6   :  { %7563 = vst [vmem:[#allocation38_spill] sm:$0xff] %v4384_v4  ;;  %3474 = vrot.lane.b32.xlu0 %v3463_v24, %s3895_s14  ;;  %v4399_v23 = vpop.permute.xlu2 %3319 }
  0xb7   :  { %7565 = vst [vmem:[#allocation40_spill] sm:$0xff] %v4392_v39  ;;  %v4401_v1 = vpop.permute.xlu1 %3269  ;;  %v7408_v31 = vunpack.i.h.bf16 %v4399_v23  ;;  %v7409_v49 = vunpack.i.l.bf16 %v4399_v23 }
  0xb8   :  { %v4405_v51 = vpop.permute.xlu0 %3264  ;;  %v7412_v48 = vunpack.i.h.bf16 %v4401_v1 }
  0xb9   :  { %v1023_v2 = vsel %vm1009_vm4, %v7409_v49, %v7408_v31 }
  0xba   :  { %1800 = vmatpush.msra.mxu2 %v1023_v2  ;;  %v4419_v24 = vsel %vm294_vm3, %v7412_v48, %v3276_v46  ;;  %v7567_v48 = vunpack.i.h.bf16 %v4274_v45 }
  0xbc   :  { %3499 = vrot.lane.b32.xlu2 %v4009_v16, %s3890_s30 }
  0xbd   :  { %3494 = vrot.lane.b32.xlu1 %v4009_v16, %s3887_s27 }
  0xbe   :  { %3489 = vrot.lane.b32.xlu0 %v4009_v16, %s3885_s25  ;;  %v4427_v53 = vpop.permute.xlu2 %3334 }
  0xbf   :  { %v3285_v18 = vpop.permute.xlu1 %3284  ;;  %v7580_v9 = vunpack.i.h.bf16 %v4427_v53 }
  0xc0   :  { %v3280_v31 = vpop.permute.xlu0 %3279  ;;  %v3287_v2 = vunpack.i.h.bf16 %v3285_v18  ;;  %v3286_v49 = vunpack.i.l.bf16 %v3285_v18 }
  0xc1   :  { %v3282_v39 = vunpack.i.h.bf16 %v3280_v31  ;;  %v3281_v12 = vunpack.i.l.bf16 %v3280_v31 }
  0xc2   :  { %v4445_v29 = vsel %vm294_vm3, %v3286_v49, %v3287_v2  ;;  %v4449_v18 = vsel %vm294_vm3, %v3287_v2, %v3291_v52  ;;  %v7420_v52 = vunpack.i.l.bf16 %v4405_v51 }
  0xc3   :  { %v4431_v46 = vsel %vm294_vm3, %v3281_v12, %v3282_v39  ;;  %v4437_v30 = vsel %vm294_vm3, %v7567_v48, %v3281_v12  ;;  %v4441_v17 = vsel %vm294_vm3, %v3282_v39, %v3286_v49  ;;  %7570 = vst [vmem:[#allocation44_spill] sm:$0xff] %v4445_v29 }
  0xc4   :  { %7566 = vst [vmem:[#allocation41_spill] sm:$0xff] %v4431_v46  ;;  %3514 = vrot.lane.b32.xlu2 %v4009_v16, %s3892_s11 }
  0xc5   :  { %7568 = vst [vmem:[#allocation42_spill] sm:$0xff] %v4437_v30  ;;  %3509 = vrot.lane.b32.xlu1 %v4009_v16, %s3888_s28 }
  0xc6   :  { %7569 = vst [vmem:[#allocation43_spill] sm:$0xff] %v4441_v17  ;;  %3504 = vrot.lane.b32.xlu0 %v4009_v16, %s3891_s10  ;;  %v4457_v12 = vpop.permute.xlu2 %3349 }
  0xc7   :  { %7571 = vst [vmem:[#allocation45_spill] sm:$0xff] %v4449_v18  ;;  %v3300_v45 = vpop.permute.xlu1 %3299  ;;  %v3351_v61 = vunpack.i.l.bf16 %v4457_v12 }
  0xc8   :  { %v3295_v39 = vpop.permute.xlu0 %3294  ;;  %v3302_v31 = vunpack.i.h.bf16 %v3300_v45  ;;  %v3301_v49 = vunpack.i.l.bf16 %v3300_v45 }
  0xc9   :  { %v3297_v48 = vunpack.i.h.bf16 %v3295_v39  ;;  %v3296_v4 = vunpack.i.l.bf16 %v3295_v39 }
  0xca   :  { %v4474_v19 = vsel %vm294_vm3, %v3301_v49, %v3302_v31  ;;  %v4480_v45 = vsel %vm294_vm3, %v3302_v31, %v7420_v52 }
  0xcb   :  { %v4462_v2 = vsel %vm294_vm3, %v3292_v14, %v3296_v4  ;;  %v4466_v38 = vsel %vm294_vm3, %v3296_v4, %v3297_v48  ;;  %v4470_v28 = vsel %vm294_vm3, %v3297_v48, %v3301_v49  ;;  %7575 = vst [vmem:[#allocation49_spill] sm:$0xff] %v4474_v19  ;;  %v3336_v19 = vunpack.i.l.bf16 %v4427_v53 }
  0xcc   :  { %7572 = vst [vmem:[#allocation46_spill] sm:$0xff] %v4462_v2  ;;  %3529 = vrot.lane.b32.xlu2 %v4009_v16, %s3889_s29 }
  0xcd   :  { %7573 = vst [vmem:[#allocation47_spill] sm:$0xff] %v4466_v38  ;;  %3524 = vrot.lane.b32.xlu1 %v4009_v16, %s3893_s12 }
  0xce   :  { %7574 = vst [vmem:[#allocation48_spill] sm:$0xff] %v4470_v28  ;;  %3519 = vrot.lane.b32.xlu0 %v4009_v16, %s3886_s26  ;;  %v4488_v14 = vpop.permute.xlu2 %3364 }
  0xcf   :  { %7576 = vst [vmem:[#allocation50_spill] sm:$0xff] %v4480_v45  ;;  %v4490_v4 = vpop.permute.xlu1 %3314  ;;  %v7579_v33 = vunpack.i.l.bf16 %v4488_v14 }
  0xd0   :  { %7577 = vst [vmem:[#allocation51_spill] sm:$0xff] %v4488_v14  ;;  %v4492_v39 = vpop.permute.xlu0 %3309  ;;  %v7422_v31 = vunpack.i.l.bf16 %v4490_v4 }
  0xd1   :  { %v3312_v49 = vunpack.i.h.bf16 %v4492_v39 }
  0xd3   :  { %v4501_v48 = vsel %vm359_vm5, %v3312_v49, %v7422_v31 }
  0xd4   :  { %3544 = vrot.lane.b32.xlu2 %v4009_v16, %s3884_s24 }
  0xd5   :  { %3539 = vrot.lane.b32.xlu1 %v3961_v3, %s3885_s25 }
  0xd6   :  { %3534 = vrot.lane.b32.xlu0 %v4009_v16, %s3894_s13  ;;  %v4510_v45 = vpop.permute.xlu2 %3379 }
  0xd7   :  { %7578 = vst [vmem:[#allocation52_spill] sm:$0xff] %v4510_v45  ;;  %v4516_v28 = vpop.permute.xlu1 %3329 }
  0xd8   :  { %v4519_v2 = vpop.permute.xlu0 %3324  ;;  %v7434_v52 = vunpack.i.h.bf16 %v4516_v28  ;;  %v7436_v20 = vunpack.i.l.bf16 %v4516_v28 }
  0xd9   :  { %v7435_v34 = vunpack.i.h.bf16 %v4519_v2  ;;  %v3326_v25 = vunpack.i.l.bf16 %v4519_v2 }
  0xda   :  { %v958_v38 = vsel %vm944_vm6, %v7436_v20, %v7434_v52  ;;  %v4552_v52 = vsel %vm489_vm8, %v3336_v19, %v7580_v9 }
  0xdb   :  { %v4538_v18 = vsel %vm554_vm7, %v3326_v25, %v7435_v34  ;;  %v4544_v31 = vsel %vm554_vm7, %v7579_v33, %v3326_v25  ;;  %1801 = vmatpush.msra.mxu2 %v958_v38  ;;  %v7581_v34 = vunpack.i.l.bf16 %v4510_v45  ;;  %v3311_v33 = vunpack.i.l.bf16 %v4492_v39 }
  0xdc   :  { %1825 = vmatpush.msra.mxu3 %v4538_v18  ;;  %3559 = vrot.lane.b32.xlu2 %v3961_v3, %s3891_s10  ;;  %v7582_v38 = vunpack.i.h.bf16 %v4457_v12  ;;  %v3271_v25 = vunpack.i.l.bf16 %v4401_v1 }
  0xdd   :  { %v4558_v20 = vsel %vm489_vm8, %v7581_v34, %v3336_v19  ;;  %1785 = vmatpush.msra.mxu1 %v4544_v31  ;;  %3554 = vrot.lane.b32.xlu1 %v3961_v3, %s3890_s30  ;;  %v4592_v19 = vsel %vm359_vm5, %v3311_v33, %v3312_v49 }
  0xde   :  { %3549 = vrot.lane.b32.xlu0 %v3961_v3, %s3887_s27  ;;  %v4572_v9 = vsel %vm424_vm9, %v3351_v61, %v7582_v38  ;;  %1826 = vmatpush.msra.mxu3 %v4552_v52  ;;  %v4575_v34 = vpop.permute.xlu2 %3394  ;;  %v7585_v38 = vunpack.i.l.bf16 %v4399_v23 }
  0xdf   :  { %7583 = vst [vmem:[#allocation53_spill] sm:$0xff] %v4575_v34  ;;  %1786 = vmatpush.msra.mxu1 %v4558_v20  ;;  %v4580_v39 = vpop.permute.xlu1 %3344  ;;  %v7445_v8 = vunpack.i.l.bf16 %v4575_v34 }
  0xe0   :  { %7584 = vst [vmem:[#allocation54_spill] sm:$0xff] %v4580_v39  ;;  %v4583_v29 = vpop.permute.xlu0 %3339  ;;  %1827 = vmatpush.msra.mxu3 %v4572_v9  ;;  %v7586_v60 = vunpack.i.h.bf16 %v4580_v39 }
  0xe1   :  { %v3341_v32 = vunpack.i.l.bf16 %v4583_v29  ;;  %v4598_v5 = vsel %vm424_vm9, %v7445_v8, %v3351_v61  ;;  %v7587_v49 = vunpack.i.h.bf16 %v4583_v29  ;;  %v7588_v61 = vunpack.i.h.bf16 %v4401_v1 }
  0xe2   :  { %1828 = vmatpush.msra.mxu3 %v4592_v19  ;;  %v1024_v17 = vsel %vm1009_vm4, %v7586_v60, %v7585_v38  ;;  %1787 = vmatpush.msra.mxu1 %v4598_v5  ;;  %v7589_v60 = vunpack.i.h.bf16 %v4365_v43  ;;  %v7590_v1 = vunpack.i.h.bf16 %v4161_v62 }
  0xe3   :  { %v893_v59 = vsel %vm879_vm10, %v3341_v32, %v7587_v49  ;;  %1760 = vmatpush.msra.mxu0 %v1024_v17  ;;  %v4617_v8 = vsel %vm294_vm3, %v3271_v25, %v7588_v61 }
  0xe4   :  { %1802 = vmatpush.msra.mxu2 %v893_v59  ;;  %1829 = vmatpush.msra.mxu3 %v4617_v8  ;;  %v4630_v17 = vsel %vm359_vm5, %v7589_v60, %v3311_v33  ;;  %v7591_v59 = vunpack.i.l.bf16 %v4161_v62  ;;  %v7593_v33 = vunpack.i.h.bf16 %v4405_v51  ;;  %v7594_v62 = vunpack.i.h.bf16 %v4202_v26 }
  0xe5   :  { %3574 = vrot.lane.b32.xlu2 %v3961_v3, %s3893_s12  ;;  %3569 = vrot.lane.b32.xlu1 %v3976_v7, %s3896_s15 }
  0xe6   :  { %3564 = vrot.lane.b32.xlu0 %v3961_v3, %s3892_s11  ;;  %v4638_v38 = vsel %vm229_vm2, %v7591_v59, %v7590_v1  ;;  %1788 = vmatpush.msra.mxu1 %v4630_v17  ;;  %v4642_v49 = vpop.permute.xlu2 %3409  ;;  %v4652_v60 = vsel %vm294_vm3, %v7593_v33, %v3271_v25  ;;  %v7595_v1 = vunpack.i.l.bf16 %v4202_v26  ;;  %v7597_v25 = vunpack.i.h.bf16 %v4118_v50 }
  0xe7   :  { %1830 = vmatpush.msra.mxu3 %v4638_v38  ;;  %v4644_v61 = vpop.permute.xlu1 %3359  ;;  %v7598_v26 = vunpack.i.l.bf16 %v4118_v50 }
  0xe8   :  { %7592 = vst [vmem:[#allocation55_spill] sm:$0xff] %v4644_v61  ;;  %v4646_v42 = vpop.permute.xlu0 %3354  ;;  %v4660_v59 = vsel %vm164_vm1, %v7595_v1, %v7594_v62  ;;  %v7449_v47 = vunpack.i.h.bf16 %v4644_v61  ;;  %1789 = vmatpush.msra.mxu1 %v4652_v60  ;;  %v7600_v62 = vunpack.i.l.bf16 %v4516_v28 }
  0xe9   :  { %7596 = vst [vmem:[#allocation56_spill] sm:$0xff] %v4660_v59  ;;  %v7450_v30 = vunpack.i.h.bf16 %v4646_v42  ;;  %v3356_v58 = vunpack.i.l.bf16 %v4646_v42  ;;  %1831 = vmatpush.msra.mxu3 %v4660_v59  ;;  %v4674_v33 = vsel %vm99_vm0, %v7598_v26, %v7597_v25  ;;  %v7464_v59 = vunpack.i.h.bf16 %v4488_v14 }
  0xea   :  { %7599 = vst [vmem:[#allocation57_spill] sm:$0xff] %v4674_v33  ;;  %1790 = vmatpush.msra.mxu1 %v4290_v54  ;;  %v959_v1 = vsel %vm944_vm6, %v7449_v47, %v7600_v62 }
  0xeb   :  { %1832 = vmatpush.msra.mxu3 %v4674_v33  ;;  %v828_v50 = vsel %vm814_vm11, %v3356_v58, %v7450_v30  ;;  %1761 = vmatpush.msra.mxu0 %v959_v1 }
  0xec   :  { %1803 = vmatpush.msra.mxu2 %v828_v50  ;;  %1791 = vmatpush.msra.mxu1 %v4212_v35 }
  0xed   :  { %3589 = vrot.lane.b32.xlu2 %v3961_v3, %s3888_s28  ;;  %3584 = vrot.lane.b32.xlu1 %v3961_v3, %s3894_s13 }
  0xee   :  { %3579 = vrot.lane.b32.xlu0 %v3976_v7, %s3895_s14  ;;  %1792 = vmatpush.msra.mxu1 %v4135_v56  ;;  %v4696_v25 = vpop.permute.xlu2 %3424 }
  0xef   :  { %7601 = vst [vmem:[#allocation58_spill] sm:$0xff] %v4696_v25  ;;  %1833 = vmatpush.msra.mxu3 %v3999_v13  ;;  %v4699_v26 = vpop.permute.xlu1 %3374 }
  0xf0   :  { %7602 = vst [vmem:[#allocation59_spill] sm:$0xff] %v4699_v26  ;;  %v4701_v62 = vpop.permute.xlu0 %3369  ;;  %v7451_v1 = vunpack.i.h.bf16 %v4699_v26  ;;  %1793 = vmatpush.msra.mxu1 %v3974_v6 }
  0xf1   :  { %v7452_v50 = vunpack.i.h.bf16 %v4701_v62  ;;  %v3371_v47 = vunpack.i.l.bf16 %v4701_v62 }
  0xf2   :  { %v894_v7 = vsel %vm879_vm10, %v7451_v1, %v3341_v32 }
  0xf3   :  { %v763_v13 = vsel %vm749_vm12, %v3371_v47, %v7452_v50  ;;  %1762 = vmatpush.msra.mxu0 %v894_v7 }
  0xf4   :  { %1804 = vmatpush.msra.mxu2 %v763_v13 }
  0xf5   :  { %3604 = vrot.lane.b32.xlu2 %v3961_v3, %s3884_s24  ;;  %3599 = vrot.lane.b32.xlu1 %v3961_v3, %s3889_s29 }
  0xf6   :  { %3594 = vrot.lane.b32.xlu0 %v3961_v3, %s3886_s26  ;;  %v4722_v6 = vpop.permute.xlu2 %3439 }
  0xf7   :  { %v4724_v30 = vpop.permute.xlu1 %3389 }
  0xf8   :  { %7603 = vst [vmem:[#allocation60_spill] sm:$0xff] %v4724_v30  ;;  %v4726_v32 = vpop.permute.xlu0 %3384  ;;  %v7455_v7 = vunpack.i.h.bf16 %v4724_v30 }
  0xf9   :  { %v7456_v13 = vunpack.i.h.bf16 %v4726_v32  ;;  %v3386_v1 = vunpack.i.l.bf16 %v4726_v32 }
  0xfa   :  { %v829_v50 = vsel %vm814_vm11, %v7455_v7, %v3356_v58 }
  0xfb   :  { %v698_v3 = vsel %vm684_vm13, %v3386_v1, %v7456_v13  ;;  %1763 = vmatpush.msra.mxu0 %v829_v50 }
  0xfc   :  { %1805 = vmatpush.msra.mxu2 %v698_v3 }
  0xfd   :  { %3619 = vrot.lane.b32.xlu2 %v4007_v15, %s3887_s27  ;;  %3614 = vrot.lane.b32.xlu1 %v4009_v16, %s3896_s15 }
  0xfe   :  { %3609 = vrot.lane.b32.xlu0 %v4007_v15, %s3885_s25  ;;  %v4746_v55 = vpop.permute.xlu2 %3454 }
  0xff   :  { %v4748_v22 = vpop.permute.xlu1 %3404 }
 0x100   :  { %7604 = vst [vmem:[#allocation61_spill] sm:$0xff] %v4748_v22  ;;  %v4750_v58 = vpop.permute.xlu0 %3399  ;;  %v7459_v50 = vunpack.i.h.bf16 %v4748_v22 }
 0x101   :  { %v7460_v3 = vunpack.i.h.bf16 %v4750_v58  ;;  %v3401_v7 = vunpack.i.l.bf16 %v4750_v58 }
 0x102   :  { %v764_v13 = vsel %vm749_vm12, %v7459_v50, %v3371_v47 }
 0x103   :  { %v633_v46 = vsel %vm619_vm14, %v3401_v7, %v7460_v3  ;;  %1764 = vmatpush.msra.mxu0 %v764_v13  ;;  %v3828_v3 = vld [vmem:[%s7375_s0 + $0x50] sm:$0xff] }
 0x104   :  { %1806 = vmatpush.msra.mxu2 %v633_v46  ;;  %v7462_v46 = vunpack.i.h.bf16 %v4696_v25 }
 0x105   :  { %3634 = vrot.lane.b32.xlu2 %v4007_v15, %s3891_s10  ;;  %3629 = vrot.lane.b32.xlu1 %v4007_v15, %s3890_s30 }
 0x106   :  { %3624 = vrot.lane.b32.xlu0 %v4009_v16, %s3895_s14  ;;  %1807 = vmatpush.msra.mxu2 %v4544_v31  ;;  %v4771_v33 = vpop.permute.xlu2 %3469  ;;  %v3638_v16 = vpack.i.bf16 %v3987_v10, %v3828_v3  ;;  %v634_v10 = vsel %vm619_vm14, %v7462_v46, %v3401_v7  ;;  %v7466_v7 = vunpack.i.l.bf16 %v4365_v43 }
 0x107   :  { %7605 = vst [vmem:[#allocation62_spill] sm:$0xff] %v4771_v33  ;;  %v4773_v47 = vpop.permute.xlu1 %3419 }
 0x108   :  { %v4775_v50 = vpop.permute.xlu0 %3414  ;;  %1808 = vmatpush.msra.mxu2 %v4558_v20  ;;  %v7467_v20 = vunpack.i.h.bf16 %v4510_v45 }
 0x109   :  { %7606 = vst [vmem:[#allocation63_spill] sm:$0xff] %v4775_v50  ;;  %v7463_v13 = vunpack.i.h.bf16 %v4775_v50 }
 0x10a   :  { %1809 = vmatpush.msra.mxu2 %v4598_v5 }
 0x10b   :  { %v699_v31 = vsel %vm684_vm13, %v7463_v13, %v3386_v1 }
 0x10c   :  { %1765 = vmatpush.msra.mxu0 %v699_v31  ;;  %1810 = vmatpush.msra.mxu2 %v4630_v17  ;;  %v7465_v17 = vunpack.i.h.bf16 %v4575_v34 }
 0x10d   :  { %3649 = vrot.lane.b32.xlu2 %v4007_v15, %s3886_s26  ;;  %3644 = vrot.lane.b32.xlu1 %v4007_v15, %s3892_s11  ;;  %v7607_v15 = vunpack.i.l.bf16 %v4488_v14  ;;  %v7646_v14 = vunpack.i.l.bf16 %v4775_v50 }
 0x10e   :  { %3639 = vrot.lane.b32.xlu0 %v3638_v16, %s3888_s28  ;;  %1766 = vmatpush.msra.mxu0 %v634_v10  ;;  %v4802_v5 = vpop.permute.xlu2 %3484  ;;  %v7609_v10 = vunpack.i.l.bf16 %v4510_v45 }
 0x10f   :  { %1811 = vmatpush.msra.mxu2 %v4652_v60  ;;  %v4805_v1 = vpop.permute.xlu1 %3434  ;;  %v4815_v16 = vsel %vm554_vm7, %v7464_v59, %v7607_v15  ;;  %v7468_v60 = vunpack.i.h.bf16 %v4771_v33  ;;  %v3829_v15 = vld [vmem:[%s7375_s0 + $0x58] sm:$0xff]  ;;  %v7611_v59 = vunpack.i.l.bf16 %v4575_v34 }
 0x110   :  { %v4807_v31 = vpop.permute.xlu0 %3429  ;;  %7608 = vst [vmem:[#allocation64_spill] sm:$0xff] %v4815_v16  ;;  %1767 = vmatpush.msra.mxu0 %v4815_v16  ;;  %v4827_v46 = vsel %vm489_vm8, %v7467_v20, %v7609_v10  ;;  %v4832_v13 = vpack.i.bf16 %v3829_v15, %v3828_v3 }
 0x111   :  { %1812 = vmatpush.msra.mxu2 %v4290_v54  ;;  %7610 = vst [vmem:[#allocation65_spill] sm:$0xff] %v4827_v46  ;;  %v3471_v54 = vunpack.i.l.bf16 %v4771_v33  ;;  %v4843_v10 = vsel %vm424_vm9, %v7465_v17, %v7611_v59 }
 0x112   :  { %1768 = vmatpush.msra.mxu0 %v4827_v46  ;;  %7612 = vst [vmem:[#allocation66_spill] sm:$0xff] %v4843_v10 }
 0x113   :  { %1813 = vmatpush.msra.mxu2 %v4212_v35  ;;  %v7613_v35 = vunpack.i.h.bf16 %v4365_v43  ;;  %v4863_v59 = vsel %vm554_vm7, %v3471_v54, %v7468_v60  ;;  %v3830_v60 = vld [vmem:[%s7375_s0 + $0x8] sm:$0xff] }
 0x114   :  { %1769 = vmatpush.msra.mxu0 %v4843_v10  ;;  %7615 = vst [vmem:[#allocation68_spill] sm:$0xff] %v4863_v59  ;;  %v3832_v10 = vld [vmem:[%s7375_s0 + $0x68] sm:$0xff] }
 0x115   :  { %1814 = vmatpush.msra.mxu2 %v4135_v56  ;;  %3659 = vrot.lane.b32.xlu1 %v4832_v13, %s3889_s29  ;;  %v4857_v3 = vsel %vm359_vm5, %v7466_v7, %v7613_v35  ;;  %v7617_v35 = vunpack.i.h.bf16 %v4405_v51  ;;  %v7618_v7 = vunpack.i.l.bf16 %v4405_v51  ;;  %v7620_v51 = vunpack.i.h.bf16 %v4277_v0 }
 0x116   :  { %3664 = vrot.lane.b32.xlu2 %v4832_v13, %s3894_s13  ;;  %7614 = vst [vmem:[#allocation67_spill] sm:$0xff] %v4857_v3  ;;  %3654 = vrot.lane.b32.xlu0 %v4832_v13, %s3893_s12  ;;  %v4868_v56 = vpop.permute.xlu2 %3499 }
 0x117   :  { %1770 = vmatpush.msra.mxu0 %v4857_v3  ;;  %7616 = vst [vmem:[#allocation69_spill] sm:$0xff] %v4868_v56  ;;  %v4870_v15 = vpop.permute.xlu1 %3449  ;;  %v4880_v20 = vsel %vm294_vm3, %v7618_v7, %v7617_v35  ;;  %1815 = vmatpush.msra.mxu2 %v3830_v60  ;;  %v7621_v7 = vunpack.i.l.bf16 %v4277_v0  ;;  %v3831_v60 = vld [vmem:[%s7375_s0 + $0x60] sm:$0xff]  ;;  %vm1074_vm3 = vcmp.lt.s32.totalorder %v4058_v27, 47  ;;  %v2477_v27 = vld [vmem:[%s7378_s3 + $0x1e8] sm:$0xff] }
 0x118   :  { %v4872_v17 = vpop.permute.xlu0 %3444  ;;  %7619 = vst [vmem:[#allocation70_spill] sm:$0xff] %v4880_v20  ;;  %v4906_v3 = vpack.i.bf16 %v3832_v10, %v3831_v60  ;;  %v7626_v60 = vunpack.i.h.bf16 %v4746_v55  ;;  %v7480_v10 = vunpack.i.l.bf16 %v4699_v26  ;;  %v5041_v56 = vld [vmem:[%s7375_s0 + $0x40] sm:$0xff] }
 0x119   :  { %v7475_v46 = vunpack.i.h.bf16 %v4872_v17  ;;  %v3446_v16 = vunpack.i.l.bf16 %v4872_v17  ;;  %1771 = vmatpush.msra.mxu0 %v4880_v20  ;;  %1905 = vmatpush.msrb.mxu2 %v4863_v59  ;;  %v4898_v35 = vsel %vm229_vm2, %v7621_v7, %v7620_v51  ;;  %v7623_v51 = vunpack.i.h.bf16 %v4087_v36  ;;  %7643 = vst [vmem:[#allocation78_spill] sm:$0xff] %v5041_v56 }
 0x11a   :  { %7622 = vst [vmem:[#allocation71_spill] sm:$0xff] %v4898_v35  ;;  %v7624_v7 = vunpack.i.l.bf16 %v4087_v36  ;;  %v7628_v36 = vunpack.i.h.bf16 %v4102_v41  ;;  %vm3054_vm2 = vcmask 1040384  }
 0x11b   :  { %1772 = vmatpush.msra.mxu0 %v4898_v35  ;;  %v1153_v0 = vsel %vm1139_vm15, %v3446_v16, %v7475_v46  ;;  %v7627_v35 = vunpack.i.l.bf16 %v4746_v55 }
 0x11c   :  { %v4920_v20 = vsel %vm164_vm1, %v7624_v7, %v7623_v51  ;;  %1834 = vmatpush.msra.mxu3 %v1153_v0  ;;  %v7629_v0 = vunpack.i.l.bf16 %v4102_v41  ;;  %v7483_v7 = vunpack.i.l.bf16 %v4805_v1  ;;  %vm2999_vm1 = vcmask 261120  }
 0x11d   :  { %7625 = vst [vmem:[#allocation72_spill] sm:$0xff] %v4920_v20  ;;  %1773 = vmatpush.msra.mxu0 %v4920_v20  ;;  %v1088_v46 = vsel %vm1074_vm3, %v7627_v35, %v7626_v60  ;;  %3674 = vrot.lane.b32.xlu1 %v4832_v13, %s3884_s24  ;;  %v7632_v60 = vunpack.i.h.bf16 %v4519_v2  ;;  %v3833_v2 = vld [vmem:[%s7375_s0] sm:$0xff]  ;;  %v7636_v20 = vunpack.i.l.bf16 %v4773_v47 }
 0x11e   :  { %3679 = vrot.lane.b32.xlu2 %v4906_v3, %s3887_s27  ;;  %v4940_v51 = vsel %vm99_vm0, %v7629_v0, %v7628_v36  ;;  %3669 = vrot.lane.b32.xlu0 %v4906_v3, %s3885_s25  ;;  %v4947_v35 = vpop.permute.xlu2 %3514  ;;  %vm1756_vm0 = vcmask 719872  }
 0x11f   :  { %7630 = vst [vmem:[#allocation73_spill] sm:$0xff] %v4940_v51  ;;  %1774 = vmatpush.msra.mxu0 %v4940_v51  ;;  %1835 = vmatpush.msra.mxu3 %v1088_v46  ;;  %v4953_v41 = vsel %vm554_vm7, %v7632_v60, %v3471_v54  ;;  %v4955_v36 = vpop.permute.xlu1 %3464  ;;  %v7634_v46 = vunpack.i.l.bf16 %v4642_v49  ;;  %v7635_v54 = vunpack.i.l.bf16 %v4580_v39  ;;  %v7637_v51 = vunpack.i.l.bf16 %v4644_v61 }
 0x120   :  { %7631 = vst [vmem:[#allocation74_spill] sm:$0xff] %v4947_v35  ;;  %v4957_v0 = vpop.permute.xlu0 %3459  ;;  %v3486_v35 = vunpack.i.l.bf16 %v4802_v5 }
 0x121   :  { %7633 = vst [vmem:[#allocation75_spill] sm:$0xff] %v4955_v36  ;;  %1865 = vmatpush.msrb.mxu3 %v4953_v41  ;;  %1775 = vmatpush.msra.mxu0 %v3833_v2  ;;  %v1021_v60 = vsel %vm1009_vm4, %v7635_v54, %v7634_v46  ;;  %v956_v43 = vsel %vm944_vm6, %v7637_v51, %v7636_v20  ;;  %v7638_v2 = vunpack.i.l.bf16 %v4955_v36  ;;  %v4987_v46 = vld [vmem:[%s7376_s1 + $0x8] sm:$0xff]  ;;  %v7487_v54 = vunpack.i.l.bf16 %v4722_v6  ;;  %v4994_v20 = vld [vmem:[%s7376_s1] sm:$0xff] }
 0x122   :  { %7639 = vst [vmem:[#allocation76_spill] sm:$0xff] %v4994_v20  ;;  %v3391_v51 = vunpack.i.l.bf16 %v4724_v30  ;;  %3105 = vmatmul.msk.f32.vlgmr.msra.gmra.mxu3 %vm1756_vm0, %v4987_v46  ;;  %1776 = vmatmul.f32.vlgmr.msra.gmra.mxu0 %v4994_v20  ;;  %v7642_v30 = vunpack.i.l.bf16 %v4748_v22 }
 0x123   :  { %1880 = vmatpush.msrb.mxu0 %v1021_v60  ;;  %v1154_v34 = vsel %vm1139_vm15, %v7638_v2, %v3446_v16  ;;  %v7640_v16 = vunpack.i.l.bf16 %v4807_v31  ;;  %1816 = vmatmul.f32.vlgmr.msra.gmra.mxu2 %v4994_v20  ;;  %v7648_v20 = vunpack.i.h.bf16 %v4427_v53 }
 0x124   :  { %1794 = vmatpush.msra.mxu1 %v1154_v34  ;;  %v826_v34 = vsel %vm814_vm11, %v3391_v51, %v7483_v7  ;;  %v761_v45 = vsel %vm749_vm12, %v7642_v30, %v7487_v54  ;;  %v5046_v30 = vld [vmem:[%s7375_s0 + $0x48] sm:$0xff]  ;;  %v7645_v7 = vunpack.i.l.bf16 %v4870_v15 }
 0x125   :  { %1881 = vmatpush.msrb.mxu0 %v956_v43  ;;  %v891_v2 = vsel %vm879_vm10, %v7480_v10, %v7640_v16  ;;  %3689 = vrot.lane.b32.xlu1 %v4906_v3, %s3891_s10  ;;  %7644 = vst [vmem:[#allocation79_spill] sm:$0xff] %v5046_v30  ;;  %v3703_v54 = vpack.i.bf16 %v5046_v30, %v5041_v56 }
 0x126   :  { %3694 = vrot.lane.b32.xlu2 %v4906_v3, %s3888_s28  ;;  %3684 = vrot.lane.b32.xlu0 %v4906_v3, %s3890_s30  ;;  %v5017_v16 = vpop.permute.xlu2 %3529 }
 0x127   :  { %1882 = vmatpush.msrb.mxu0 %v891_v2  ;;  %v5021_v60 = vpop.permute.xlu1 %3479  ;;  %v7647_v2 = vunpack.i.l.bf16 %v4746_v55 }
 0x128   :  { %v5023_v43 = vpop.permute.xlu0 %3474  ;;  %v3481_v10 = vunpack.i.l.bf16 %v5021_v60  ;;  %v7649_v30 = vunpack.i.h.bf16 %v5021_v60 }
 0x129   :  { %1883 = vmatpush.msrb.mxu0 %v826_v34  ;;  %7641 = vst [vmem:[#allocation77_spill] sm:$0xff] %v5023_v43  ;;  %v7495_v34 = vunpack.i.l.bf16 %v5023_v43 }
 0x12a   :  { %v501_v33 = vsel %vm489_vm8, %v7648_v20, %v3481_v10  ;;  %v5070_v56 = vsel %vm489_vm8, %v3481_v10, %v7649_v30  ;;  %v7652_v20 = vunpack.i.l.bf16 %v4957_v0  ;;  %v3317_v30 = vunpack.i.h.bf16 %v4490_v4 }
 0x12b   :  { %1884 = vmatpush.msrb.mxu0 %v761_v45  ;;  %v696_v45 = vsel %vm684_vm13, %v7646_v14, %v7645_v7  ;;  %v1089_v59 = vsel %vm1074_vm3, %v7495_v34, %v7647_v2  ;;  %1866 = vmatpush.msrb.mxu3 %v501_v33  ;;  %v7650_v14 = vunpack.i.l.bf16 %v4580_v39  ;;  %v7651_v7 = vunpack.i.h.bf16 %v4399_v23 }
 0x12c   :  { %1795 = vmatpush.msra.mxu1 %v1089_v59  ;;  %1906 = vmatpush.msrb.mxu2 %v5070_v56  ;;  %v7653_v2 = vunpack.i.l.bf16 %v4696_v25  ;;  %v7654_v59 = vunpack.i.h.bf16 %v4802_v5  ;;  %v7655_v23 = vunpack.i.h.bf16 %v4457_v12  ;;  %v7658_v12 = vunpack.i.l.bf16 %v4490_v4 }
 0x12d   :  { %1885 = vmatpush.msrb.mxu0 %v696_v45  ;;  %v1022_v53 = vsel %vm1009_vm4, %v7651_v7, %v7650_v14  ;;  %3704 = vrot.lane.b32.xlu1 %v3703_v54, %s3896_s15  ;;  %v7697_v39 = vunpack.i.h.bf16 %v5023_v43 }
 0x12e   :  { %v631_v10 = vsel %vm619_vm14, %v7653_v2, %v7652_v20  ;;  %1840 = vmatpush.msrb.mxu1 %v1022_v53  ;;  %v5090_v45 = vsel %vm424_vm9, %v3486_v35, %v7654_v59  ;;  %3709 = vrot.lane.b32.xlu2 %v4906_v3, %s3886_s26  ;;  %v436_v14 = vsel %vm424_vm9, %v7655_v23, %v3486_v35  ;;  %v5099_v7 = vpop.permute.xlu2 %3544  ;;  %v7656_v53 = vunpack.i.l.bf16 %v4644_v61 }
 0x12f   :  { %1886 = vmatpush.msrb.mxu0 %v631_v10  ;;  %3699 = vrot.lane.b32.xlu0 %v4906_v3, %s3892_s11  ;;  %v7657_v20 = vunpack.i.h.bf16 %v4516_v28  ;;  %v5109_v10 = vpop.permute.xlu1 %3494  ;;  %v5122_v28 = vsel %vm359_vm5, %v7658_v12, %v3317_v30  ;;  %v7659_v35 = vunpack.i.l.bf16 %v4699_v26  ;;  %v7660_v23 = vunpack.i.h.bf16 %v4583_v29  ;;  %v7699_v26 = vld [vmem:[#allocation69_spill] sm:$0xff] }
 0x130   :  { %1867 = vmatpush.msrb.mxu3 %v436_v14  ;;  %v5111_v59 = vpop.permute.xlu0 %3489  ;;  %1907 = vmatpush.msrb.mxu2 %v5090_v45  ;;  %v7662_v29 = vunpack.i.l.bf16 %v4748_v22  ;;  %v3467_v12 = vunpack.i.h.bf16 %v4955_v36  ;;  %v3546_v34 = vunpack.i.l.bf16 %v5099_v7  ;;  %v7692_v36 = vld [vmem:[#allocation11_spill] sm:$0xff] }
 0x131   :  { %v957_v2 = vsel %vm944_vm6, %v7657_v20, %v7656_v53  ;;  %1887 = vmatpush.msrb.mxu0 %v4953_v41  ;;  %v892_v53 = vsel %vm879_vm10, %v7660_v23, %v7659_v35  ;;  %v7661_v41 = vunpack.i.h.bf16 %v4646_v42  ;;  %v7666_v35 = vunpack.i.l.bf16 %v4696_v25  ;;  %3104 = vmatmul.msk.f32.vlgmr.msra.gmra.mxu1 %vm1756_vm0, %v4987_v46 }
 0x132   :  { %1841 = vmatpush.msrb.mxu1 %v957_v2  ;;  %1868 = vmatpush.msrb.mxu3 %v4501_v48  ;;  %v7663_v2 = vunpack.i.h.bf16 %v4701_v62  ;;  %v7664_v62 = vunpack.i.l.bf16 %v4775_v50  ;;  %v7667_v23 = vunpack.i.h.bf16 %v4750_v58  ;;  %v3838_v58 = vld [vmem:[%s7375_s0 + $0x78] sm:$0xff] }
 0x133   :  { %1908 = vmatpush.msrb.mxu2 %v5122_v28  ;;  %1888 = vmatpush.msrb.mxu0 %v501_v33  ;;  %v827_v20 = vsel %vm814_vm11, %v7661_v41, %v3391_v51  ;;  %v3837_v41 = vld [vmem:[%s7375_s0 + $0x70] sm:$0xff] }
 0x134   :  { %1842 = vmatpush.msrb.mxu1 %v892_v53  ;;  %1869 = vmatpush.msrb.mxu3 %v4419_v24  ;;  %v762_v33 = vsel %vm749_vm12, %v7663_v2, %v7662_v29  ;;  %v632_v53 = vsel %vm619_vm14, %v7667_v23, %v7666_v35  ;;  %v7668_v29 = vunpack.i.h.bf16 %v4872_v17  ;;  %v7496_v23 = vunpack.i.h.bf16 %v5017_v16 }
 0x135   :  { %1909 = vmatpush.msrb.mxu2 %v4333_v11  ;;  %1889 = vmatpush.msrb.mxu0 %v436_v14 }
 0x136   :  { %1843 = vmatpush.msrb.mxu1 %v827_v20  ;;  %1870 = vmatpush.msrb.mxu3 %v4341_v21  ;;  %v5145_v42 = vpop.permute.xlu2 %3559  ;;  %v5186_v20 = vpack.i.bf16 %v3838_v58, %v3837_v41  ;;  %v1152_v2 = vsel %vm1139_vm15, %v7668_v29, %v3467_v12  ;;  %v7670_v41 = vunpack.i.l.bf16 %v4642_v49  ;;  %v3531_v29 = vunpack.i.l.bf16 %v5017_v16 }
 0x137   :  { %1910 = vmatpush.msrb.mxu2 %v4345_v63  ;;  %1890 = vmatpush.msrb.mxu0 %v4501_v48  ;;  %v5149_v51 = vpop.permute.xlu1 %3509  ;;  %v7665_v48 = vunpack.i.h.bf16 %v4726_v32  ;;  %v7505_v32 = vunpack.i.h.bf16 %v5023_v43 }
 0x138   :  { %1844 = vmatpush.msrb.mxu1 %v762_v33  ;;  %3719 = vrot.lane.b32.xlu1 %v3703_v54, %s3895_s14  ;;  %v5151_v14 = vpop.permute.xlu0 %3504  ;;  %v7696_v61 = vunpack.i.h.bf16 %v5149_v51 }
 0x139   :  { %3724 = vrot.lane.b32.xlu2 %v4906_v3, %s3889_s29  ;;  %3714 = vrot.lane.b32.xlu0 %v4906_v3, %s3893_s12  ;;  %v697_v54 = vsel %vm684_vm13, %v7665_v48, %v7664_v62  ;;  %v7506_v62 = vunpack.i.h.bf16 %v5149_v51  ;;  %v3511_v48 = vunpack.i.l.bf16 %v5149_v51  ;;  %v7700_v51 = vunpack.i.h.bf16 %v4642_v49 }
 0x13a   :  { %1871 = vmatpush.msrb.mxu3 %v4218_v37  ;;  %1911 = vmatpush.msrb.mxu2 %v4222_v40 }
 0x13b   :  { %1845 = vmatpush.msrb.mxu1 %v697_v54  ;;  %1891 = vmatpush.msrb.mxu0 %v4419_v24  ;;  %v3836_v24 = vld [vmem:[%s7375_s0 + $0x18] sm:$0xff]  ;;  %v7498_v54 = vunpack.i.h.bf16 %v4773_v47 }
 0x13c   :  { %1872 = vmatpush.msrb.mxu3 %v4141_v57  ;;  %1912 = vmatpush.msrb.mxu2 %v4106_v44 }
 0x13d   :  { %1846 = vmatpush.msrb.mxu1 %v632_v53  ;;  %1892 = vmatpush.msrb.mxu0 %v4341_v21  ;;  %v7500_v21 = vunpack.i.h.bf16 %v4642_v49  ;;  %v7669_v53 = vunpack.i.h.bf16 %v4746_v55  ;;  %v5240_v55 = vsel %vm554_vm7, %v3511_v48, %v7506_v62 }
 0x13e   :  { %1873 = vmatpush.msrb.mxu3 %v3836_v24 }
 0x13f   :  { %1847 = vmatpush.msrb.mxu1 %v4538_v18  ;;  %1893 = vmatpush.msrb.mxu0 %v4218_v37  ;;  %v5199_v33 = vpop.permute.xlu2 %3574  ;;  %v5205_v18 = vpop.permute.xlu1 %3524  ;;  %v1020_v58 = vsel %vm1009_vm4, %v7670_v41, %v7500_v21  ;;  %v5264_v41 = vsel %vm424_vm9, %v3531_v29, %v7496_v23  ;;  %v7674_v21 = vld [vmem:[#allocation56_spill] sm:$0xff] }
 0x140   :  { %1874 = vmatpush.msrb.mxu3 %v1152_v2  ;;  %3734 = vrot.lane.b32.xlu1 %v4906_v3, %s3884_s24  ;;  %v5207_v37 = vpop.permute.xlu0 %3519  ;;  %v7501_v2 = vunpack.i.h.bf16 %v4805_v1 }
 0x141   :  { %1848 = vmatpush.msrb.mxu1 %v4552_v52  ;;  %1894 = vmatpush.msrb.mxu0 %v4141_v57  ;;  %v7497_v17 = vunpack.i.h.bf16 %v5207_v37  ;;  %v3521_v35 = vunpack.i.l.bf16 %v5207_v37  ;;  %v1087_v52 = vsel %vm1074_vm3, %v7669_v53, %v7505_v32  ;;  %v7499_v57 = vunpack.i.h.bf16 %v4807_v31  ;;  %v7682_v32 = vld [vmem:[#allocation76_spill] sm:$0xff] }
 0x142   :  { %3739 = vrot.lane.b32.xlu2 %v5186_v20, %s3885_s25  ;;  %3729 = vrot.lane.b32.xlu0 %v4906_v3, %s3894_s13  ;;  %v7671_v53 = vunpack.i.l.bf16 %v4773_v47 }
 0x143   :  { %1875 = vmatpush.msrb.mxu3 %v1087_v52  ;;  %1849 = vmatpush.msrb.mxu1 %v4572_v9  ;;  %v5248_v9 = vsel %vm489_vm8, %v3521_v35, %v7497_v17 }
 0x144   :  { %1895 = vmatpush.msrb.mxu0 %v3836_v24  ;;  %v7502_v24 = vunpack.i.h.bf16 %v5099_v7  ;;  %v955_v52 = vsel %vm944_vm6, %v7671_v53, %v7498_v54  ;;  %v7672_v53 = vunpack.i.l.bf16 %v4807_v31  ;;  %3106 = vmatmul.msk.f32.vlgmr.msrb.gmra.mxu3 %vm1756_vm0, %v4987_v46 }
 0x145   :  { %1920 = vmatpush.msra.mxu3 %v1020_v58  ;;  %1850 = vmatpush.msrb.mxu1 %v4592_v19  ;;  %v5269_v58 = vld [vmem:[%s7375_s0 + $0x20] sm:$0xff]  ;;  %v7504_v19 = vunpack.i.h.bf16 %v4722_v6 }
 0x146   :  { %1985 = vmatpush.msra.mxu0 %v5240_v55  ;;  %1913 = vmatpush.msrb.mxu2 %v5269_v58 }
 0x147   :  { %1921 = vmatpush.msra.mxu3 %v955_v52  ;;  %1851 = vmatpush.msrb.mxu1 %v4617_v8  ;;  %v890_v52 = vsel %vm879_vm10, %v7672_v53, %v7499_v57  ;;  %v5282_v23 = vpop.permute.xlu2 %3589  ;;  %v5286_v17 = vpop.permute.xlu1 %3539  ;;  %v7503_v8 = vunpack.i.h.bf16 %v4870_v15  ;;  %v7673_v53 = vunpack.i.l.bf16 %v4805_v1 }
 0x148   :  { %1986 = vmatpush.msra.mxu0 %v5248_v9  ;;  %3749 = vrot.lane.b32.xlu1 %v5186_v20, %s3887_s27  ;;  %v5288_v54 = vpop.permute.xlu0 %3534 }
 0x149   :  { %1922 = vmatpush.msra.mxu3 %v890_v52  ;;  %1852 = vmatpush.msrb.mxu1 %v4638_v38  ;;  %v825_v57 = vsel %vm814_vm11, %v7673_v53, %v7501_v2  ;;  %v5303_v52 = vsel %vm359_vm5, %v3546_v34, %v7502_v24  ;;  %v7507_v38 = vunpack.i.h.bf16 %v4957_v0  ;;  %v7675_v53 = vunpack.i.l.bf16 %v4722_v6 }
 0x14a   :  { %1987 = vmatpush.msra.mxu0 %v5264_v41  ;;  %3754 = vrot.lane.b32.xlu2 %v4832_v13, %s3895_s14  ;;  %v7677_v24 = vunpack.i.l.bf16 %v4870_v15 }
 0x14b   :  { %1923 = vmatpush.msra.mxu3 %v825_v57  ;;  %3744 = vrot.lane.b32.xlu0 %v4832_v13, %s3896_s15  ;;  %v760_v2 = vsel %vm749_vm12, %v7675_v53, %v7504_v19  ;;  %v7676_v57 = vld [vmem:[#allocation57_spill] sm:$0xff]  ;;  %v7679_v53 = vunpack.i.l.bf16 %v4957_v0 }
 0x14c   :  { %1853 = vmatpush.msrb.mxu1 %v7674_v21  ;;  %1988 = vmatpush.msra.mxu0 %v5303_v52  ;;  %v695_v13 = vsel %vm684_vm13, %v7677_v24, %v7503_v8  ;;  %v7678_v21 = vld [vmem:[#allocation41_spill] sm:$0xff]  ;;  %v7680_v24 = vld [vmem:[#allocation62_spill] sm:$0xff] }
 0x14d   :  { %1924 = vmatpush.msra.mxu3 %v760_v2  ;;  %v3840_v2 = vld [vmem:[%s7375_s0 + $0x10] sm:$0xff]  ;;  %v7681_v8 = vunpack.i.h.bf16 %v7680_v24  ;;  %1896 = vmatmul.f32.vlgmr.msrb.gmra.mxu0 %v7682_v32 }
 0x14e   :  { %1854 = vmatpush.msrb.mxu1 %v7676_v57  ;;  %1989 = vmatpush.msra.mxu0 %v7678_v21  ;;  %v630_v57 = vsel %vm619_vm14, %v7679_v53, %v7507_v38  ;;  %v7683_v53 = vld [vmem:[#allocation31_spill] sm:$0xff]  ;;  %v7684_v24 = vld [vmem:[#allocation68_spill] sm:$0xff] }
 0x14f   :  { %1925 = vmatpush.msra.mxu3 %v695_v13  ;;  %v5343_v13 = vsel %vm554_vm7, %v7681_v8, %v3511_v48  ;;  %v5345_v19 = vpop.permute.xlu2 %3604  ;;  %v7685_v48 = vunpack.i.h.bf16 %v5021_v60  ;;  %v7688_v60 = vld [vmem:[#allocation10_spill] sm:$0xff] }
 0x150   :  { %1855 = vmatpush.msrb.mxu1 %v3840_v2  ;;  %v5349_v2 = vpop.permute.xlu1 %3554  ;;  %v5351_v62 = vpop.permute.xlu0 %3549  ;;  %1990 = vmatpush.msra.mxu0 %v7683_v53 }
 0x151   :  { %1926 = vmatpush.msra.mxu3 %v630_v57  ;;  %3764 = vrot.lane.b32.xlu1 %v5186_v20, %s3888_s28  ;;  %v5365_v8 = vsel %vm489_vm8, %v7685_v48, %v3521_v35  ;;  %v7686_v57 = vld [vmem:[#allocation9_spill] sm:$0xff]  ;;  %v5385_v35 = vsel %vm359_vm5, %v3317_v30, %v3546_v34  ;;  %v7689_v48 = vld [vmem:[#allocation42_spill] sm:$0xff]  ;;  %v7690_v34 = vld [vmem:[#allocation32_spill] sm:$0xff] }
 0x152   :  { %1945 = vmatpush.msra.mxu1 %v5343_v13  ;;  %3769 = vrot.lane.b32.xlu2 %v5186_v20, %s3891_s10 }
 0x153   :  { %1927 = vmatpush.msra.mxu3 %v7684_v24  ;;  %3759 = vrot.lane.b32.xlu0 %v5186_v20, %s3890_s30  ;;  %v7687_v24 = vunpack.i.h.bf16 %v4802_v5 }
 0x154   :  { %1946 = vmatpush.msra.mxu1 %v5365_v8  ;;  %1991 = vmatpush.msra.mxu0 %v7686_v57 }
 0x155   :  { %1928 = vmatpush.msra.mxu3 %v5070_v56  ;;  %v5376_v38 = vsel %vm424_vm9, %v7687_v24, %v3531_v29  ;;  %1856 = vmatmul.f32.vlgmr.msrb.gmra.mxu1 %v7682_v32  ;;  %v3897_v24 = vmov 0  }
 0x156   :  { %1947 = vmatpush.msra.mxu1 %v5376_v38  ;;  %1992 = vmatpush.msra.mxu0 %v7688_v60 }
 0x157   :  { %1929 = vmatpush.msra.mxu3 %v5090_v45  ;;  %v5388_v56 = vpop.permute.xlu2 %3619  ;;  %v7691_v45 = vld [vmem:[#allocation19_spill] sm:$0xff]  ;;  %3823 = vset.pattern.permute.xlu1 %v3897_v24  ;;  %v7695_v24 = vunpack.i.l.bf16 %v5282_v23 }
 0x158   :  { %1948 = vmatpush.msra.mxu1 %v5385_v35  ;;  %v5391_v5 = vpop.permute.xlu1 %3569  ;;  %v5393_v29 = vpop.permute.xlu0 %3564 }
 0x159   :  { %1930 = vmatpush.msra.mxu3 %v5122_v28  ;;  %3779 = vrot.lane.b32.xlu1 %v5186_v20, %s3892_s11  ;;  %v3571_v4 = vunpack.i.l.bf16 %v5391_v5  ;;  %v7694_v28 = vunpack.i.h.bf16 %v5391_v5 }
 0x15a   :  { %1949 = vmatpush.msra.mxu1 %v7689_v48  ;;  %3784 = vrot.lane.b32.xlu2 %v5186_v20, %s3889_s29  ;;  %s3901_s29 = smov [#allocation3]  }
 0x15b   :  { %1931 = vmatpush.msra.mxu3 %v4333_v11  ;;  %3774 = vrot.lane.b32.xlu0 %v5186_v20, %s3886_s26  ;;  %v1151_v30 = vsel %vm1139_vm15, %v3467_v12, %v3571_v4  ;;  %v5415_v11 = vld [vmem:[%s7375_s0 + $0x30] sm:$0xff]  ;;  %v3496_v12 = vunpack.i.l.bf16 %v5109_v10  ;;  %v1150_v22 = vsel %vm1139_vm15, %v3571_v4, %v7694_v28 }
 0x15c   :  { %1950 = vmatpush.msra.mxu1 %v7690_v34  ;;  %1914 = vmatpush.msrb.mxu2 %v1151_v30  ;;  %v3491_v30 = vunpack.i.l.bf16 %v5111_v59 }
 0x15d   :  { %1932 = vmatpush.msra.mxu3 %v4345_v63  ;;  %1993 = vmatpush.msra.mxu0 %v5415_v11 }
 0x15e   :  { %1951 = vmatpush.msra.mxu1 %v7691_v45 }
 0x15f   :  { %1933 = vmatpush.msra.mxu3 %v4222_v40  ;;  %v5422_v63 = vpop.permute.xlu2 %3634  ;;  %v5434_v40 = vld [vmem:[%s7375_s0 + $0x28] sm:$0xff] }
 0x160   :  { %1952 = vmatpush.msra.mxu1 %v7692_v36  ;;  %7693 = vst [vmem:[#allocation56_spill] sm:$0xff] %v5422_v63  ;;  %v5426_v25 = vpop.permute.xlu1 %3584  ;;  %v5428_v50 = vpop.permute.xlu0 %3579 }
 0x161   :  { %1934 = vmatpush.msra.mxu3 %v4106_v44  ;;  %3794 = vrot.lane.b32.xlu1 %v5186_v20, %s3884_s24  ;;  %v3581_v44 = vunpack.i.l.bf16 %v5428_v50  ;;  %v7698_v4 = vunpack.i.h.bf16 %v5428_v50  ;;  %s3093_s24 = sshll.u32 %s3901_s29, 4  ;;  %s3094_s24 = int_to_ptr.vmem [resolvable:$true] %s3093_s24 }
 0x162   :  { %1953 = vmatpush.msra.mxu1 %v5434_v40  ;;  %3799 = vrot.lane.b32.xlu2 %v5186_v20, %s3894_s13 }
 0x163   :  { %1935 = vmatpush.msra.mxu3 %v5269_v58  ;;  %3789 = vrot.lane.b32.xlu0 %v5186_v20, %s3893_s12  ;;  %v5458_v58 = vsel %vm554_vm7, %v7696_v61, %v7695_v24  ;;  %v1086_v63 = vsel %vm1074_vm3, %v7697_v39, %v3581_v44  ;;  %v1085_v28 = vsel %vm1074_vm3, %v3581_v44, %v7698_v4  ;;  %v7517_v24 = vunpack.i.h.bf16 %v7699_v26 }
 0x164   :  { %1954 = vmatpush.msra.mxu1 %v1150_v22  ;;  %v3501_v22 = vunpack.i.l.bf16 %v7699_v26  ;;  %1915 = vmatpush.msrb.mxu2 %v1086_v63  ;;  %v1019_v61 = vsel %vm1009_vm4, %v7700_v51, %v3491_v30  ;;  %v7701_v39 = vunpack.i.h.bf16 %v5111_v59  ;;  %v3506_v44 = vunpack.i.l.bf16 %v5151_v14 }
 0x165   :  { %2025 = vmatpush.msrb.mxu3 %v5458_v58  ;;  %v7702_v4 = vunpack.i.h.bf16 %v4773_v47  ;;  %v7518_v63 = vunpack.i.h.bf16 %v5151_v14  ;;  %3107 = vmatmul.msk.f32.vlgmr.msrb.gmra.mxu2 %vm1756_vm0, %v4987_v46 }
 0x166   :  { %1955 = vmatpush.msra.mxu1 %v1085_v28  ;;  %1960 = vmatpush.msra.mxu2 %v1019_v61  ;;  %v1018_v43 = vsel %vm1009_vm4, %v3491_v30, %v7701_v39  ;;  %v7703_v28 = vunpack.i.h.bf16 %v5109_v10  ;;  %v7704_v30 = vld [vmem:[#allocation74_spill] sm:$0xff]  ;;  %v7705_v39 = vunpack.i.h.bf16 %v4807_v31  ;;  %v888_v31 = vsel %vm879_vm10, %v3501_v22, %v7517_v24 }
 0x167   :  { %v954_v49 = vsel %vm944_vm6, %v7702_v4, %v3496_v12  ;;  %1936 = vmatmul.f32.vlgmr.msra.gmra.mxu3 %v7682_v32  ;;  %3108 = vmatmul.msk.f32.vlgmr.msra.gmra.mxu1 %vm1756_vm0, %v4987_v46  ;;  %v3536_v24 = vunpack.i.l.bf16 %v5288_v54 }
 0x168   :  { %2000 = vmatpush.msrb.mxu1 %v1018_v43  ;;  %1961 = vmatpush.msra.mxu2 %v954_v49  ;;  %v953_v51 = vsel %vm944_vm6, %v3496_v12, %v7703_v28  ;;  %v3516_v43 = vunpack.i.l.bf16 %v7704_v30  ;;  %v5493_v47 = vpop.permute.xlu1 %3599  ;;  %v5495_v61 = vpop.permute.xlu0 %3594  ;;  %v889_v4 = vsel %vm879_vm10, %v7705_v39, %v3501_v22  ;;  %v7706_v12 = vunpack.i.h.bf16 %v4805_v1 }
 0x169   :  { %3809 = vrot.lane.b32.xlu1 %v4906_v3, %s3895_s14  ;;  %v5515_v39 = vpop.permute.xlu2 %3649  ;;  %v3606_v28 = vunpack.i.l.bf16 %v5345_v19  ;;  %v823_v22 = vsel %vm814_vm11, %v3506_v44, %v7518_v63  ;;  %v7708_v1 = vunpack.i.h.bf16 %v5207_v37  ;;  %v7710_v63 = vunpack.i.h.bf16 %v7704_v30 }
 0x16a   :  { %2001 = vmatpush.msrb.mxu1 %v953_v51  ;;  %1962 = vmatpush.msra.mxu2 %v889_v4  ;;  %v3526_v51 = vunpack.i.l.bf16 %v5205_v18  ;;  %v824_v49 = vsel %vm814_vm11, %v7706_v12, %v3506_v44  ;;  %v3527_v4 = vunpack.i.h.bf16 %v5205_v18  ;;  %v3537_v44 = vunpack.i.h.bf16 %v5288_v54 }
 0x16b   :  { %3814 = vrot.lane.b32.xlu2 %v5186_v20, %s3896_s15  ;;  %3804 = vrot.lane.b32.xlu0 %v4906_v3, %s3896_s15  ;;  %v7709_v3 = vunpack.i.h.bf16 %v4722_v6  ;;  %v758_v37 = vsel %vm749_vm12, %v3516_v43, %v7710_v63  ;;  %v7713_v6 = vunpack.i.h.bf16 %v4870_v15  ;;  %v1750_v63 = vld [vmem:[%s7377_s2] sm:$0xff] }
 0x16c   :  { %2002 = vmatpush.msrb.mxu1 %v888_v31  ;;  %1963 = vmatpush.msra.mxu2 %v824_v49  ;;  %v7707_v31 = vunpack.i.l.bf16 %v5495_v61 }
 0x16d   :  { %v759_v49 = vsel %vm749_vm12, %v7709_v3, %v3516_v43  ;;  %v694_v3 = vsel %vm684_vm13, %v7713_v6, %v3526_v51  ;;  %v7714_v43 = vunpack.i.h.bf16 %v5099_v7  ;;  %v628_v7 = vsel %vm619_vm14, %v3536_v24, %v3537_v44  ;;  %v7716_v6 = vld [vmem:[#allocation43_spill] sm:$0xff] }
 0x16e   :  { %v5535_v12 = vsel %vm489_vm8, %v7708_v1, %v7707_v31  ;;  %2003 = vmatpush.msrb.mxu1 %v823_v22  ;;  %1964 = vmatpush.msra.mxu2 %v759_v49  ;;  %v7711_v31 = vunpack.i.l.bf16 %v5493_v47  ;;  %v7712_v1 = vunpack.i.h.bf16 %v5017_v16  ;;  %v693_v16 = vsel %vm684_vm13, %v3526_v51, %v3527_v4 }
 0x16f   :  { %2026 = vmatpush.msrb.mxu3 %v5535_v12  ;;  %v5574_v15 = vsel %vm359_vm5, %v7714_v43, %v3606_v28 }
 0x170   :  { %v5554_v22 = vsel %vm424_vm9, %v7712_v1, %v7711_v31  ;;  %2004 = vmatpush.msrb.mxu1 %v758_v37  ;;  %1965 = vmatpush.msra.mxu2 %v694_v3  ;;  %v5576_v49 = vpop.permute.xlu1 %3614  ;;  %v7715_v37 = vunpack.i.h.bf16 %v4957_v0  ;;  %v5584_v1 = vpop.permute.xlu0 %3609  ;;  %v7717_v0 = vunpack.i.h.bf16 %v5391_v5 }
 0x171   :  { %2027 = vmatpush.msrb.mxu3 %v5554_v22  ;;  %v3616_v51 = vunpack.i.l.bf16 %v5576_v49  ;;  %1753 = vperm.xlu1 %3823, %v1750_v63   ;;  %v7719_v63 = vld [vmem:[#allocation21_spill] sm:$0xff] }
 0x172   :  { %2005 = vmatpush.msrb.mxu1 %v693_v16  ;;  %v629_v31 = vsel %vm619_vm14, %v7715_v37, %v3536_v24  ;;  %v5598_v16 = vpop.permute.xlu2 %3664  ;;  %v7718_v24 = vld [vmem:[#allocation33_spill] sm:$0xff]  ;;  %v7721_v37 = vunpack.i.h.bf16 %v5428_v50 }
 0x173   :  { %2028 = vmatpush.msrb.mxu3 %v5574_v15  ;;  %1966 = vmatpush.msra.mxu2 %v629_v31  ;;  %v1149_v3 = vsel %vm1139_vm15, %v7717_v0, %v3616_v51  ;;  %v7722_v0 = vunpack.i.h.bf16 %v5111_v59 }
 0x174   :  { %2006 = vmatpush.msrb.mxu1 %v628_v7  ;;  %3819 = vrot.lane.b32.xlu0 %v5186_v20, %s3895_s14  ;;  %v3617_v20 = vunpack.i.h.bf16 %v5576_v49  ;;  %v7742_v49 = vld [vmem:[#allocation24_spill] sm:$0xff] }
 0x175   :  { %2029 = vmatpush.msrb.mxu3 %v7716_v6  ;;  %1967 = vmatpush.msra.mxu2 %v5343_v13 }
 0x176   :  { %2007 = vmatpush.msrb.mxu1 %v5240_v55  ;;  %1994 = vmatpush.msra.mxu0 %v1149_v3  ;;  %v7720_v55 = vld [vmem:[#allocation12_spill] sm:$0xff]  ;;  %v1148_v31 = vsel %vm1139_vm15, %v3616_v51, %v3617_v20  ;;  %v3561_v3 = vunpack.i.l.bf16 %v5145_v42 }
 0x177   :  { %2030 = vmatpush.msrb.mxu3 %v7718_v24  ;;  %1968 = vmatpush.msra.mxu2 %v5365_v8  ;;  %v3541_v8 = vunpack.i.l.bf16 %v5286_v17 }
 0x178   :  { %2008 = vmatpush.msrb.mxu1 %v5248_v9  ;;  %v5608_v13 = vpop.permute.xlu1 %3629  ;;  %v5610_v5 = vpop.permute.xlu0 %3624 }
 0x179   :  { %2031 = vmatpush.msrb.mxu3 %v7719_v63  ;;  %1969 = vmatpush.msra.mxu2 %v5376_v38  ;;  %v3627_v9 = vunpack.i.h.bf16 %v5610_v5  ;;  %v3626_v43 = vunpack.i.l.bf16 %v5610_v5  ;;  %v3542_v38 = vunpack.i.h.bf16 %v5286_v17  ;;  %v1017_v51 = vsel %vm1009_vm4, %v7722_v0, %v3541_v8 }
 0x17a   :  { %2009 = vmatpush.msrb.mxu1 %v5264_v41  ;;  %v5622_v41 = vld [vmem:[%s7375_s0 + $0x38] sm:$0xff]  ;;  %v5642_v50 = vpop.permute.xlu2 %3679 }
 0x17b   :  { %2032 = vmatpush.msrb.mxu3 %v7720_v55  ;;  %1970 = vmatpush.msra.mxu2 %v5385_v35  ;;  %v3551_v35 = vunpack.i.l.bf16 %v5351_v62  ;;  %v1083_v7 = vsel %vm1074_vm3, %v3626_v43, %v3627_v9  ;;  %v1016_v59 = vsel %vm1009_vm4, %v3541_v8, %v3542_v38  ;;  %v7724_v8 = vunpack.i.h.bf16 %v7699_v26 }
 0x17c   :  { %2010 = vmatpush.msrb.mxu1 %v5303_v52  ;;  %v1084_v52 = vsel %vm1074_vm3, %v7721_v37, %v3626_v43  ;;  %v3557_v43 = vunpack.i.h.bf16 %v5349_v2  ;;  %v7723_v37 = vunpack.i.h.bf16 %v5109_v10  ;;  %v3566_v10 = vunpack.i.l.bf16 %v5393_v29 }
 0x17d   :  { %2033 = vmatpush.msrb.mxu3 %v5622_v41  ;;  %1971 = vmatpush.msra.mxu2 %v7689_v48  ;;  %v3556_v48 = vunpack.i.l.bf16 %v5349_v2  ;;  %v3576_v26 = vunpack.i.l.bf16 %v5199_v33 }
 0x17e   :  { %2011 = vmatpush.msrb.mxu1 %v7678_v21  ;;  %1995 = vmatpush.msra.mxu0 %v1084_v52  ;;  %v3552_v21 = vunpack.i.h.bf16 %v5351_v62  ;;  %v3562_v52 = vunpack.i.h.bf16 %v5145_v42 }
 0x17f   :  { %2034 = vmatpush.msrb.mxu3 %v1148_v31  ;;  %1972 = vmatpush.msra.mxu2 %v7690_v34  ;;  %v3592_v31 = vunpack.i.h.bf16 %v5282_v23 }
 0x180   :  { %2012 = vmatpush.msrb.mxu1 %v7683_v53  ;;  %2040 = vmatpush.msrb.mxu0 %v1017_v51  ;;  %v952_v53 = vsel %vm944_vm6, %v7723_v37, %v3551_v35  ;;  %v5662_v34 = vpop.permute.xlu1 %3644  ;;  %v951_v0 = vsel %vm944_vm6, %v3551_v35, %v3552_v21  ;;  %v3651_v51 = vunpack.i.l.bf16 %v5515_v39  ;;  %v3597_v37 = vunpack.i.h.bf16 %v5495_v61 }
 0x181   :  { %2035 = vmatpush.msrb.mxu3 %v1083_v7  ;;  %1973 = vmatpush.msra.mxu2 %v7691_v45  ;;  %v5666_v45 = vpop.permute.xlu0 %3639  ;;  %v887_v7 = vsel %vm879_vm10, %v7724_v8, %v3556_v48  ;;  %v886_v35 = vsel %vm879_vm10, %v3556_v48, %v3557_v43  ;;  %v7726_v8 = vunpack.i.l.bf16 %v5282_v23  ;;  %v7727_v48 = vunpack.i.h.bf16 %v7704_v30 }
 0x182   :  { %2013 = vmatpush.msrb.mxu1 %v7686_v57  ;;  %2041 = vmatpush.msrb.mxu0 %v952_v53  ;;  %v3641_v57 = vunpack.i.l.bf16 %v5666_v45  ;;  %v7526_v53 = vunpack.i.h.bf16 %v5393_v29  ;;  %v821_v23 = vsel %vm814_vm11, %v3561_v3, %v3562_v52  ;;  %v5725_v30 = vsel %vm489_vm8, %v3597_v37, %v3651_v51 }
 0x183   :  { %2080 = vmatpush.msra.mxu3 %v1016_v59  ;;  %1974 = vmatpush.msra.mxu2 %v7692_v36  ;;  %v7725_v36 = vunpack.i.h.bf16 %v5151_v14  ;;  %v3602_v59 = vunpack.i.h.bf16 %v5493_v47  ;;  %v3646_v62 = vunpack.i.l.bf16 %v5662_v34 }
 0x184   :  { %2014 = vmatpush.msrb.mxu1 %v7688_v60  ;;  %2042 = vmatpush.msrb.mxu0 %v887_v7  ;;  %v5698_v14 = vsel %vm554_vm7, %v3592_v31, %v3641_v57  ;;  %v3586_v7 = vunpack.i.l.bf16 %v5426_v25 }
 0x185   :  { %2081 = vmatpush.msra.mxu3 %v951_v0  ;;  %v822_v60 = vsel %vm814_vm11, %v7725_v36, %v3561_v3  ;;  %1975 = vmatpush.msra.mxu2 %v5434_v40  ;;  %v7524_v40 = vunpack.i.h.bf16 %v5199_v33  ;;  %v757_v0 = vsel %vm749_vm12, %v7727_v48, %v3566_v10  ;;  %v3607_v36 = vunpack.i.h.bf16 %v5345_v19  ;;  %v7730_v19 = vld [vmem:[#allocation44_spill] sm:$0xff] }
 0x186   :  { %2015 = vmatpush.msrb.mxu1 %v5415_v11  ;;  %2043 = vmatpush.msrb.mxu0 %v822_v60  ;;  %v561_v11 = vsel %vm554_vm7, %v7726_v8, %v3592_v31  ;;  %v7728_v31 = vunpack.i.l.bf16 %v5495_v61  ;;  %v5728_v8 = vpop.permute.xlu2 %3694  ;;  %v692_v61 = vsel %vm684_vm13, %v3527_v4, %v3576_v26  ;;  %v756_v3 = vsel %vm749_vm12, %v3566_v10, %v7526_v53 }
 0x187   :  { %2082 = vmatpush.msra.mxu3 %v886_v35  ;;  %2065 = vmatpush.msrb.mxu2 %v561_v11  ;;  %v7523_v35 = vunpack.i.h.bf16 %v5426_v25  ;;  %v627_v4 = vsel %vm619_vm14, %v3537_v44, %v3586_v7  ;;  %v691_v10 = vsel %vm684_vm13, %v3576_v26, %v7524_v40 }
 0x188   :  { %2105 = vmatpush.msra.mxu1 %v5698_v14  ;;  %2044 = vmatpush.msrb.mxu0 %v757_v0  ;;  %v496_v60 = vsel %vm489_vm8, %v7728_v31, %v3597_v37  ;;  %v5739_v48 = vpop.permute.xlu1 %3659  ;;  %v7732_v31 = vld [vmem:[#allocation22_spill] sm:$0xff] }
 0x189   :  { %2083 = vmatpush.msra.mxu3 %v821_v23  ;;  %2066 = vmatpush.msrb.mxu2 %v496_v60  ;;  %v3661_v37 = vunpack.i.l.bf16 %v5739_v48  ;;  %v5742_v0 = vpop.permute.xlu0 %3654  ;;  %v7729_v23 = vunpack.i.l.bf16 %v5493_v47  ;;  %v366_v47 = vsel %vm359_vm5, %v3606_v28, %v3607_v36  ;;  %v626_v44 = vsel %vm619_vm14, %v3586_v7, %v7523_v35  ;;  %v7731_v28 = vld [vmem:[#allocation20_spill] sm:$0xff] }
 0x18a   :  { %2106 = vmatpush.msra.mxu1 %v5725_v30  ;;  %2045 = vmatpush.msrb.mxu0 %v692_v61  ;;  %v7737_v61 = vld [vmem:[#allocation23_spill] sm:$0xff]  ;;  %v3631_v35 = vunpack.i.l.bf16 %v5608_v13 }
 0x18b   :  { %2084 = vmatpush.msra.mxu3 %v756_v3  ;;  %v431_v18 = vsel %vm424_vm9, %v7729_v23, %v3602_v59  ;;  %3109 = vmatmul.msk.f32.vlgmr.msra.gmra.mxu0 %vm1756_vm0, %v4987_v46  ;;  %v5766_v54 = vsel %vm424_vm9, %v3602_v59, %v3661_v37  ;;  %v7521_v3 = vunpack.i.l.bf16 %v5728_v8 }
 0x18c   :  { %2067 = vmatpush.msrb.mxu2 %v431_v18  ;;  %2046 = vmatpush.msrb.mxu0 %v627_v4 }
 0x18d   :  { %2085 = vmatpush.msra.mxu3 %v691_v10  ;;  %2107 = vmatpush.msra.mxu1 %v5766_v54 }
 0x18e   :  { %2068 = vmatpush.msrb.mxu2 %v366_v47  ;;  %2047 = vmatpush.msrb.mxu0 %v5458_v58  ;;  %v5786_v7 = vpop.permute.xlu2 %3709 }
 0x18f   :  { %2086 = vmatpush.msra.mxu3 %v626_v44  ;;  %2016 = vmatmul.f32.vlgmr.msrb.gmra.mxu1 %v7682_v32  ;;  %v7520_v4 = vunpack.i.l.bf16 %v5786_v7 }
 0x190   :  { %2069 = vmatpush.msrb.mxu2 %v7730_v19  ;;  %3110 = vmatmul.msk.f32.vlgmr.msrb.gmra.mxu3 %vm1756_vm0, %v4987_v46  ;;  %v5779_v26 = vpop.permute.xlu1 %3674 }
 0x191   :  { %2048 = vmatpush.msrb.mxu0 %v5535_v12  ;;  %2087 = vmatpush.msra.mxu3 %v561_v11  ;;  %v3676_v58 = vunpack.i.l.bf16 %v5779_v26  ;;  %v5784_v59 = vpop.permute.xlu0 %3669  ;;  %v7733_v12 = vld [vmem:[#allocation6_spill] sm:$0xff] }
 0x192   :  { %2070 = vmatpush.msrb.mxu2 %v7731_v28  ;;  %v7735_v11 = vld [vmem:[#allocation78_spill] sm:$0xff] }
 0x193   :  { %2049 = vmatpush.msrb.mxu0 %v5554_v22  ;;  %2088 = vmatpush.msra.mxu3 %v496_v60  ;;  %v5792_v46 = vsel %vm359_vm5, %v3607_v36, %v3676_v58  ;;  %v7734_v22 = vld [vmem:[#allocation45_spill] sm:$0xff]  ;;  %v7736_v60 = vld [vmem:[#allocation36_spill] sm:$0xff]  ;;  %v3642_v36 = vunpack.i.h.bf16 %v5666_v45 }
 0x194   :  { %2071 = vmatpush.msrb.mxu2 %v7732_v31  ;;  %2108 = vmatpush.msra.mxu1 %v5792_v46 }
 0x195   :  { %2050 = vmatpush.msrb.mxu0 %v5574_v15  ;;  %2089 = vmatpush.msra.mxu3 %v431_v18  ;;  %v7738_v18 = vld [vmem:[#allocation7_spill] sm:$0xff]  ;;  %v5826_v10 = vsel %vm554_vm7, %v3641_v57, %v3642_v36  ;;  %v5843_v45 = vsel %vm554_vm7, %v3642_v36, %v7521_v3  ;;  %v3612_v36 = vunpack.i.h.bf16 %v5584_v1 }
 0x196   :  { %2072 = vmatpush.msrb.mxu2 %v7733_v12  ;;  %2109 = vmatpush.msra.mxu1 %v7734_v22  ;;  %v5815_v23 = vpop.permute.xlu2 %3724 }
 0x197   :  { %2051 = vmatpush.msrb.mxu0 %v7716_v6  ;;  %2090 = vmatpush.msra.mxu3 %v366_v47  ;;  %v3677_v47 = vunpack.i.h.bf16 %v5779_v26  ;;  %v7519_v44 = vunpack.i.l.bf16 %v5815_v23  ;;  %v7746_v26 = vunpack.i.h.bf16 %v5199_v33 }
 0x198   :  { %2073 = vmatpush.msrb.mxu2 %v7735_v11  ;;  %v5801_v15 = vpop.permute.xlu1 %3689  ;;  %2110 = vmatpush.msra.mxu1 %v7736_v60 }
 0x199   :  { %2052 = vmatpush.msrb.mxu0 %v7718_v24  ;;  %2091 = vmatpush.msra.mxu3 %v7730_v19  ;;  %v5808_v6 = vpop.permute.xlu0 %3684  ;;  %v3652_v24 = vunpack.i.h.bf16 %v5515_v39 }
 0x19a   :  { %1976 = vmatmul.f32.vlgmr.msra.gmra.mxu2 %v7682_v32  ;;  %2111 = vmatpush.msra.mxu1 %v7737_v61 }
 0x19b   :  { %2053 = vmatpush.msrb.mxu0 %v7719_v63  ;;  %2092 = vmatpush.msra.mxu3 %v7731_v28  ;;  %v3662_v63 = vunpack.i.h.bf16 %v5739_v48  ;;  %v5873_v48 = vsel %vm359_vm5, %v3676_v58, %v3677_v47 }
 0x19c   :  { %2112 = vmatpush.msra.mxu1 %v7738_v18 }
 0x19d   :  { %2054 = vmatpush.msrb.mxu0 %v7720_v55  ;;  %2093 = vmatpush.msra.mxu3 %v7732_v31  ;;  %v7739_v55 = vld [vmem:[#allocation79_spill] sm:$0xff]  ;;  %v5854_v39 = vsel %vm424_vm9, %v3661_v37, %v3662_v63 }
 0x19e   :  { %2113 = vmatpush.msra.mxu1 %v7739_v55  ;;  %v5925_v53 = vpop.permute.xlu2 %3739 }
 0x19f   :  { %2055 = vmatpush.msrb.mxu0 %v5622_v41  ;;  %2094 = vmatpush.msra.mxu3 %v7733_v12  ;;  %v5837_v41 = vsel %vm489_vm8, %v3651_v51, %v3652_v24  ;;  %v5860_v51 = vsel %vm489_vm8, %v3652_v24, %v7520_v4  ;;  %v7740_v12 = vld [vmem:[#allocation35_spill] sm:$0xff]  ;;  %v3611_v24 = vunpack.i.l.bf16 %v5584_v1 }
 0x1a0   :  { %2056 = vmatmul.f32.vlgmr.msrb.gmra.mxu0 %v7682_v32  ;;  %v5848_v57 = vpop.permute.xlu1 %3704 }
 0x1a1   :  { %2145 = vmatpush.msra.mxu0 %v5826_v10  ;;  %2095 = vmatpush.msra.mxu3 %v7735_v11  ;;  %v7522_v19 = vunpack.i.h.bf16 %v5848_v57  ;;  %v3706_v28 = vunpack.i.l.bf16 %v5848_v57  ;;  %v5865_v31 = vpop.permute.xlu0 %3699  ;;  %v7741_v11 = vld [vmem:[#allocation37_spill] sm:$0xff]  ;;  %v1015_v40 = vsel %vm1009_vm4, %v3542_v38, %v3611_v24  ;;  %v1014_v5 = vsel %vm1009_vm4, %v3611_v24, %v3612_v36 }
 0x1a2   :  { %2096 = vmatmul.f32.vlgmr.msra.gmra.mxu3 %v7682_v32  ;;  %v5879_v32 = vsel %vm424_vm9, %v3662_v63, %v7519_v44 }
 0x1a3   :  { %2146 = vmatpush.msra.mxu0 %v5837_v41  ;;  %2185 = vmatpush.msrb.mxu3 %v5843_v45  ;;  %v1147_v37 = vsel %vm1139_vm15, %v3617_v20, %v3706_v28  ;;  %v1146_v58 = vsel %vm1139_vm15, %v3706_v28, %v7522_v19  ;;  %v3622_v28 = vunpack.i.h.bf16 %v5388_v56  ;;  %v3632_v19 = vunpack.i.h.bf16 %v5608_v13 }
 0x1a4   :  { %2074 = vmatpush.msrb.mxu2 %v1147_v37  ;;  %2114 = vmatpush.msra.mxu1 %v1146_v58  ;;  %v3621_v37 = vunpack.i.l.bf16 %v5388_v56  ;;  %v7743_v58 = vld [vmem:[#allocation8_spill] sm:$0xff] }
 0x1a5   :  { %2147 = vmatpush.msra.mxu0 %v5854_v39  ;;  %2186 = vmatpush.msrb.mxu3 %v5860_v51  ;;  %v884_v24 = vsel %vm879_vm10, %v3631_v35, %v3632_v19 }
 0x1a6   :  { %v950_v17 = vsel %vm944_vm6, %v3552_v21, %v3621_v37  ;;  %v949_v38 = vsel %vm944_vm6, %v3621_v37, %v3622_v28  ;;  %v3647_v37 = vunpack.i.h.bf16 %v5662_v34  ;;  %v7754_v34 = vunpack.i.h.bf16 %v5742_v0 }
 0x1a7   :  { %2148 = vmatpush.msra.mxu0 %v5873_v48  ;;  %2187 = vmatpush.msrb.mxu3 %v5879_v32 }
 0x1a9   :  { %2149 = vmatpush.msra.mxu0 %v7740_v12 }
 0x1aa   :  { %v5895_v63 = vpop.permute.xlu1 %3719 }
 0x1ab   :  { %2150 = vmatpush.msra.mxu0 %v7741_v11  ;;  %v7525_v20 = vunpack.i.h.bf16 %v5895_v63  ;;  %v3721_v55 = vunpack.i.l.bf16 %v5895_v63  ;;  %v5900_v44 = vpop.permute.xlu0 %3714 }
 0x1ad   :  { %2151 = vmatpush.msra.mxu0 %v7742_v49  ;;  %v1082_v4 = vsel %vm1074_vm3, %v3627_v9, %v3721_v55  ;;  %v1081_v3 = vsel %vm1074_vm3, %v3721_v55, %v7525_v20  ;;  %v7744_v9 = vld [vmem:[#allocation56_spill] sm:$0xff] }
 0x1ae   :  { %2075 = vmatpush.msrb.mxu2 %v1082_v4  ;;  %2115 = vmatpush.msra.mxu1 %v1081_v3  ;;  %v3637_v55 = vunpack.i.h.bf16 %v7744_v9  ;;  %v3636_v20 = vunpack.i.l.bf16 %v7744_v9  ;;  %v5944_v3 = vld [vmem:[%s7376_s1 + $0x8] sm:$0xff]  ;;  %v885_v4 = vsel %vm879_vm10, %v3557_v43, %v3631_v35 }
 0x1af   :  { %2152 = vmatpush.msra.mxu0 %v7743_v58  ;;  %3111 = vmatmul.msk.f32.vlgmr.msrb.gmra.mxu2 %vm1756_vm0, %v5944_v3 }
 0x1b0   :  { %2120 = vmatpush.msra.mxu2 %v1015_v40  ;;  %2160 = vmatpush.msrb.mxu1 %v1014_v5  ;;  %v5938_v40 = vld [vmem:[%s7375_s0 + $0x50] sm:$0xff]  ;;  %v820_v43 = vsel %vm814_vm11, %v3562_v52, %v3636_v20  ;;  %v819_v35 = vsel %vm814_vm11, %v3636_v20, %v3637_v55  ;;  %v7745_v52 = vunpack.i.h.bf16 %v5393_v29  ;;  %v7528_v20 = vunpack.i.h.bf16 %v5598_v16  ;;  %v7747_v29 = vld [vmem:[#allocation46_spill] sm:$0xff] }
 0x1b1   :  { %2153 = vmatpush.msra.mxu0 %v5938_v40  ;;  %3112 = vmatmul.msk.f32.vlgmr.msra.gmra.mxu1 %vm1756_vm0, %v5944_v3 }
 0x1b2   :  { %2121 = vmatpush.msra.mxu2 %v950_v17  ;;  %2161 = vmatpush.msrb.mxu1 %v949_v38  ;;  %v5949_v21 = vpop.permute.xlu1 %3734  ;;  %v3656_v17 = vunpack.i.l.bf16 %v5742_v0  ;;  %v7529_v38 = vunpack.i.h.bf16 %v5742_v0  ;;  %v7755_v0 = vunpack.i.h.bf16 %v5598_v16 }
 0x1b3   :  { %v7527_v5 = vunpack.i.l.bf16 %v5949_v21 }
 0x1b4   :  { %2122 = vmatpush.msra.mxu2 %v885_v4  ;;  %2162 = vmatpush.msrb.mxu1 %v884_v24  ;;  %v5964_v2 = vpop.permute.xlu0 %3729  ;;  %v3666_v4 = vunpack.i.l.bf16 %v5598_v16  ;;  %v755_v24 = vsel %vm749_vm12, %v7745_v52, %v3646_v62  ;;  %v6003_v52 = vpop.permute.xlu2 %3754  ;;  %v3727_v16 = vunpack.i.h.bf16 %v5815_v23 }
 0x1b5   :  { %v5982_v42 = vsel %vm359_vm5, %v3677_v47, %v7527_v5  ;;  %v690_v47 = vsel %vm684_vm13, %v7746_v26, %v3656_v17  ;;  %v3671_v5 = vunpack.i.l.bf16 %v5784_v59 }
 0x1b6   :  { %2123 = vmatpush.msra.mxu2 %v820_v43  ;;  %2163 = vmatpush.msrb.mxu1 %v819_v35  ;;  %v754_v43 = vsel %vm749_vm12, %v3646_v62, %v3647_v37  ;;  %v689_v35 = vsel %vm684_vm13, %v3656_v17, %v7529_v38  ;;  %v7748_v62 = vunpack.i.h.bf16 %v5426_v25  ;;  %v624_v26 = vsel %vm619_vm14, %v3666_v4, %v7528_v20 }
 0x1b7   :  { %2188 = vmatpush.msrb.mxu3 %v5982_v42  ;;  %v3757_v25 = vunpack.i.h.bf16 %v6003_v52  ;;  %v3681_v20 = vunpack.i.l.bf16 %v5642_v50  ;;  %v3672_v38 = vunpack.i.h.bf16 %v5784_v59  ;;  %v7768_v59 = vld [vmem:[#allocation51_spill] sm:$0xff] }
 0x1b8   :  { %2124 = vmatpush.msra.mxu2 %v755_v24  ;;  %2164 = vmatpush.msrb.mxu1 %v754_v43  ;;  %v625_v33 = vsel %vm619_vm14, %v7748_v62, %v3666_v4  ;;  %v7749_v43 = vld [vmem:[#allocation38_spill] sm:$0xff] }
 0x1b9   :  { %2189 = vmatpush.msrb.mxu3 %v7747_v29  ;;  %v7751_v4 = vld [vmem:[#allocation14_spill] sm:$0xff]  ;;  %v948_v1 = vsel %vm944_vm6, %v3622_v28, %v3681_v20  ;;  %v3716_v28 = vunpack.i.l.bf16 %v5900_v44 }
 0x1ba   :  { %2125 = vmatpush.msra.mxu2 %v690_v47  ;;  %2165 = vmatpush.msrb.mxu1 %v689_v35  ;;  %v6005_v24 = vpop.permute.xlu1 %3749  ;;  %v7750_v47 = vld [vmem:[#allocation25_spill] sm:$0xff]  ;;  %v3756_v35 = vunpack.i.l.bf16 %v6003_v52 }
 0x1bb   :  { %2190 = vmatpush.msrb.mxu3 %v7749_v43 }
 0x1bc   :  { %2126 = vmatpush.msra.mxu2 %v625_v33  ;;  %2166 = vmatpush.msrb.mxu1 %v624_v26  ;;  %v7752_v26 = vunpack.i.h.bf16 %v5848_v57 }
 0x1bd   :  { %v6016_v17 = vpop.permute.xlu0 %3744  ;;  %2191 = vmatpush.msrb.mxu3 %v7750_v47 }
 0x1be   :  { %2127 = vmatpush.msra.mxu2 %v5698_v14  ;;  %v3747_v62 = vunpack.i.h.bf16 %v6016_v17  ;;  %v3746_v33 = vunpack.i.l.bf16 %v6016_v17  ;;  %2167 = vmatpush.msrb.mxu1 %v5826_v10  ;;  %v6037_v10 = vld [vmem:[%s7375_s0 + $0x58] sm:$0xff] }
 0x1bf   :  { %2192 = vmatpush.msrb.mxu3 %v7751_v4 }
 0x1c0   :  { %2128 = vmatpush.msra.mxu2 %v5725_v30  ;;  %v1145_v14 = vsel %vm1139_vm15, %v7752_v26, %v3746_v33  ;;  %2168 = vmatpush.msrb.mxu1 %v5837_v41  ;;  %v7753_v30 = vunpack.i.h.bf16 %v5895_v63  ;;  %v1144_v41 = vsel %vm1139_vm15, %v3746_v33, %v3747_v62  ;;  %v1079_v26 = vsel %vm1074_vm3, %v3756_v35, %v3757_v25 }
 0x1c1   :  { %2154 = vmatpush.msra.mxu0 %v1145_v14  ;;  %2193 = vmatpush.msrb.mxu3 %v6037_v10  ;;  %v3686_v14 = vunpack.i.l.bf16 %v5808_v6 }
 0x1c2   :  { %v1080_v57 = vsel %vm1074_vm3, %v7753_v30, %v3756_v35  ;;  %2129 = vmatpush.msra.mxu2 %v5766_v54  ;;  %2169 = vmatpush.msrb.mxu1 %v5854_v39  ;;  %v1013_v54 = vsel %vm1009_vm4, %v3612_v36, %v3671_v5  ;;  %v3682_v39 = vunpack.i.h.bf16 %v5642_v50  ;;  %v6063_v30 = vpop.permute.xlu2 %3769  ;;  %v3691_v35 = vunpack.i.l.bf16 %v5801_v15 }
 0x1c3   :  { %2155 = vmatpush.msra.mxu0 %v1080_v57  ;;  %v6060_v63 = vpop.permute.xlu1 %3764  ;;  %2194 = vmatpush.msrb.mxu3 %v1144_v41  ;;  %v3687_v36 = vunpack.i.h.bf16 %v5808_v6  ;;  %v3701_v57 = vunpack.i.l.bf16 %v5865_v31  ;;  %v883_v56 = vsel %vm879_vm10, %v3632_v19, %v3686_v14  ;;  %v3702_v19 = vunpack.i.h.bf16 %v5865_v31 }
 0x1c4   :  { %2130 = vmatpush.msra.mxu2 %v5792_v46  ;;  %2170 = vmatpush.msrb.mxu1 %v5873_v48  ;;  %v1012_v46 = vsel %vm1009_vm4, %v3671_v5, %v3672_v38  ;;  %v3692_v48 = vunpack.i.h.bf16 %v5801_v15  ;;  %v818_v13 = vsel %vm814_vm11, %v3637_v55, %v3691_v35 }
 0x1c5   :  { %2200 = vmatpush.msrb.mxu0 %v1013_v54  ;;  %v6067_v33 = vpop.permute.xlu0 %3759  ;;  %2195 = vmatpush.msrb.mxu3 %v1079_v26  ;;  %v3847_v26 = vld [vmem:[%s7375_s0 + $0x48] sm:$0xff]  ;;  %v752_v54 = vsel %vm749_vm12, %v3701_v57, %v3702_v19 }
 0x1c6   :  { %2131 = vmatpush.msra.mxu2 %v7734_v22  ;;  %2171 = vmatpush.msrb.mxu1 %v7740_v12  ;;  %v947_v22 = vsel %vm944_vm6, %v3681_v20, %v3682_v39  ;;  %v3731_v12 = vunpack.i.l.bf16 %v5964_v2  ;;  %v817_v55 = vsel %vm814_vm11, %v3691_v35, %v3692_v48  ;;  %v3717_v20 = vunpack.i.h.bf16 %v5900_v44 }
 0x1c7   :  { %2201 = vmatpush.msrb.mxu0 %v948_v1  ;;  %2240 = vmatpush.msra.mxu3 %v1012_v46  ;;  %v3732_v35 = vunpack.i.h.bf16 %v5964_v2  ;;  %v6157_v46 = vld [vmem:[%s7376_s1] sm:$0xff] }
 0x1c8   :  { %2132 = vmatpush.msra.mxu2 %v7736_v60  ;;  %2172 = vmatpush.msrb.mxu1 %v7741_v11  ;;  %v882_v60 = vsel %vm879_vm10, %v3686_v14, %v3687_v36  ;;  %v753_v11 = vsel %vm749_vm12, %v3647_v37, %v3701_v57  ;;  %v688_v37 = vsel %vm684_vm13, %v7754_v34, %v3716_v28  ;;  %v7756_v57 = vunpack.i.l.bf16 %v5728_v8 }
 0x1c9   :  { %2202 = vmatpush.msrb.mxu0 %v883_v56  ;;  %2241 = vmatpush.msra.mxu3 %v947_v22  ;;  %v623_v14 = vsel %vm619_vm14, %v7755_v0, %v3731_v12  ;;  %v687_v22 = vsel %vm684_vm13, %v3716_v28, %v3717_v20  ;;  %v622_v28 = vsel %vm619_vm14, %v3731_v12, %v3732_v35 }
 0x1ca   :  { %2133 = vmatpush.msra.mxu2 %v7737_v61  ;;  %2173 = vmatpush.msrb.mxu1 %v7742_v49  ;;  %v3766_v61 = vunpack.i.l.bf16 %v6060_v63  ;;  %v3697_v49 = vunpack.i.h.bf16 %v5728_v8  ;;  %v3737_v8 = vunpack.i.h.bf16 %v5949_v21 }
 0x1cb   :  { %2203 = vmatpush.msrb.mxu0 %v818_v13  ;;  %2242 = vmatpush.msra.mxu3 %v882_v60  ;;  %v6110_v9 = vpop.permute.xlu1 %3779  ;;  %v7757_v60 = vunpack.i.l.bf16 %v5786_v7 }
 0x1cc   :  { %2134 = vmatpush.msra.mxu2 %v7738_v18  ;;  %2174 = vmatpush.msrb.mxu1 %v7743_v58  ;;  %v6127_v18 = vpop.permute.xlu2 %3784  ;;  %v3712_v58 = vunpack.i.h.bf16 %v5786_v7  ;;  %v557_v56 = vsel %vm554_vm7, %v7756_v57, %v3697_v49  ;;  %v3767_v57 = vunpack.i.h.bf16 %v6060_v63  ;;  %v3781_v50 = vunpack.i.l.bf16 %v6110_v9 }
 0x1cd   :  { %2204 = vmatpush.msrb.mxu0 %v753_v11  ;;  %v6119_v5 = vpop.permute.xlu0 %3774  ;;  %2243 = vmatpush.msra.mxu3 %v817_v55  ;;  %v3786_v1 = vunpack.i.l.bf16 %v6127_v18 }
 0x1ce   :  { %v3776_v41 = vunpack.i.l.bf16 %v6119_v5  ;;  %2135 = vmatpush.msra.mxu2 %v3847_v26  ;;  %2175 = vmatpush.msrb.mxu1 %v5938_v40  ;;  %v6150_v40 = vsel %vm554_vm7, %v3697_v49, %v3766_v61  ;;  %v492_v11 = vsel %vm489_vm8, %v7757_v60, %v3712_v58  ;;  %v7758_v49 = vunpack.i.l.bf16 %v5815_v23  ;;  %v7762_v26 = vld [vmem:[#allocation48_spill] sm:$0xff] }
 0x1cf   :  { %2205 = vmatpush.msrb.mxu0 %v688_v37  ;;  %3114 = vmatmul.msk.f32.vlgmr.msrb.gmra.mxu3 %vm1756_vm0, %v5944_v3  ;;  %v6201_v37 = vsel %vm424_vm9, %v3727_v16, %v3786_v1  ;;  %v3777_v60 = vunpack.i.h.bf16 %v6119_v5 }
 0x1d0   :  { %2244 = vmatpush.msra.mxu3 %v752_v54  ;;  %2136 = vmatmul.f32.vlgmr.msra.gmra.mxu2 %v6157_v46  ;;  %v6174_v13 = vsel %vm489_vm8, %v3712_v58, %v3776_v41  ;;  %v427_v34 = vsel %vm424_vm9, %v7758_v49, %v3727_v16  ;;  %v7766_v16 = vld [vmem:[#allocation26_spill] sm:$0xff] }
 0x1d1   :  { %2206 = vmatpush.msrb.mxu0 %v623_v14  ;;  %2265 = vmatpush.msra.mxu1 %v6150_v40  ;;  %v7764_v14 = vld [vmem:[#allocation40_spill] sm:$0xff]  ;;  %v6282_v49 = vsel %vm489_vm8, %v3776_v41, %v3777_v60  ;;  %v3742_v41 = vunpack.i.h.bf16 %v5925_v53 }
 0x1d2   :  { %2225 = vmatpush.msrb.mxu2 %v557_v56  ;;  %2245 = vmatpush.msra.mxu3 %v687_v22  ;;  %v7767_v22 = vld [vmem:[#allocation16_spill] sm:$0xff] }
 0x1d3   :  { %2207 = vmatpush.msrb.mxu0 %v5843_v45  ;;  %2266 = vmatpush.msra.mxu1 %v6174_v13  ;;  %v6182_v45 = vpop.permute.xlu1 %3794 }
 0x1d4   :  { %2226 = vmatpush.msrb.mxu2 %v492_v11  ;;  %2176 = vmatmul.f32.vlgmr.msrb.gmra.mxu1 %v6157_v46  ;;  %v3796_v55 = vunpack.i.l.bf16 %v6182_v45 }
 0x1d5   :  { %2208 = vmatpush.msrb.mxu0 %v5860_v51  ;;  %2246 = vmatpush.msra.mxu3 %v622_v28  ;;  %v6191_v7 = vpop.permute.xlu0 %3789  ;;  %v7759_v51 = vunpack.i.l.bf16 %v5949_v21  ;;  %v7761_v21 = vld [vmem:[#allocation39_spill] sm:$0xff] }
 0x1d6   :  { %2227 = vmatpush.msrb.mxu2 %v427_v34  ;;  %2267 = vmatpush.msra.mxu1 %v6201_v37  ;;  %v6213_v12 = vsel %vm359_vm5, %v3737_v8, %v3796_v55  ;;  %v3792_v31 = vunpack.i.h.bf16 %v6191_v7 }
 0x1d7   :  { %2209 = vmatpush.msrb.mxu0 %v5879_v32  ;;  %2247 = vmatpush.msra.mxu3 %v557_v56  ;;  %v362_v23 = vsel %vm359_vm5, %v7759_v51, %v3737_v8  ;;  %v7760_v32 = vld [vmem:[#allocation47_spill] sm:$0xff]  ;;  %v3741_v8 = vunpack.i.l.bf16 %v5925_v53  ;;  %v3771_v51 = vunpack.i.l.bf16 %v6063_v30 }
 0x1d8   :  { %2228 = vmatpush.msrb.mxu2 %v362_v23  ;;  %3113 = vmatmul.msk.f32.vlgmr.msra.gmra.mxu0 %vm1756_vm0, %v5944_v3 }
 0x1d9   :  { %2210 = vmatpush.msrb.mxu0 %v5982_v42  ;;  %2248 = vmatpush.msra.mxu3 %v492_v11  ;;  %v7763_v42 = vld [vmem:[#allocation13_spill] sm:$0xff]  ;;  %v6257_v11 = vsel %vm554_vm7, %v3766_v61, %v3767_v57  ;;  %v3751_v61 = vunpack.i.l.bf16 %v6005_v24  ;;  %v1011_v5 = vsel %vm1009_vm4, %v3672_v38, %v3741_v8  ;;  %v7769_v38 = vunpack.i.h.bf16 %v7768_v59 }
 0x1da   :  { %2229 = vmatpush.msrb.mxu2 %v7760_v32  ;;  %2268 = vmatpush.msra.mxu1 %v6213_v12  ;;  %v3782_v59 = vunpack.i.h.bf16 %v6110_v9 }
 0x1db   :  { %2211 = vmatpush.msrb.mxu0 %v7747_v29  ;;  %2249 = vmatpush.msra.mxu3 %v427_v34  ;;  %v6226_v0 = vpop.permute.xlu1 %3809  ;;  %v7765_v29 = vld [vmem:[#allocation15_spill] sm:$0xff]  ;;  %v6299_v34 = vpop.permute.xlu2 %3799 }
 0x1dc   :  { %2230 = vmatpush.msrb.mxu2 %v7761_v21  ;;  %2269 = vmatpush.msra.mxu1 %v7762_v26  ;;  %v3812_v17 = vunpack.i.h.bf16 %v6226_v0 }
 0x1dd   :  { %2212 = vmatpush.msrb.mxu0 %v7749_v43  ;;  %2250 = vmatpush.msra.mxu3 %v362_v23  ;;  %v6224_v58 = vpop.permute.xlu0 %3804  ;;  %v3811_v43 = vunpack.i.l.bf16 %v6226_v0  ;;  %v6313_v23 = vsel %vm554_vm7, %v3767_v57, %v7769_v38  ;;  %v3762_v57 = vunpack.i.h.bf16 %v6067_v33 }
 0x1de   :  { %2231 = vmatpush.msrb.mxu2 %v7763_v42  ;;  %2270 = vmatpush.msra.mxu1 %v7764_v14  ;;  %v3806_v54 = vunpack.i.l.bf16 %v6224_v58  ;;  %v3807_v56 = vunpack.i.h.bf16 %v6224_v58 }
 0x1df   :  { %2213 = vmatpush.msrb.mxu0 %v7750_v47  ;;  %2251 = vmatpush.msra.mxu3 %v7760_v32  ;;  %v3849_v47 = vld [vmem:[%s7375_s0 + $0x60] sm:$0xff]  ;;  %v1078_v63 = vsel %vm1074_vm3, %v3757_v25, %v3811_v43  ;;  %v3761_v25 = vunpack.i.l.bf16 %v6067_v33  ;;  %v946_v32 = vsel %vm944_vm6, %v3682_v39, %v3751_v61  ;;  %v7770_v39 = vld [vmem:[#allocation52_spill] sm:$0xff] }
 0x1e0   :  { %2232 = vmatpush.msrb.mxu2 %v7765_v29  ;;  %2271 = vmatpush.msra.mxu1 %v7766_v16  ;;  %v1142_v28 = vsel %vm1139_vm15, %v3806_v54, %v3807_v56 }
 0x1e1   :  { %2214 = vmatpush.msrb.mxu0 %v7751_v4  ;;  %2252 = vmatpush.msra.mxu3 %v7761_v21  ;;  %v1143_v4 = vsel %vm1139_vm15, %v3747_v62, %v3806_v54  ;;  %v6264_v62 = vld [vmem:[%s7375_s0 + $0x68] sm:$0xff]  ;;  %v3752_v21 = vunpack.i.h.bf16 %v6005_v24 }
 0x1e2   :  { %2233 = vmatpush.msrb.mxu2 %v3849_v47  ;;  %2272 = vmatpush.msra.mxu1 %v7767_v22 }
 0x1e3   :  { %2215 = vmatpush.msrb.mxu0 %v6037_v10  ;;  %2253 = vmatpush.msra.mxu3 %v7763_v42  ;;  %v3787_v10 = vunpack.i.h.bf16 %v6127_v18  ;;  %v3797_v18 = vunpack.i.h.bf16 %v6182_v45  ;;  %v1010_v42 = vsel %vm1009_vm4, %v3741_v8, %v3742_v41  ;;  %v881_v45 = vsel %vm879_vm10, %v3687_v36, %v3761_v25  ;;  %v6386_v38 = vpop.permute.xlu2 %3814 }
 0x1e4   :  { %2216 = vmatmul.f32.vlgmr.msrb.gmra.mxu0 %v6157_v46  ;;  %2234 = vmatpush.msrb.mxu2 %v1143_v4  ;;  %v7773_v4 = vld [vmem:[#allocation53_spill] sm:$0xff]  ;;  %v816_v36 = vsel %vm814_vm11, %v3692_v48, %v3771_v51 }
 0x1e5   :  { %2273 = vmatpush.msra.mxu1 %v6264_v62  ;;  %2305 = vmatpush.msra.mxu0 %v6257_v11  ;;  %v6289_v52 = vsel %vm424_vm9, %v3786_v1, %v3787_v10  ;;  %v1077_v1 = vsel %vm1074_vm3, %v3811_v43, %v3812_v17  ;;  %v6329_v54 = vsel %vm359_vm5, %v3796_v55, %v3797_v18  ;;  %v7774_v8 = vunpack.i.h.bf16 %v7773_v4  ;;  %v3851_v4 = vld [vmem:[%s7375_s0 + $0x70] sm:$0xff] }
 0x1e6   :  { %2254 = vmatpush.msra.mxu3 %v7765_v29  ;;  %2235 = vmatpush.msrb.mxu2 %v1078_v63  ;;  %v7771_v29 = vunpack.i.h.bf16 %v7770_v39  ;;  %v945_v55 = vsel %vm944_vm6, %v3751_v61, %v3752_v21  ;;  %v3791_v63 = vunpack.i.l.bf16 %v6191_v7  ;;  %v880_v61 = vsel %vm879_vm10, %v3761_v25, %v3762_v57 }
 0x1e7   :  { %2274 = vmatpush.msra.mxu1 %v1142_v28  ;;  %2306 = vmatpush.msra.mxu0 %v6282_v49  ;;  %v6354_v6 = vsel %vm424_vm9, %v3787_v10, %v7774_v8  ;;  %v7775_v10 = vld [vmem:[#allocation30_spill] sm:$0xff]  ;;  %v3816_v39 = vunpack.i.l.bf16 %v6386_v38  ;;  %v7782_v8 = vld [vmem:[#allocation29_spill] sm:$0xff] }
 0x1e8   :  { %3115 = vmatmul.msk.f32.vlgmr.msrb.gmra.mxu2 %vm1756_vm0, %v5944_v3  ;;  %2255 = vmatpush.msra.mxu3 %v3849_v47  ;;  %v6337_v43 = vsel %vm489_vm8, %v3777_v60, %v7771_v29  ;;  %v7772_v47 = vld [vmem:[#allocation49_spill] sm:$0xff]  ;;  %v3772_v60 = vunpack.i.h.bf16 %v6063_v30  ;;  %v7776_v28 = vld [vmem:[#allocation34_spill] sm:$0xff]  ;;  %v3802_v29 = vunpack.i.h.bf16 %v6299_v34 }
 0x1e9   :  { %2280 = vmatpush.msra.mxu2 %v1011_v5  ;;  %2256 = vmatmul.f32.vlgmr.msra.gmra.mxu3 %v6157_v46  ;;  %v7777_v15 = vunpack.i.l.bf16 %v7776_v28  ;;  %v751_v5 = vsel %vm749_vm12, %v3702_v19, %v3781_v50  ;;  %v6389_v19 = vpop.permute.xlu0 %3819 }
 0x1ea   :  { %2275 = vmatpush.msra.mxu1 %v1077_v1  ;;  %2307 = vmatpush.msra.mxu0 %v6289_v52  ;;  %v3801_v1 = vunpack.i.l.bf16 %v6299_v34  ;;  %v815_v25 = vsel %vm814_vm11, %v3771_v51, %v3772_v60  ;;  %v750_v51 = vsel %vm749_vm12, %v3781_v50, %v3782_v59  ;;  %v3821_v50 = vunpack.i.l.bf16 %v6389_v19  ;;  %v2425_v34 = vld [vmem:[%s7378_s3 + $0x48] sm:$0xff] }
 0x1eb   :  { %2345 = vmatpush.msrb.mxu3 %v6313_v23  ;;  %2281 = vmatpush.msra.mxu2 %v946_v32  ;;  %v6372_v48 = vsel %vm359_vm5, %v3797_v18, %v7777_v15  ;;  %v7778_v18 = vld [vmem:[#allocation27_spill] sm:$0xff]  ;;  %v7779_v32 = vld [vmem:[#allocation50_spill] sm:$0xff] }
 0x1ec   :  { %2320 = vmatpush.msrb.mxu1 %v1010_v42  ;;  %2308 = vmatpush.msra.mxu0 %v6329_v54  ;;  %v686_v42 = vsel %vm684_vm13, %v3717_v20, %v3791_v63  ;;  %v621_v44 = vsel %vm619_vm14, %v3732_v35, %v3801_v1  ;;  %v685_v20 = vsel %vm684_vm13, %v3791_v63, %v3792_v31  ;;  %v3817_v35 = vunpack.i.h.bf16 %v6386_v38  ;;  %v7783_v63 = vld [vmem:[#allocation18_spill] sm:$0xff]  ;;  %v7808_v38 = vld [vmem:[#allocation77_spill] sm:$0xff] }
 0x1ed   :  { %2346 = vmatpush.msrb.mxu3 %v6337_v43  ;;  %2282 = vmatpush.msra.mxu2 %v881_v45  ;;  %v7780_v45 = vld [vmem:[#allocation17_spill] sm:$0xff]  ;;  %v620_v2 = vsel %vm619_vm14, %v3801_v1, %v3802_v29  ;;  %v7798_v1 = vld [vmem:[#allocation64_spill] sm:$0xff] }
 0x1ee   :  { %2321 = vmatpush.msrb.mxu1 %v945_v55  ;;  %2309 = vmatpush.msra.mxu0 %v7772_v47  ;;  %v7781_v55 = vld [vmem:[#allocation28_spill] sm:$0xff]  ;;  %v1140_v58 = vsel %vm1139_vm15, %v3816_v39, %v3817_v35 }
 0x1ef   :  { %2347 = vmatpush.msrb.mxu3 %v6354_v6  ;;  %2283 = vmatpush.msra.mxu2 %v816_v36  ;;  %v1141_v36 = vsel %vm1139_vm15, %v3807_v56, %v3816_v39  ;;  %v6444_v56 = vld [vmem:[%s7375_s0 + $0x78] sm:$0xff]  ;;  %v2422_v39 = vld [vmem:[%s7378_s3 + $0x30] sm:$0xff] }
 0x1f0   :  { %2322 = vmatpush.msrb.mxu1 %v880_v61  ;;  %2310 = vmatpush.msra.mxu0 %v7775_v10  ;;  %v3822_v61 = vunpack.i.h.bf16 %v6389_v19  ;;  %v2437_v19 = vld [vmem:[%s7378_s3 + $0xa8] sm:$0xff] }
 0x1f1   :  { %2348 = vmatpush.msrb.mxu3 %v6372_v48  ;;  %2284 = vmatpush.msra.mxu2 %v751_v5  ;;  %v2426_v5 = vld [vmem:[%s7378_s3 + $0x50] sm:$0xff] }
 0x1f2   :  { %2323 = vmatpush.msrb.mxu1 %v815_v25  ;;  %2311 = vmatpush.msra.mxu0 %v7778_v18  ;;  %v2446_v25 = vld [vmem:[%s7378_s3 + $0xf0] sm:$0xff] }
 0x1f3   :  { %3116 = vmatmul.msk.f32.vlgmr.msra.gmra.mxu1 %vm1756_vm0, %v5944_v3  ;;  %2349 = vmatpush.msrb.mxu3 %v7779_v32 }
 0x1f4   :  { %2285 = vmatpush.msra.mxu2 %v686_v42  ;;  %2324 = vmatpush.msrb.mxu1 %v750_v51  ;;  %v2423_v42 = vld [vmem:[%s7378_s3 + $0x38] sm:$0xff]  ;;  %v2444_v51 = vld [vmem:[%s7378_s3 + $0xe0] sm:$0xff] }
 0x1f5   :  { %2312 = vmatpush.msra.mxu0 %v7780_v45  ;;  %2350 = vmatpush.msrb.mxu3 %v7781_v55 }
 0x1f6   :  { %2286 = vmatpush.msra.mxu2 %v621_v44  ;;  %2325 = vmatpush.msrb.mxu1 %v685_v20  ;;  %v6574_v44 = vpop.permute.xlu1 %1753  ;;  %v1777_v20 = vpop.f32.mrf.mxu0 }
 0x1f7   :  { %2313 = vmatpush.msra.mxu0 %v3851_v4  ;;  %2351 = vmatpush.msrb.mxu3 %v7782_v8 }
 0x1f8   :  { %2287 = vmatpush.msra.mxu2 %v6150_v40  ;;  %2326 = vmatpush.msrb.mxu1 %v620_v2  ;;  %v1076_v40 = vsel %vm1074_vm3, %v3812_v17, %v3821_v50  ;;  %v1075_v17 = vsel %vm1074_vm3, %v3821_v50, %v3822_v61  ;;  %v7803_v50 = vld [vmem:[#allocation71_spill] sm:$0xff]  ;;  %v7804_v2 = vld [vmem:[#allocation72_spill] sm:$0xff] }
 0x1f9   :  { %2314 = vmatpush.msra.mxu0 %v1141_v36  ;;  %2352 = vmatpush.msrb.mxu3 %v7783_v63  ;;  %v2419_v36 = vld [vmem:[%s7378_s3 + $0x18] sm:$0xff] }
 0x1fa   :  { %2288 = vmatpush.msra.mxu2 %v6174_v13  ;;  %2327 = vmatpush.msrb.mxu1 %v6257_v11  ;;  %v7784_v13 = vld [vmem:[#allocation54_spill] sm:$0xff] }
 0x1fb   :  { %2315 = vmatpush.msra.mxu0 %v1076_v40  ;;  %2353 = vmatpush.msrb.mxu3 %v6444_v56  ;;  %v7785_v0 = vunpack.i.h.bf16 %v7784_v13  ;;  %v1778_v40 = vadd.f32 %v1777_v20, %v6574_v44  ;;  %v7805_v13 = vld [vmem:[#allocation73_spill] sm:$0xff] }
 0x1fc   :  { %2289 = vmatpush.msra.mxu2 %v6201_v37  ;;  %2328 = vmatpush.msrb.mxu1 %v6282_v49  ;;  %v7786_v37 = vld [vmem:[#allocation55_spill] sm:$0xff]  ;;  %v2488_v20 = vld [vmem:[%s7378_s3 + $0x240] sm:$0xff] }
 0x1fd   :  { %v1025_v11 = vsel %vm1009_vm4, %v3742_v41, %v7785_v0  ;;  %2354 = vmatpush.msrb.mxu3 %v1140_v58  ;;  %v7787_v49 = vunpack.i.h.bf16 %v7786_v37  ;;  %v2431_v41 = vld [vmem:[%s7378_s3 + $0x78] sm:$0xff]  ;;  %3117 = vmatmul.msk.f32.vlgmr.msra.gmra.mxu0 %vm1756_vm0, %v5944_v3  ;;  %v1797_v58 = vpop.f32.mrf.mxu1  ;;  %v2418_v0 = vld [vmem:[%s7378_s3 + $0x10] sm:$0xff] }
 0x1fe   :  { %2360 = vmatpush.msrb.mxu0 %v1025_v11  ;;  %2290 = vmatpush.msra.mxu2 %v6213_v12  ;;  %v7788_v12 = vld [vmem:[#allocation59_spill] sm:$0xff]  ;;  %v2439_v11 = vld [vmem:[%s7378_s3 + $0xb8] sm:$0xff]  ;;  %v1798_v37 = vadd.f32 %v1797_v58, %v1778_v40 }
 0x1ff   :  { %2329 = vmatpush.msrb.mxu1 %v6289_v52  ;;  %v960_v53 = vsel %vm944_vm6, %v3752_v21, %v7787_v49  ;;  %2355 = vmatpush.msrb.mxu3 %v1075_v17  ;;  %v7789_v28 = vunpack.i.h.bf16 %v7788_v12  ;;  %v2430_v52 = vld [vmem:[%s7378_s3 + $0x70] sm:$0xff]  ;;  %v2479_v17 = vld [vmem:[%s7378_s3 + $0x1f8] sm:$0xff] }
 0x200   :  { %2361 = vmatpush.msrb.mxu0 %v960_v53  ;;  %2291 = vmatpush.msra.mxu2 %v7762_v26  ;;  %v7790_v26 = vld [vmem:[#allocation60_spill] sm:$0xff] }
 0x201   :  { %2330 = vmatpush.msrb.mxu1 %v6329_v54  ;;  %v895_v24 = vsel %vm879_vm10, %v3762_v57, %v7789_v28  ;;  %2672 = vmatpush.msra.mxu3 %v2431_v41  ;;  %v7791_v21 = vunpack.i.h.bf16 %v7790_v26  ;;  %v2429_v54 = vld [vmem:[%s7378_s3 + $0x68] sm:$0xff]  ;;  %v2438_v12 = vld [vmem:[%s7378_s3 + $0xb0] sm:$0xff]  ;;  %v7809_v28 = vunpack.i.l.bf16 %v7808_v38  ;;  %v2495_v26 = vld [vmem:[%s7378_s3 + $0x278] sm:$0xff] }
 0x202   :  { %2362 = vmatpush.msrb.mxu0 %v895_v24  ;;  %2292 = vmatpush.msra.mxu2 %v7764_v14  ;;  %v7792_v14 = vld [vmem:[#allocation61_spill] sm:$0xff]  ;;  %v2417_v41 = vld [vmem:[%s7378_s3 + $0x8] sm:$0xff]  ;;  %v2454_v40 = vld [vmem:[%s7378_s3 + $0x130] sm:$0xff] }
 0x203   :  { %2331 = vmatpush.msrb.mxu1 %v7772_v47  ;;  %v830_v33 = vsel %vm814_vm11, %v3772_v60, %v7791_v21  ;;  %2673 = vmatpush.msra.mxu3 %v2430_v52  ;;  %v7793_v57 = vunpack.i.h.bf16 %v7792_v14  ;;  %v2428_v47 = vld [vmem:[%s7378_s3 + $0x60] sm:$0xff]  ;;  %v2463_v24 = vld [vmem:[%s7378_s3 + $0x178] sm:$0xff]  ;;  %v2400_v52 = vmax.f32 %v1798_v37, 0.0  ;;  %v2462_v21 = vld [vmem:[%s7378_s3 + $0x170] sm:$0xff] }
 0x204   :  { %2363 = vmatpush.msrb.mxu0 %v830_v33  ;;  %2293 = vmatpush.msra.mxu2 %v7766_v16  ;;  %v7794_v16 = vld [vmem:[#allocation63_spill] sm:$0xff]  ;;  %v2436_v33 = vld [vmem:[%s7378_s3 + $0xa0] sm:$0xff]  ;;  %v2467_v37 = vld [vmem:[%s7378_s3 + $0x198] sm:$0xff] }
 0x205   :  { %2332 = vmatpush.msrb.mxu1 %v7775_v10  ;;  %v765_v30 = vsel %vm749_vm12, %v3782_v59, %v7793_v57  ;;  %2674 = vmatpush.msra.mxu3 %v2429_v54  ;;  %v7795_v60 = vunpack.i.h.bf16 %v7794_v16  ;;  %v2427_v10 = vld [vmem:[%s7378_s3 + $0x58] sm:$0xff]  ;;  %v2476_v54 = vld [vmem:[%s7378_s3 + $0x1e0] sm:$0xff]  ;;  %v2461_v14 = vld [vmem:[%s7378_s3 + $0x168] sm:$0xff]  ;;  %v1837_v16 = vpop.f32.mrf.mxu3  ;;  %v1857_v58 = vpop.f32.mrf.mxu1 }
 0x206   :  { %2364 = vmatpush.msrb.mxu0 %v765_v30  ;;  %2294 = vmatpush.msra.mxu2 %v7767_v22  ;;  %v7796_v22 = vld [vmem:[#allocation58_spill] sm:$0xff]  ;;  %v7799_v59 = vld [vmem:[#allocation65_spill] sm:$0xff] }
 0x207   :  { %2333 = vmatpush.msrb.mxu1 %v7778_v18  ;;  %v700_v9 = vsel %vm684_vm13, %v3792_v31, %v7795_v60  ;;  %2675 = vmatpush.msra.mxu3 %v2428_v47  ;;  %v7797_v15 = vunpack.i.h.bf16 %v7796_v22  ;;  %v7800_v18 = vld [vmem:[#allocation66_spill] sm:$0xff]  ;;  %v2435_v30 = vld [vmem:[%s7378_s3 + $0x98] sm:$0xff]  ;;  %v2474_v22 = vld [vmem:[%s7378_s3 + $0x1d0] sm:$0xff] }
 0x208   :  { %2365 = vmatpush.msrb.mxu0 %v700_v9  ;;  %3118 = vmatmul.msk.f32.vlgmr.msrb.gmra.mxu3 %vm1756_vm0, %v5944_v3  ;;  %v2445_v31 = vld [vmem:[%s7378_s3 + $0xe8] sm:$0xff]  ;;  %v2475_v47 = vld [vmem:[%s7378_s3 + $0x1d8] sm:$0xff]  ;;  %v2460_v9 = vld [vmem:[%s7378_s3 + $0x160] sm:$0xff] }
 0x209   :  { %2295 = vmatpush.msra.mxu2 %v6264_v62  ;;  %v635_v7 = vsel %vm619_vm14, %v3802_v29, %v7797_v15  ;;  %2334 = vmatpush.msrb.mxu1 %v7780_v45  ;;  %v2447_v62 = vld [vmem:[%s7378_s3 + $0xf8] sm:$0xff]  ;;  %v7802_v29 = vld [vmem:[#allocation70_spill] sm:$0xff] }
 0x20a   :  { %2366 = vmatpush.msrb.mxu0 %v635_v7  ;;  %2676 = vmatpush.msra.mxu3 %v2427_v10  ;;  %v2421_v45 = vld [vmem:[%s7378_s3 + $0x28] sm:$0xff]  ;;  %v2434_v10 = vld [vmem:[%s7378_s3 + $0x90] sm:$0xff]  ;;  %v2492_v15 = vld [vmem:[%s7378_s3 + $0x260] sm:$0xff] }
 0x20b   :  { %2296 = vmatmul.f32.vlgmr.msra.gmra.mxu2 %v6157_v46  ;;  %2335 = vmatpush.msrb.mxu1 %v3851_v4  ;;  %v2420_v4 = vld [vmem:[%s7378_s3 + $0x20] sm:$0xff]  ;;  %v2493_v60 = vld [vmem:[%s7378_s3 + $0x268] sm:$0xff]  ;;  %v2459_v7 = vld [vmem:[%s7378_s3 + $0x158] sm:$0xff] }
 0x20c   :  { %2385 = vmatpush.msrb.mxu2 %v7798_v1  ;;  %2367 = vmatpush.msrb.mxu0 %v6313_v23  ;;  %v2424_v23 = vld [vmem:[%s7378_s3 + $0x40] sm:$0xff]  ;;  %v2433_v1 = vld [vmem:[%s7378_s3 + $0x88] sm:$0xff] }
 0x20d   :  { %2677 = vmatpush.msra.mxu3 %v2426_v5  ;;  %2336 = vmatmul.f32.vlgmr.msrb.gmra.mxu1 %v6157_v46  ;;  %v2484_v38 = vld [vmem:[%s7378_s3 + $0x220] sm:$0xff] }
 0x20e   :  { %2386 = vmatpush.msrb.mxu2 %v7799_v59  ;;  %2692 = vmatpush.msra.mxu1 %v2447_v62  ;;  %v2473_v62 = vld [vmem:[%s7378_s3 + $0x1c8] sm:$0xff]  ;;  %v2458_v59 = vld [vmem:[%s7378_s3 + $0x150] sm:$0xff] }
 0x20f   :  { %2368 = vmatpush.msrb.mxu0 %v6337_v43  ;;  %2678 = vmatpush.msra.mxu3 %v2425_v34  ;;  %v7801_v43 = vld [vmem:[#allocation67_spill] sm:$0xff]  ;;  %v2491_v34 = vld [vmem:[%s7378_s3 + $0x258] sm:$0xff] }
 0x210   :  { %2387 = vmatpush.msrb.mxu2 %v7800_v18  ;;  %2693 = vmatpush.msra.mxu1 %v2446_v25  ;;  %v2432_v25 = vld [vmem:[%s7378_s3 + $0x80] sm:$0xff]  ;;  %v2490_v18 = vld [vmem:[%s7378_s3 + $0x250] sm:$0xff] }
 0x211   :  { %2369 = vmatpush.msrb.mxu0 %v6354_v6  ;;  %2679 = vmatpush.msra.mxu3 %v2424_v23  ;;  %v2443_v6 = vld [vmem:[%s7378_s3 + $0xd8] sm:$0xff]  ;;  %v2472_v23 = vld [vmem:[%s7378_s3 + $0x1c0] sm:$0xff] }
 0x212   :  { %2388 = vmatpush.msrb.mxu2 %v7801_v43  ;;  %2694 = vmatpush.msra.mxu1 %v2445_v31  ;;  %v2511_v43 = vld [vmem:[%s7378_s3 + $0x2f8] sm:$0xff] }
 0x213   :  { %2370 = vmatpush.msrb.mxu0 %v6372_v48  ;;  %2680 = vmatpush.msra.mxu3 %v2423_v42  ;;  %v2442_v48 = vld [vmem:[%s7378_s3 + $0xd0] sm:$0xff]  ;;  %v2457_v42 = vld [vmem:[%s7378_s3 + $0x148] sm:$0xff] }
 0x214   :  { %2389 = vmatpush.msrb.mxu2 %v7802_v29  ;;  %2695 = vmatpush.msra.mxu1 %v2444_v51  ;;  %v2471_v51 = vld [vmem:[%s7378_s3 + $0x1b8] sm:$0xff]  ;;  %v2510_v29 = vld [vmem:[%s7378_s3 + $0x2f0] sm:$0xff] }
 0x215   :  { %2371 = vmatpush.msrb.mxu0 %v7779_v32  ;;  %2681 = vmatpush.msra.mxu3 %v2422_v39  ;;  %v2441_v32 = vld [vmem:[%s7378_s3 + $0xc8] sm:$0xff] }
 0x216   :  { %2390 = vmatpush.msrb.mxu2 %v7803_v50  ;;  %2696 = vmatpush.msra.mxu1 %v2443_v6  ;;  %v2489_v39 = vld [vmem:[%s7378_s3 + $0x248] sm:$0xff]  ;;  %v2456_v6 = vld [vmem:[%s7378_s3 + $0x140] sm:$0xff]  ;;  %v2455_v50 = vld [vmem:[%s7378_s3 + $0x138] sm:$0xff] }
 0x217   :  { %2372 = vmatpush.msrb.mxu0 %v7781_v55  ;;  %2682 = vmatpush.msra.mxu3 %v2421_v45  ;;  %v2440_v55 = vld [vmem:[%s7378_s3 + $0xc0] sm:$0xff]  ;;  %v6726_v45 = vpop.f32.mrf.mxu3 }
 0x218   :  { %2391 = vmatpush.msrb.mxu2 %v7804_v2  ;;  %2697 = vmatpush.msra.mxu1 %v2442_v48  ;;  %v2470_v48 = vld [vmem:[%s7378_s3 + $0x1b0] sm:$0xff]  ;;  %v2487_v2 = vld [vmem:[%s7378_s3 + $0x238] sm:$0xff] }
 0x219   :  { %2373 = vmatpush.msrb.mxu0 %v7782_v8  ;;  %2683 = vmatpush.msra.mxu3 %v2420_v4  ;;  %v3853_v8 = vld [vmem:[%s7375_s0] sm:$0xff]  ;;  %v2509_v4 = vld [vmem:[%s7378_s3 + $0x2e8] sm:$0xff] }
 0x21a   :  { %2392 = vmatpush.msrb.mxu2 %v7805_v13  ;;  %2698 = vmatpush.msra.mxu1 %v2441_v32  ;;  %v2469_v32 = vld [vmem:[%s7378_s3 + $0x1a8] sm:$0xff]  ;;  %v2468_v13 = vld [vmem:[%s7378_s3 + $0x1a0] sm:$0xff] }
 0x21b   :  { %2374 = vmatpush.msrb.mxu0 %v7783_v63  ;;  %2684 = vmatpush.msra.mxu3 %v2419_v36  ;;  %v7806_v63 = vld [vmem:[#allocation75_spill] sm:$0xff]  ;;  %v1897_v36 = vpop.f32.mrf.mxu0 }
 0x21c   :  { %2393 = vmatpush.msrb.mxu2 %v3853_v8  ;;  %2699 = vmatpush.msra.mxu1 %v2440_v55  ;;  %v7807_v49 = vunpack.i.l.bf16 %v7806_v63  ;;  %v2508_v55 = vld [vmem:[%s7378_s3 + $0x2e0] sm:$0xff]  ;;  %v2453_v8 = vld [vmem:[%s7378_s3 + $0x128] sm:$0xff] }
 0x21d   :  { %2375 = vmatpush.msrb.mxu0 %v6444_v56  ;;  %2685 = vmatpush.msra.mxu3 %v2418_v0  ;;  %v2478_v56 = vld [vmem:[%s7378_s3 + $0x1f0] sm:$0xff]  ;;  %v2485_v63 = vld [vmem:[%s7378_s3 + $0x228] sm:$0xff] }
 0x21e   :  { %v1155_v53 = vsel %vm1139_vm15, %v3817_v35, %v7807_v49  ;;  %2376 = vmatmul.f32.vlgmr.msrb.gmra.mxu0 %v6157_v46  ;;  %2700 = vmatpush.msra.mxu1 %v2439_v11  ;;  %v1090_v35 = vsel %vm1074_vm3, %v3822_v61, %v7809_v28  ;;  %v2416_v46 = vld [vmem:[%s7378_s3] sm:$0xff]  ;;  %v1817_v61 = vpop.f32.mrf.mxu2  ;;  %v2486_v0 = vld [vmem:[%s7378_s3 + $0x230] sm:$0xff]  ;;  %v2507_v11 = vld [vmem:[%s7378_s3 + $0x2d8] sm:$0xff] }
 0x21f   :  { %2394 = vmatpush.msrb.mxu2 %v1155_v53  ;;  %2732 = vmatpush.msra.mxu0 %v2479_v17  ;;  %v1818_v57 = vadd.f32 %v1817_v61, %v6574_v44  ;;  %v1898_v17 = vadd.f32 %v1897_v36, %v6574_v44  ;;  %v2452_v53 = vld [vmem:[%s7378_s3 + $0x120] sm:$0xff]  ;;  %v2451_v28 = vld [vmem:[%s7378_s3 + $0x118] sm:$0xff]  ;;  %v2450_v61 = vld [vmem:[%s7378_s3 + $0x110] sm:$0xff] }
 0x220   :  { %2686 = vmatpush.msra.mxu3 %v2417_v41  ;;  %2701 = vmatpush.msra.mxu1 %v2438_v12  ;;  %v2506_v41 = vld [vmem:[%s7378_s3 + $0x2d0] sm:$0xff]  ;;  %v1937_v12 = vpop.f32.mrf.mxu3  ;;  %v2497_v36 = vld [vmem:[%s7378_s3 + $0x288] sm:$0xff] }
 0x221   :  { %2395 = vmatpush.msrb.mxu2 %v1090_v35  ;;  %2733 = vmatpush.msra.mxu0 %v2478_v56  ;;  %v1838_v5 = vadd.f32 %v1837_v16, %v1818_v57  ;;  %v2466_v56 = vld [vmem:[%s7378_s3 + $0x190] sm:$0xff]  ;;  %v2505_v35 = vld [vmem:[%s7378_s3 + $0x2c8] sm:$0xff] }
 0x222   :  { %3119 = vmatmul.msk.f32.vlgmr.msrb.gmra.mxu2 %vm1756_vm0, %v5944_v3  ;;  %2687 = vmatpush.msra.mxu3 %v2416_v46  ;;  %v2494_v3 = vld [vmem:[%s7378_s3 + $0x270] sm:$0xff]  ;;  %v1858_v46 = vadd.f32 %v1857_v58, %v6574_v44 }
 0x223   :  { %2712 = vmatpush.msra.mxu2 %v2463_v24  ;;  %2688 = vmatmul.f32.vlgmr.msra.gmra.mxu3 %v2400_v52  ;;  %v2401_v31 = vmax.f32 %v1838_v5, 0.0  ;;  %v2465_v52 = vld [vmem:[%s7378_s3 + $0x188] sm:$0xff]  ;;  %v2527_v5 = vld [vmem:[%s7378_s3 + $0x378] sm:$0xff]  ;;  %v2522_v58 = vld [vmem:[%s7378_s3 + $0x350] sm:$0xff] }
 0x224   :  { %2702 = vmatpush.msra.mxu1 %v2437_v19  ;;  %2734 = vmatpush.msra.mxu0 %v2477_v27  ;;  %v2483_v19 = vld [vmem:[%s7378_s3 + $0x218] sm:$0xff]  ;;  %v1938_v27 = vadd.f32 %v1937_v12, %v6574_v44  ;;  %v2574_v12 = vld [vmem:[%s7378_s3 + $0x4f0] sm:$0xff] }
 0x225   :  { %2752 = vmatpush.msrb.mxu3 %v2495_v26  ;;  %2713 = vmatpush.msra.mxu2 %v2462_v21  ;;  %v2504_v26 = vld [vmem:[%s7378_s3 + $0x2c0] sm:$0xff]  ;;  %v1957_v21 = vpop.f32.mrf.mxu1 }
 0x226   :  { %2703 = vmatpush.msra.mxu1 %v2436_v33  ;;  %2735 = vmatpush.msra.mxu0 %v2476_v54  ;;  %v1917_v49 = vpop.f32.mrf.mxu2  ;;  %v2464_v33 = vld [vmem:[%s7378_s3 + $0x180] sm:$0xff]  ;;  %v2482_v54 = vld [vmem:[%s7378_s3 + $0x210] sm:$0xff]  ;;  %v1958_v16 = vadd.f32 %v1957_v21, %v1938_v27 }
 0x227   :  { %2753 = vmatpush.msrb.mxu3 %v2494_v3  ;;  %2714 = vmatpush.msra.mxu2 %v2461_v14  ;;  %v1918_v24 = vadd.f32 %v1917_v49, %v1898_v17  ;;  %v2449_v3 = vld [vmem:[%s7378_s3 + $0x108] sm:$0xff]  ;;  %v1878_v14 = vadd.f32 %v6726_v45, %v1858_v46  ;;  %v2535_v49 = vld [vmem:[%s7378_s3 + $0x3b8] sm:$0xff]  ;;  %v2518_v27 = vld [vmem:[%s7378_s3 + $0x330] sm:$0xff] }
 0x228   :  { %2704 = vmatpush.msra.mxu1 %v2435_v30  ;;  %2736 = vmatpush.msra.mxu0 %v2475_v47  ;;  %v2503_v30 = vld [vmem:[%s7378_s3 + $0x2b8] sm:$0xff]  ;;  %v2557_v45 = vld [vmem:[%s7378_s3 + $0x468] sm:$0xff]  ;;  %v2550_v21 = vld [vmem:[%s7378_s3 + $0x430] sm:$0xff] }
 0x229   :  { %2754 = vmatpush.msrb.mxu3 %v2493_v60  ;;  %2715 = vmatpush.msra.mxu2 %v2460_v9  ;;  %v2403_v57 = vmax.f32 %v1918_v24, 0.0  ;;  %v2543_v47 = vld [vmem:[%s7378_s3 + $0x3f8] sm:$0xff]  ;;  %v2481_v60 = vld [vmem:[%s7378_s3 + $0x208] sm:$0xff]  ;;  %v2448_v9 = vld [vmem:[%s7378_s3 + $0x100] sm:$0xff] }
 0x22a   :  { %2705 = vmatpush.msra.mxu1 %v2434_v10  ;;  %2737 = vmatpush.msra.mxu0 %v2474_v22  ;;  %v2502_v10 = vld [vmem:[%s7378_s3 + $0x2b0] sm:$0xff]  ;;  %v2521_v17 = vld [vmem:[%s7378_s3 + $0x348] sm:$0xff] }
 0x22b   :  { %2755 = vmatpush.msrb.mxu3 %v2492_v15  ;;  %2716 = vmatpush.msra.mxu2 %v2459_v7  ;;  %v2542_v22 = vld [vmem:[%s7378_s3 + $0x3f0] sm:$0xff]  ;;  %v2480_v15 = vld [vmem:[%s7378_s3 + $0x200] sm:$0xff]  ;;  %v2402_v7 = vmax.f32 %v1878_v14, 0.0  ;;  %v2533_v24 = vld [vmem:[%s7378_s3 + $0x3a8] sm:$0xff] }
 0x22c   :  { %2706 = vmatpush.msra.mxu1 %v2433_v1  ;;  %2738 = vmatpush.msra.mxu0 %v2473_v62  ;;  %v2404_v1 = vmax.f32 %v1958_v16, 0.0  ;;  %v2501_v62 = vld [vmem:[%s7378_s3 + $0x2a8] sm:$0xff]  ;;  %v2531_v14 = vld [vmem:[%s7378_s3 + $0x398] sm:$0xff]  ;;  %v2570_v16 = vld [vmem:[%s7378_s3 + $0x4d0] sm:$0xff] }
 0x22d   :  { %2756 = vmatpush.msrb.mxu3 %v2491_v34  ;;  %2717 = vmatpush.msra.mxu2 %v2458_v59  ;;  %v2541_v34 = vld [vmem:[%s7378_s3 + $0x3e8] sm:$0xff]  ;;  %v2017_v46 = vpop.f32.mrf.mxu1 }
 0x22e   :  { %2707 = vmatpush.msra.mxu1 %v2432_v25  ;;  %2739 = vmatpush.msra.mxu0 %v2472_v23  ;;  %v1977_v59 = vpop.f32.mrf.mxu2  ;;  %v2559_v25 = vld [vmem:[%s7378_s3 + $0x478] sm:$0xff]  ;;  %v2526_v23 = vld [vmem:[%s7378_s3 + $0x370] sm:$0xff] }
 0x22f   :  { %2757 = vmatpush.msrb.mxu3 %v2490_v18  ;;  %2708 = vmatmul.f32.vlgmr.msra.gmra.mxu1 %v2401_v31  ;;  %v2500_v18 = vld [vmem:[%s7378_s3 + $0x2a0] sm:$0xff] }
 0x230   :  { %2718 = vmatpush.msra.mxu2 %v2457_v42  ;;  %2772 = vmatpush.msrb.mxu1 %v2511_v43  ;;  %v2540_v31 = vld [vmem:[%s7378_s3 + $0x3e0] sm:$0xff]  ;;  %v2558_v42 = vld [vmem:[%s7378_s3 + $0x470] sm:$0xff]  ;;  %v2525_v43 = vld [vmem:[%s7378_s3 + $0x368] sm:$0xff] }
 0x231   :  { %2740 = vmatpush.msra.mxu0 %v2471_v51  ;;  %2758 = vmatpush.msrb.mxu3 %v2489_v39  ;;  %v1978_v51 = vadd.f32 %v1977_v59, %v6574_v44  ;;  %v2499_v39 = vld [vmem:[%s7378_s3 + $0x298] sm:$0xff]  ;;  %v2514_v59 = vld [vmem:[%s7378_s3 + $0x310] sm:$0xff] }
 0x232   :  { %2719 = vmatpush.msra.mxu2 %v2456_v6  ;;  %2773 = vmatpush.msrb.mxu1 %v2510_v29  ;;  %v2539_v6 = vld [vmem:[%s7378_s3 + $0x3d8] sm:$0xff]  ;;  %v1997_v29 = vpop.f32.mrf.mxu0 }
 0x233   :  { %2741 = vmatpush.msra.mxu0 %v2470_v48  ;;  %2759 = vmatpush.msrb.mxu3 %v2488_v20  ;;  %v2524_v48 = vld [vmem:[%s7378_s3 + $0x360] sm:$0xff]  ;;  %v2498_v20 = vld [vmem:[%s7378_s3 + $0x290] sm:$0xff] }
 0x234   :  { %2720 = vmatpush.msra.mxu2 %v2455_v50  ;;  %2774 = vmatpush.msrb.mxu1 %v2509_v4  ;;  %v2538_v50 = vld [vmem:[%s7378_s3 + $0x3d0] sm:$0xff]  ;;  %v2556_v4 = vld [vmem:[%s7378_s3 + $0x460] sm:$0xff] }
 0x235   :  { %2742 = vmatpush.msra.mxu0 %v2469_v32  ;;  %2760 = vmatpush.msrb.mxu3 %v2487_v2  ;;  %v2523_v32 = vld [vmem:[%s7378_s3 + $0x358] sm:$0xff]  ;;  %v1998_v2 = vadd.f32 %v1997_v29, %v1978_v51 }
 0x236   :  { %2721 = vmatpush.msra.mxu2 %v2454_v40  ;;  %2775 = vmatpush.msrb.mxu1 %v2508_v55  ;;  %v2537_v40 = vld [vmem:[%s7378_s3 + $0x3c8] sm:$0xff]  ;;  %v2555_v55 = vld [vmem:[%s7378_s3 + $0x458] sm:$0xff] }
 0x237   :  { %2743 = vmatpush.msra.mxu0 %v2468_v13  ;;  %2761 = vmatpush.msrb.mxu3 %v2486_v0  ;;  %v2496_v13 = vld [vmem:[%s7378_s3 + $0x280] sm:$0xff]  ;;  %v2607_v29 = vld [vmem:[%s7378_s3 + $0x5f8] sm:$0xff] }
 0x238   :  { %2722 = vmatpush.msra.mxu2 %v2453_v8  ;;  %2776 = vmatpush.msrb.mxu1 %v2507_v11  ;;  %v2536_v0 = vld [vmem:[%s7378_s3 + $0x3c0] sm:$0xff]  ;;  %v2554_v8 = vld [vmem:[%s7378_s3 + $0x450] sm:$0xff]  ;;  %v2405_v11 = vmax.f32 %v1998_v2, 0.0 }
 0x239   :  { %2744 = vmatpush.msra.mxu0 %v2467_v37  ;;  %2762 = vmatpush.msrb.mxu3 %v2485_v63  ;;  %v2575_v37 = vld [vmem:[%s7378_s3 + $0x4f8] sm:$0xff]  ;;  %v6913_v63 = vpop.f32.mrf.mxu3 }
 0x23a   :  { %2723 = vmatpush.msra.mxu2 %v2452_v53  ;;  %2777 = vmatpush.msrb.mxu1 %v2506_v41  ;;  %v2553_v53 = vld [vmem:[%s7378_s3 + $0x448] sm:$0xff]  ;;  %v2520_v41 = vld [vmem:[%s7378_s3 + $0x340] sm:$0xff] }
 0x23b   :  { %2745 = vmatpush.msra.mxu0 %v2466_v56  ;;  %2763 = vmatpush.msrb.mxu3 %v2484_v38  ;;  %v2534_v56 = vld [vmem:[%s7378_s3 + $0x3b0] sm:$0xff]  ;;  %v2552_v38 = vld [vmem:[%s7378_s3 + $0x440] sm:$0xff] }
 0x23c   :  { %2724 = vmatpush.msra.mxu2 %v2451_v28  ;;  %2778 = vmatpush.msrb.mxu1 %v2505_v35  ;;  %v2519_v28 = vld [vmem:[%s7378_s3 + $0x338] sm:$0xff]  ;;  %v2573_v35 = vld [vmem:[%s7378_s3 + $0x4e8] sm:$0xff] }
 0x23d   :  { %2746 = vmatpush.msra.mxu0 %v2465_v52  ;;  %2764 = vmatpush.msrb.mxu3 %v2483_v19  ;;  %v2551_v52 = vld [vmem:[%s7378_s3 + $0x438] sm:$0xff]  ;;  %v2057_v19 = vpop.f32.mrf.mxu0 }
 0x23e   :  { %2725 = vmatpush.msra.mxu2 %v2450_v61  ;;  %2779 = vmatpush.msrb.mxu1 %v2504_v26  ;;  %v2572_v61 = vld [vmem:[%s7378_s3 + $0x4e0] sm:$0xff] }
 0x23f   :  { %2747 = vmatpush.msra.mxu0 %v2464_v33  ;;  %2765 = vmatpush.msrb.mxu3 %v2482_v54  ;;  %v2532_v26 = vld [vmem:[%s7378_s3 + $0x3a0] sm:$0xff]  ;;  %v2517_v33 = vld [vmem:[%s7378_s3 + $0x328] sm:$0xff]  ;;  %v2571_v54 = vld [vmem:[%s7378_s3 + $0x4d8] sm:$0xff] }
 0x240   :  { %2726 = vmatpush.msra.mxu2 %v2449_v3  ;;  %2748 = vmatmul.f32.vlgmr.msra.gmra.mxu0 %v2403_v57  ;;  %v2058_v3 = vadd.f32 %v2057_v19, %v6574_v44  ;;  %v2549_v57 = vld [vmem:[%s7378_s3 + $0x428] sm:$0xff] }
 0x241   :  { %2780 = vmatpush.msrb.mxu1 %v2503_v30  ;;  %2812 = vmatpush.msrb.mxu0 %v2543_v47  ;;  %v2077_v30 = vpop.f32.mrf.mxu2  ;;  %v2516_v47 = vld [vmem:[%s7378_s3 + $0x320] sm:$0xff]  ;;  %v2601_v19 = vld [vmem:[%s7378_s3 + $0x5c8] sm:$0xff] }
 0x242   :  { %2766 = vmatpush.msrb.mxu3 %v2481_v60  ;;  %2727 = vmatpush.msra.mxu2 %v2448_v9  ;;  %v2097_v60 = vpop.f32.mrf.mxu3  ;;  %v2530_v9 = vld [vmem:[%s7378_s3 + $0x390] sm:$0xff] }
 0x243   :  { %2781 = vmatpush.msrb.mxu1 %v2502_v10  ;;  %2813 = vmatpush.msrb.mxu0 %v2542_v22  ;;  %v2548_v10 = vld [vmem:[%s7378_s3 + $0x420] sm:$0xff]  ;;  %v2098_v22 = vadd.f32 %v2097_v60, %v6574_v44  ;;  %v2598_v60 = vld [vmem:[%s7378_s3 + $0x5b0] sm:$0xff] }
 0x244   :  { %2728 = vmatmul.f32.vlgmr.msra.gmra.mxu2 %v2402_v7  ;;  %2767 = vmatpush.msrb.mxu3 %v2480_v15  ;;  %v2515_v15 = vld [vmem:[%s7378_s3 + $0x318] sm:$0xff]  ;;  %v2569_v7 = vld [vmem:[%s7378_s3 + $0x4c8] sm:$0xff] }
 0x245   :  { %2792 = vmatpush.msrb.mxu2 %v2527_v5  ;;  %2768 = vmatmul.f32.vlgmr.msrb.gmra.mxu3 %v2404_v1  ;;  %v2018_v5 = vadd.f32 %v2017_v46, %v6574_v44  ;;  %v2078_v1 = vadd.f32 %v2077_v30, %v2058_v3  ;;  %v2587_v46 = vld [vmem:[%s7378_s3 + $0x558] sm:$0xff]  ;;  %v2585_v3 = vld [vmem:[%s7378_s3 + $0x548] sm:$0xff] }
 0x246   :  { %2782 = vmatpush.msrb.mxu1 %v2501_v62  ;;  %2814 = vmatpush.msrb.mxu0 %v2541_v34  ;;  %v2529_v62 = vld [vmem:[%s7378_s3 + $0x388] sm:$0xff]  ;;  %v2547_v34 = vld [vmem:[%s7378_s3 + $0x418] sm:$0xff] }
 0x247   :  { %2832 = vmatpush.msra.mxu3 %v2559_v25  ;;  %2793 = vmatpush.msrb.mxu2 %v2526_v23  ;;  %v2568_v25 = vld [vmem:[%s7378_s3 + $0x4c0] sm:$0xff]  ;;  %v2117_v23 = vpop.f32.mrf.mxu1  ;;  %v2038_v51 = vadd.f32 %v6913_v63, %v2018_v5  ;;  %v2639_v30 = vld [vmem:[%s7378_s3 + $0x6f8] sm:$0xff]  ;;  %v2637_v5 = vld [vmem:[%s7378_s3 + $0x6e8] sm:$0xff] }
 0x248   :  { %2783 = vmatpush.msrb.mxu1 %v2500_v18  ;;  %2815 = vmatpush.msrb.mxu0 %v2540_v31  ;;  %v2528_v18 = vld [vmem:[%s7378_s3 + $0x380] sm:$0xff]  ;;  %v2546_v31 = vld [vmem:[%s7378_s3 + $0x410] sm:$0xff] }
 0x249   :  { %2833 = vmatpush.msra.mxu3 %v2558_v42  ;;  %2794 = vmatpush.msrb.mxu2 %v2525_v43  ;;  %v2118_v42 = vadd.f32 %v2117_v23, %v2098_v22  ;;  %v2513_v43 = vld [vmem:[%s7378_s3 + $0x308] sm:$0xff]  ;;  %v2406_v2 = vmax.f32 %v2038_v51, 0.0  ;;  %v2583_v22 = vld [vmem:[%s7378_s3 + $0x538] sm:$0xff]  ;;  %v2636_v23 = vld [vmem:[%s7378_s3 + $0x6e0] sm:$0xff] }
 0x24a   :  { %2784 = vmatpush.msrb.mxu1 %v2499_v39  ;;  %2816 = vmatpush.msrb.mxu0 %v2539_v6  ;;  %v2407_v39 = vmax.f32 %v2078_v1, 0.0  ;;  %v2567_v6 = vld [vmem:[%s7378_s3 + $0x4b8] sm:$0xff] }
 0x24b   :  { %2834 = vmatpush.msra.mxu3 %v2557_v45  ;;  %2795 = vmatpush.msrb.mxu2 %v2524_v48  ;;  %v2545_v45 = vld [vmem:[%s7378_s3 + $0x408] sm:$0xff]  ;;  %v2512_v48 = vld [vmem:[%s7378_s3 + $0x300] sm:$0xff]  ;;  %v2635_v51 = vld [vmem:[%s7378_s3 + $0x6d8] sm:$0xff] }
 0x24c   :  { %2785 = vmatpush.msrb.mxu1 %v2498_v20  ;;  %2817 = vmatpush.msrb.mxu0 %v2538_v50  ;;  %v2566_v20 = vld [vmem:[%s7378_s3 + $0x4b0] sm:$0xff] }
 0x24d   :  { %2835 = vmatpush.msra.mxu3 %v2556_v4  ;;  %2796 = vmatpush.msrb.mxu2 %v2523_v32  ;;  %v2606_v50 = vld [vmem:[%s7378_s3 + $0x5f0] sm:$0xff]  ;;  %v2408_v4 = vmax.f32 %v2118_v42, 0.0  ;;  %v2544_v32 = vld [vmem:[%s7378_s3 + $0x400] sm:$0xff] }
 0x24e   :  { %2786 = vmatpush.msrb.mxu1 %v2497_v36  ;;  %2818 = vmatpush.msrb.mxu0 %v2537_v40  ;;  %v2591_v36 = vld [vmem:[%s7378_s3 + $0x578] sm:$0xff]  ;;  %v2565_v40 = vld [vmem:[%s7378_s3 + $0x4a8] sm:$0xff] }
 0x24f   :  { %2836 = vmatpush.msra.mxu3 %v2555_v55  ;;  %2797 = vmatpush.msrb.mxu2 %v2522_v58  ;;  %v2605_v55 = vld [vmem:[%s7378_s3 + $0x5e8] sm:$0xff] }
 0x250   :  { %2787 = vmatpush.msrb.mxu1 %v2496_v13  ;;  %2819 = vmatpush.msrb.mxu0 %v2536_v0  ;;  %v2623_v13 = vld [vmem:[%s7378_s3 + $0x678] sm:$0xff]  ;;  %v2590_v0 = vld [vmem:[%s7378_s3 + $0x570] sm:$0xff] }
 0x251   :  { %2837 = vmatpush.msra.mxu3 %v2554_v8  ;;  %2788 = vmatmul.f32.vlgmr.msrb.gmra.mxu1 %v2405_v11  ;;  %v2564_v8 = vld [vmem:[%s7378_s3 + $0x4a0] sm:$0xff]  ;;  %v2177_v1 = vpop.f32.mrf.mxu1 }
 0x252   :  { %2798 = vmatpush.msrb.mxu2 %v2521_v17  ;;  %2852 = vmatpush.msra.mxu1 %v2575_v37  ;;  %v2604_v11 = vld [vmem:[%s7378_s3 + $0x5e0] sm:$0xff]  ;;  %v2622_v17 = vld [vmem:[%s7378_s3 + $0x670] sm:$0xff]  ;;  %v2589_v37 = vld [vmem:[%s7378_s3 + $0x568] sm:$0xff] }
 0x253   :  { %2820 = vmatpush.msrb.mxu0 %v2535_v49  ;;  %2838 = vmatpush.msra.mxu3 %v2553_v53  ;;  %v2137_v58 = vpop.f32.mrf.mxu2  ;;  %v2563_v49 = vld [vmem:[%s7378_s3 + $0x498] sm:$0xff] }
 0x254   :  { %2799 = vmatpush.msrb.mxu2 %v2520_v41  ;;  %2853 = vmatpush.msra.mxu1 %v2574_v12  ;;  %v2138_v63 = vadd.f32 %v2137_v58, %v6574_v44  ;;  %v2603_v53 = vld [vmem:[%s7378_s3 + $0x5d8] sm:$0xff]  ;;  %v2621_v12 = vld [vmem:[%s7378_s3 + $0x668] sm:$0xff] }
 0x255   :  { %2821 = vmatpush.msrb.mxu0 %v2534_v56  ;;  %2839 = vmatpush.msra.mxu3 %v2552_v38  ;;  %v2157_v41 = vpop.f32.mrf.mxu0  ;;  %v2588_v56 = vld [vmem:[%s7378_s3 + $0x560] sm:$0xff]  ;;  %v2562_v38 = vld [vmem:[%s7378_s3 + $0x490] sm:$0xff] }
 0x256   :  { %2800 = vmatpush.msrb.mxu2 %v2519_v28  ;;  %2854 = vmatpush.msra.mxu1 %v2573_v35  ;;  %v2602_v28 = vld [vmem:[%s7378_s3 + $0x5d0] sm:$0xff]  ;;  %v2620_v35 = vld [vmem:[%s7378_s3 + $0x660] sm:$0xff] }
 0x257   :  { %2822 = vmatpush.msrb.mxu0 %v2533_v24  ;;  %2840 = vmatpush.msra.mxu3 %v2551_v52  ;;  %v2158_v24 = vadd.f32 %v2157_v41, %v2138_v63  ;;  %v2561_v52 = vld [vmem:[%s7378_s3 + $0x488] sm:$0xff]  ;;  %v2632_v63 = vld [vmem:[%s7378_s3 + $0x6c0] sm:$0xff]  ;;  %v2671_v41 = vld [vmem:[%s7378_s3 + $0x7f8] sm:$0xff] }
 0x258   :  { %2801 = vmatpush.msrb.mxu2 %v2518_v27  ;;  %2855 = vmatpush.msra.mxu1 %v2572_v61  ;;  %v2619_v27 = vld [vmem:[%s7378_s3 + $0x658] sm:$0xff]  ;;  %v2586_v61 = vld [vmem:[%s7378_s3 + $0x550] sm:$0xff] }
 0x259   :  { %2823 = vmatpush.msrb.mxu0 %v2532_v26  ;;  %2841 = vmatpush.msra.mxu3 %v2550_v21  ;;  %v2560_v26 = vld [vmem:[%s7378_s3 + $0x480] sm:$0xff] }
 0x25a   :  { %2802 = vmatpush.msrb.mxu2 %v2517_v33  ;;  %2856 = vmatpush.msra.mxu1 %v2571_v54  ;;  %v2600_v21 = vld [vmem:[%s7378_s3 + $0x5c0] sm:$0xff]  ;;  %v2618_v33 = vld [vmem:[%s7378_s3 + $0x650] sm:$0xff]  ;;  %v2409_v54 = vmax.f32 %v2158_v24, 0.0 }
 0x25b   :  { %2824 = vmatpush.msrb.mxu0 %v2531_v14  ;;  %2842 = vmatpush.msra.mxu3 %v2549_v57  ;;  %v2599_v14 = vld [vmem:[%s7378_s3 + $0x5b8] sm:$0xff]  ;;  %v2617_v57 = vld [vmem:[%s7378_s3 + $0x648] sm:$0xff]  ;;  %v2630_v24 = vld [vmem:[%s7378_s3 + $0x6b0] sm:$0xff] }
 0x25c   :  { %2803 = vmatpush.msrb.mxu2 %v2516_v47  ;;  %2857 = vmatpush.msra.mxu1 %v2570_v16  ;;  %v7118_v47 = vpop.f32.mrf.mxu3  ;;  %v2584_v16 = vld [vmem:[%s7378_s3 + $0x540] sm:$0xff] }
 0x25d   :  { %2825 = vmatpush.msrb.mxu0 %v2530_v9  ;;  %2843 = vmatpush.msra.mxu3 %v2548_v10  ;;  %v2616_v9 = vld [vmem:[%s7378_s3 + $0x640] sm:$0xff]  ;;  %v2638_v10 = vld [vmem:[%s7378_s3 + $0x6f0] sm:$0xff] }
 0x25e   :  { %2804 = vmatpush.msrb.mxu2 %v2515_v15  ;;  %2858 = vmatpush.msra.mxu1 %v2569_v7  ;;  %v2597_v15 = vld [vmem:[%s7378_s3 + $0x5a8] sm:$0xff]  ;;  %v2615_v7 = vld [vmem:[%s7378_s3 + $0x638] sm:$0xff] }
 0x25f   :  { %2826 = vmatpush.msrb.mxu0 %v2529_v62  ;;  %2844 = vmatpush.msra.mxu3 %v2547_v34  ;;  %v2582_v62 = vld [vmem:[%s7378_s3 + $0x530] sm:$0xff]  ;;  %v2596_v34 = vld [vmem:[%s7378_s3 + $0x5a0] sm:$0xff] }
 0x260   :  { %2805 = vmatpush.msrb.mxu2 %v2514_v59  ;;  %2859 = vmatpush.msra.mxu1 %v2568_v25  ;;  %v2614_v25 = vld [vmem:[%s7378_s3 + $0x630] sm:$0xff] }
 0x261   :  { %2827 = vmatpush.msrb.mxu0 %v2528_v18  ;;  %2845 = vmatpush.msra.mxu3 %v2546_v31  ;;  %v2217_v59 = vpop.f32.mrf.mxu0  ;;  %v2581_v18 = vld [vmem:[%s7378_s3 + $0x528] sm:$0xff]  ;;  %v2595_v31 = vld [vmem:[%s7378_s3 + $0x598] sm:$0xff] }
 0x262   :  { %2806 = vmatpush.msrb.mxu2 %v2513_v43  ;;  %2828 = vmatmul.f32.vlgmr.msrb.gmra.mxu0 %v2407_v39  ;;  %v2613_v43 = vld [vmem:[%s7378_s3 + $0x628] sm:$0xff]  ;;  %v2218_v39 = vadd.f32 %v2217_v59, %v6574_v44 }
 0x263   :  { %2860 = vmatpush.msra.mxu1 %v2567_v6  ;;  %2892 = vmatpush.msra.mxu0 %v2607_v29  ;;  %v2580_v29 = vld [vmem:[%s7378_s3 + $0x520] sm:$0xff] }
 0x264   :  { %2846 = vmatpush.msra.mxu3 %v2545_v45  ;;  %2807 = vmatpush.msrb.mxu2 %v2512_v48  ;;  %v2594_v45 = vld [vmem:[%s7378_s3 + $0x590] sm:$0xff]  ;;  %v2612_v48 = vld [vmem:[%s7378_s3 + $0x620] sm:$0xff] }
 0x265   :  { %2861 = vmatpush.msra.mxu1 %v2566_v20  ;;  %2893 = vmatpush.msra.mxu0 %v2606_v50  ;;  %v2634_v20 = vld [vmem:[%s7378_s3 + $0x6d0] sm:$0xff]  ;;  %v2178_v50 = vadd.f32 %v2177_v1, %v6574_v44  ;;  %v2624_v1 = vld [vmem:[%s7378_s3 + $0x680] sm:$0xff] }
 0x266   :  { %2808 = vmatmul.f32.vlgmr.msrb.gmra.mxu2 %v2406_v2  ;;  %2847 = vmatpush.msra.mxu3 %v2544_v32  ;;  %v2579_v32 = vld [vmem:[%s7378_s3 + $0x518] sm:$0xff]  ;;  %v2593_v2 = vld [vmem:[%s7378_s3 + $0x588] sm:$0xff] }
 0x267   :  { %2872 = vmatpush.msra.mxu2 %v2591_v36  ;;  %2848 = vmatmul.f32.vlgmr.msra.gmra.mxu3 %v2408_v4 }
 0x268   :  { %2862 = vmatpush.msra.mxu1 %v2565_v40  ;;  %2894 = vmatpush.msra.mxu0 %v2605_v55  ;;  %v2611_v40 = vld [vmem:[%s7378_s3 + $0x618] sm:$0xff]  ;;  %v2633_v55 = vld [vmem:[%s7378_s3 + $0x6c8] sm:$0xff] }
 0x269   :  { %2912 = vmatpush.msrb.mxu3 %v2623_v13  ;;  %2873 = vmatpush.msra.mxu2 %v2590_v0  ;;  %v2578_v13 = vld [vmem:[%s7378_s3 + $0x510] sm:$0xff]  ;;  %v2592_v0 = vld [vmem:[%s7378_s3 + $0x580] sm:$0xff] }
 0x26a   :  { %2863 = vmatpush.msra.mxu1 %v2564_v8  ;;  %2895 = vmatpush.msra.mxu0 %v2604_v11  ;;  %v2610_v8 = vld [vmem:[%s7378_s3 + $0x610] sm:$0xff]  ;;  %v2198_v11 = vadd.f32 %v7118_v47, %v2178_v50 }
 0x26b   :  { %2913 = vmatpush.msrb.mxu3 %v2622_v17  ;;  %2874 = vmatpush.msra.mxu2 %v2589_v37  ;;  %v2237_v42 = vpop.f32.mrf.mxu2  ;;  %v2577_v37 = vld [vmem:[%s7378_s3 + $0x508] sm:$0xff]  ;;  %v2658_v50 = vld [vmem:[%s7378_s3 + $0x790] sm:$0xff] }
 0x26c   :  { %2864 = vmatpush.msra.mxu1 %v2563_v49  ;;  %2896 = vmatpush.msra.mxu0 %v2603_v53  ;;  %v2257_v6 = vpop.f32.mrf.mxu3  ;;  %v2238_v4 = vadd.f32 %v2237_v42, %v2218_v39  ;;  %v2609_v53 = vld [vmem:[%s7378_s3 + $0x608] sm:$0xff]  ;;  %v2660_v39 = vld [vmem:[%s7378_s3 + $0x7a0] sm:$0xff] }
 0x26d   :  { %2914 = vmatpush.msrb.mxu3 %v2621_v12  ;;  %2875 = vmatpush.msra.mxu2 %v2588_v56  ;;  %v2258_v36 = vadd.f32 %v2257_v6, %v6574_v44  ;;  %v2576_v12 = vld [vmem:[%s7378_s3 + $0x500] sm:$0xff]  ;;  %v2631_v56 = vld [vmem:[%s7378_s3 + $0x6b8] sm:$0xff]  ;;  %v2661_v42 = vld [vmem:[%s7378_s3 + $0x7a8] sm:$0xff] }
 0x26e   :  { %2865 = vmatpush.msra.mxu1 %v2562_v38  ;;  %2897 = vmatpush.msra.mxu0 %v2602_v28  ;;  %v2411_v17 = vmax.f32 %v2238_v4, 0.0  ;;  %v2608_v38 = vld [vmem:[%s7378_s3 + $0x600] sm:$0xff]  ;;  %v2410_v28 = vmax.f32 %v2198_v11, 0.0  ;;  %v2642_v4 = vld [vmem:[%s7378_s3 + $0x710] sm:$0xff] }
 0x26f   :  { %2915 = vmatpush.msrb.mxu3 %v2620_v35  ;;  %2876 = vmatpush.msra.mxu2 %v2587_v46  ;;  %v2655_v35 = vld [vmem:[%s7378_s3 + $0x778] sm:$0xff]  ;;  %v2644_v6 = vld [vmem:[%s7378_s3 + $0x720] sm:$0xff] }
 0x270   :  { %2866 = vmatpush.msra.mxu1 %v2561_v52  ;;  %2898 = vmatpush.msra.mxu0 %v2601_v19  ;;  %v2277_v58 = vpop.f32.mrf.mxu1  ;;  %v2670_v52 = vld [vmem:[%s7378_s3 + $0x7f0] sm:$0xff] }
 0x271   :  { %2916 = vmatpush.msrb.mxu3 %v2619_v27  ;;  %2877 = vmatpush.msra.mxu2 %v2586_v61  ;;  %v2278_v49 = vadd.f32 %v2277_v58, %v2258_v36  ;;  %v2654_v19 = vld [vmem:[%s7378_s3 + $0x770] sm:$0xff]  ;;  %v2629_v27 = vld [vmem:[%s7378_s3 + $0x6a8] sm:$0xff]  ;;  %v2640_v58 = vld [vmem:[%s7378_s3 + $0x700] sm:$0xff] }
 0x272   :  { %2867 = vmatpush.msra.mxu1 %v2560_v26  ;;  %2899 = vmatpush.msra.mxu0 %v2600_v21  ;;  %v2669_v61 = vld [vmem:[%s7378_s3 + $0x7e8] sm:$0xff]  ;;  %v2628_v21 = vld [vmem:[%s7378_s3 + $0x6a0] sm:$0xff] }
 0x273   :  { %2917 = vmatpush.msrb.mxu3 %v2618_v33  ;;  %2868 = vmatmul.f32.vlgmr.msra.gmra.mxu1 %v2409_v54  ;;  %v2412_v46 = vmax.f32 %v2278_v49, 0.0  ;;  %v2653_v26 = vld [vmem:[%s7378_s3 + $0x768] sm:$0xff]  ;;  %v2668_v33 = vld [vmem:[%s7378_s3 + $0x7e0] sm:$0xff] }
 0x274   :  { %2878 = vmatpush.msra.mxu2 %v2585_v3  ;;  %2900 = vmatpush.msra.mxu0 %v2599_v14  ;;  %v2652_v54 = vld [vmem:[%s7378_s3 + $0x760] sm:$0xff]  ;;  %v2627_v3 = vld [vmem:[%s7378_s3 + $0x698] sm:$0xff]  ;;  %v2641_v36 = vld [vmem:[%s7378_s3 + $0x708] sm:$0xff] }
 0x275   :  { %2918 = vmatpush.msrb.mxu3 %v2617_v57  ;;  %2932 = vmatpush.msrb.mxu1 %v2639_v30  ;;  %v2667_v14 = vld [vmem:[%s7378_s3 + $0x7d8] sm:$0xff] }
 0x276   :  { %2879 = vmatpush.msra.mxu2 %v2584_v16  ;;  %2901 = vmatpush.msra.mxu0 %v2598_v60  ;;  %v2651_v57 = vld [vmem:[%s7378_s3 + $0x758] sm:$0xff]  ;;  %v2626_v16 = vld [vmem:[%s7378_s3 + $0x690] sm:$0xff] }
 0x277   :  { %2919 = vmatpush.msrb.mxu3 %v2616_v9  ;;  %2933 = vmatpush.msrb.mxu1 %v2638_v10  ;;  %v2666_v60 = vld [vmem:[%s7378_s3 + $0x7d0] sm:$0xff] }
 0x278   :  { %2880 = vmatpush.msra.mxu2 %v2583_v22  ;;  %2902 = vmatpush.msra.mxu0 %v2597_v15  ;;  %v2650_v9 = vld [vmem:[%s7378_s3 + $0x750] sm:$0xff]  ;;  %v2625_v22 = vld [vmem:[%s7378_s3 + $0x688] sm:$0xff] }
 0x279   :  { %2920 = vmatpush.msrb.mxu3 %v2615_v7  ;;  %2934 = vmatpush.msrb.mxu1 %v2637_v5  ;;  %v2665_v15 = vld [vmem:[%s7378_s3 + $0x7c8] sm:$0xff] }
 0x27a   :  { %2881 = vmatpush.msra.mxu2 %v2582_v62  ;;  %2903 = vmatpush.msra.mxu0 %v2596_v34  ;;  %v2317_v10 = vpop.f32.mrf.mxu0  ;;  %v2649_v7 = vld [vmem:[%s7378_s3 + $0x748] sm:$0xff]  ;;  %v2664_v62 = vld [vmem:[%s7378_s3 + $0x7c0] sm:$0xff] }
 0x27b   :  { %2921 = vmatpush.msrb.mxu3 %v2614_v25  ;;  %2935 = vmatpush.msrb.mxu1 %v2636_v23  ;;  %v2648_v34 = vld [vmem:[%s7378_s3 + $0x740] sm:$0xff]  ;;  %v2663_v25 = vld [vmem:[%s7378_s3 + $0x7b8] sm:$0xff] }
 0x27c   :  { %2882 = vmatpush.msra.mxu2 %v2581_v18  ;;  %2904 = vmatpush.msra.mxu0 %v2595_v31  ;;  %v2647_v23 = vld [vmem:[%s7378_s3 + $0x738] sm:$0xff]  ;;  %v2662_v18 = vld [vmem:[%s7378_s3 + $0x7b0] sm:$0xff] }
 0x27d   :  { %2922 = vmatpush.msrb.mxu3 %v2613_v43  ;;  %2936 = vmatpush.msrb.mxu1 %v2635_v51  ;;  %v2646_v31 = vld [vmem:[%s7378_s3 + $0x730] sm:$0xff]  ;;  %v2645_v43 = vld [vmem:[%s7378_s3 + $0x728] sm:$0xff] }
 0x27e   :  { %2883 = vmatpush.msra.mxu2 %v2580_v29  ;;  %2905 = vmatpush.msra.mxu0 %v2594_v45  ;;  %v2659_v29 = vld [vmem:[%s7378_s3 + $0x798] sm:$0xff] }
 0x27f   :  { %2923 = vmatpush.msrb.mxu3 %v2612_v48  ;;  %2937 = vmatpush.msrb.mxu1 %v2634_v20  ;;  %v2643_v48 = vld [vmem:[%s7378_s3 + $0x718] sm:$0xff] }
 0x280   :  { %2884 = vmatpush.msra.mxu2 %v2579_v32  ;;  %2906 = vmatpush.msra.mxu0 %v2593_v2  ;;  %v2657_v32 = vld [vmem:[%s7378_s3 + $0x788] sm:$0xff] }
 0x281   :  { %2924 = vmatpush.msrb.mxu3 %v2611_v40  ;;  %2938 = vmatpush.msrb.mxu1 %v2633_v55  ;;  %v2656_v55 = vld [vmem:[%s7378_s3 + $0x780] sm:$0xff] }
 0x282   :  { %2885 = vmatpush.msra.mxu2 %v2578_v13  ;;  %2907 = vmatpush.msra.mxu0 %v2592_v0 }
 0x283   :  { %2925 = vmatpush.msrb.mxu3 %v2610_v8  ;;  %2908 = vmatmul.f32.vlgmr.msra.gmra.mxu0 %v2411_v17 }
 0x284   :  { %2886 = vmatpush.msra.mxu2 %v2577_v37  ;;  %2939 = vmatpush.msrb.mxu1 %v2632_v63 }
 0x285   :  { %2926 = vmatpush.msrb.mxu3 %v2609_v53  ;;  %2972 = vmatpush.msrb.mxu0 %v2671_v41 }
 0x286   :  { %2887 = vmatpush.msra.mxu2 %v2576_v12  ;;  %2940 = vmatpush.msrb.mxu1 %v2631_v56 }
 0x287   :  { %2888 = vmatmul.f32.vlgmr.msra.gmra.mxu2 %v2410_v28  ;;  %2927 = vmatpush.msrb.mxu3 %v2608_v38 }
 0x288   :  { %2952 = vmatpush.msrb.mxu2 %v2655_v35  ;;  %2928 = vmatmul.f32.vlgmr.msrb.gmra.mxu3 %v2412_v46 }
 0x289   :  { %2941 = vmatpush.msrb.mxu1 %v2630_v24  ;;  %2973 = vmatpush.msrb.mxu0 %v2670_v52  ;;  %v3899_v24 = vmov 2  }
 0x28a   :  { %2953 = vmatpush.msrb.mxu2 %v2654_v19  ;;  %v2337_v51 = vpop.f32.mrf.mxu1  ;;  %3824 = vset.pattern.permute.xlu2 %v3899_v24  ;;  %v3021_v24 = vld [vmem:[%s7381_s6] sm:$0x1]  ;;  %s3095_s6 = sshll.u32 %s7384_s9, 4  ;;  %s3096_s6 = int_to_ptr.hbm [resolvable:$true] %s3095_s6 }
 0x28b   :  { %2942 = vmatpush.msrb.mxu1 %v2629_v27  ;;  %2974 = vmatpush.msrb.mxu0 %v2669_v61  ;;  %v2338_v45 = vadd.f32 %v2337_v51, %v6574_v44  ;;  %v2357_v20 = vpop.f32.mrf.mxu3 }
 0x28c   :  { %2954 = vmatpush.msrb.mxu2 %v2653_v26 }
 0x28d   :  { %2943 = vmatpush.msrb.mxu1 %v2628_v21  ;;  %2975 = vmatpush.msrb.mxu0 %v2668_v33  ;;  %v2358_v2 = vadd.f32 %v2357_v20, %v2338_v45 }
 0x28e   :  { %v2297_v30 = vpop.f32.mrf.mxu2  ;;  %2955 = vmatpush.msrb.mxu2 %v2652_v54 }
 0x28f   :  { %v2298_v47 = vadd.f32 %v2297_v30, %v6574_v44  ;;  %2944 = vmatpush.msrb.mxu1 %v2627_v3  ;;  %2976 = vmatpush.msrb.mxu0 %v2667_v14  ;;  %v2414_v0 = vmax.f32 %v2358_v2, 0.0 }
 0x290   :  { %2956 = vmatpush.msrb.mxu2 %v2651_v57 }
 0x291   :  { %v2318_v5 = vadd.f32 %v2317_v10, %v2298_v47  ;;  %2945 = vmatpush.msrb.mxu1 %v2626_v16  ;;  %2977 = vmatpush.msrb.mxu0 %v2666_v60 }
 0x292   :  { %2957 = vmatpush.msrb.mxu2 %v2650_v9 }
 0x293   :  { %v2413_v59 = vmax.f32 %v2318_v5, 0.0  ;;  %2946 = vmatpush.msrb.mxu1 %v2625_v22  ;;  %2978 = vmatpush.msrb.mxu0 %v2665_v15  ;;  %v3900_v5 = vmov 1  }
 0x294   :  { %2958 = vmatpush.msrb.mxu2 %v2649_v7 }
 0x295   :  { %2947 = vmatpush.msrb.mxu1 %v2624_v1  ;;  %2979 = vmatpush.msrb.mxu0 %v2664_v62  ;;  %v2992_v62 = vld [vmem:[%s7379_s4] sm:$0xff] }
 0x296   :  { %2959 = vmatpush.msrb.mxu2 %v2648_v34  ;;  %2948 = vmatmul.f32.vlgmr.msrb.gmra.mxu1 %v2413_v59  ;;  %v3007_v34 = vld [vmem:[%s7380_s5] sm:$0xff]  ;;  %v3059_v59 = vld [vmem:[%s7382_s7 + $0x18] sm:$0xff] }
 0x297   :  { %2980 = vmatpush.msrb.mxu0 %v2663_v25  ;;  %v3058_v25 = vld [vmem:[%s7382_s7 + $0x10] sm:$0xff]  ;;  %3079 = vmatpush.msra.mxu3 %v3059_v59 }
 0x298   :  { %2960 = vmatpush.msrb.mxu2 %v2647_v23 }
 0x299   :  { %2981 = vmatpush.msrb.mxu0 %v2662_v18  ;;  %v3057_v18 = vld [vmem:[%s7382_s7 + $0x8] sm:$0xff]  ;;  %3080 = vmatpush.msra.mxu3 %v3058_v25 }
 0x29a   :  { %2961 = vmatpush.msrb.mxu2 %v2646_v31 }
 0x29b   :  { %2982 = vmatpush.msrb.mxu0 %v2661_v42  ;;  %v2377_v40 = vpop.f32.mrf.mxu0  ;;  %3081 = vmatpush.msra.mxu3 %v3057_v18 }
 0x29c   :  { %2962 = vmatpush.msrb.mxu2 %v2645_v43  ;;  %v2378_v13 = vadd.f32 %v2377_v40, %v6574_v44  ;;  %v3898_v44 = vmov 3   ;;  %v3056_v43 = vld [vmem:[%s7382_s7] sm:$0xff] }
 0x29d   :  { %2983 = vmatpush.msrb.mxu0 %v2660_v39  ;;  %3825 = vset.pattern.permute.xlu0 %v3898_v44 }
 0x29e   :  { %2963 = vmatpush.msrb.mxu2 %v2644_v6  ;;  %3082 = vmatpush.msra.mxu3 %v3056_v43 }
 0x29f   :  { %2984 = vmatpush.msrb.mxu0 %v2659_v29 }
 0x2a0   :  { %2964 = vmatpush.msrb.mxu2 %v2643_v48 }
 0x2a1   :  { %2985 = vmatpush.msrb.mxu0 %v2658_v50 }
 0x2a2   :  { %2965 = vmatpush.msrb.mxu2 %v2642_v4 }
 0x2a3   :  { %2986 = vmatpush.msrb.mxu0 %v2657_v32 }
 0x2a4   :  { %2966 = vmatpush.msrb.mxu2 %v2641_v36 }
 0x2a5   :  { %v2397_v8 = vpop.f32.mrf.mxu2  ;;  %2987 = vmatpush.msrb.mxu0 %v2656_v55 }
 0x2a6   :  { %2967 = vmatpush.msrb.mxu2 %v2640_v58  ;;  %v2398_v11 = vadd.f32 %v2397_v8, %v2378_v13  ;;  %v2689_v63 = vpop.f32.mrf.mxu3 }
 0x2a7   :  { %2968 = vmatmul.f32.vlgmr.msrb.gmra.mxu2 %v2414_v0 }
 0x2a8   :  { %v2415_v17 = vmax.f32 %v2398_v11, 0.0 }
 0x2aa   :  { %2988 = vmatmul.f32.vlgmr.msrb.gmra.mxu0 %v2415_v17 }
 0x2ac   :  { %v2709_v37 = vpop.f32.mrf.mxu1 }
 0x2ad   :  { %v2710_v53 = vadd.f32 %v2709_v37, %v2689_v63 }
 0x2bd   :  { %v2749_v12 = vpop.f32.mrf.mxu0 }
 0x2c7   :  { %v2729_v49 = vpop.f32.mrf.mxu2 }
 0x2c8   :  { %v2730_v41 = vadd.f32 %v2729_v49, %v2710_v53  ;;  %v2769_v38 = vpop.f32.mrf.mxu3 }
 0x2ca   :  { %v2750_v56 = vadd.f32 %v2749_v12, %v2730_v41 }
 0x2cc   :  { %v2770_v28 = vadd.f32 %v2769_v38, %v2750_v56 }
 0x2ce   :  { %v2789_v35 = vpop.f32.mrf.mxu1 }
 0x2cf   :  { %v2790_v52 = vadd.f32 %v2789_v35, %v2770_v28 }
 0x2df   :  { %v2829_v27 = vpop.f32.mrf.mxu0 }
 0x2e9   :  { %v2809_v46 = vpop.f32.mrf.mxu2 }
 0x2ea   :  { %v2810_v19 = vadd.f32 %v2809_v46, %v2790_v52  ;;  %v2849_v26 = vpop.f32.mrf.mxu3 }
 0x2ec   :  { %v2830_v61 = vadd.f32 %v2829_v27, %v2810_v19 }
 0x2ee   :  { %v2850_v21 = vadd.f32 %v2849_v26, %v2830_v61 }
 0x2f0   :  { %v2869_v33 = vpop.f32.mrf.mxu1 }
 0x2f1   :  { %v2870_v3 = vadd.f32 %v2869_v33, %v2850_v21 }
 0x300   :  { %v2909_v57 = vpop.f32.mrf.mxu0 }
 0x30a   :  { %v2889_v54 = vpop.f32.mrf.mxu2 }
 0x30b   :  { %v2890_v14 = vadd.f32 %v2889_v54, %v2870_v3  ;;  %v2929_v47 = vpop.f32.mrf.mxu3  ;;  %v3827_v3 = vld [vmem:[%s7383_s8] ss:$0 sm:$0xff] }
 0x30d   :  { %v2910_v30 = vadd.f32 %v2909_v57, %v2890_v14 }
 0x30f   :  { %v2930_v60 = vadd.f32 %v2929_v47, %v2910_v30 }
 0x313   :  { %v2949_v16 = vpop.f32.mrf.mxu1 }
 0x314   :  { %v2950_v9 = vadd.f32 %v2949_v16, %v2930_v60 }
 0x327   :  { %v2989_v22 = vpop.f32.mrf.mxu0 }
 0x32a   :  { %v2969_v10 = vpop.f32.mrf.mxu2 }
 0x32b   :  { %v2970_v15 = vadd.f32 %v2969_v10, %v2950_v9 }
 0x32d   :  { %v2990_v7 = vadd.f32 %v2989_v22, %v2970_v15 }
 0x32f   :  { %2995 = vperm.xlu1 %3823, %v2990_v7   ;;  %3037 = vperm.xlu0 %3825, %v2990_v7  }
 0x330   :  { %3025 = vperm.xlu2 %3824, %v2990_v7  }
 0x338   :  { %3826 = vset.pattern.permute.xlu2 %v3900_v5 }
 0x339   :  { %3009 = vperm.xlu2 %3826, %v2990_v7  }
 0x38a   :  { %v3026_v1 = vpop.permute.xlu2 %3025 }
 0x38b   :  { %v3028_v31 = vmul.f32 %v3026_v1, %v2992_v62 }
 0x38d   :  { %v3029_v51 = vsel %vm2999_vm1, %v3028_v31, 0.0 }
 0x38e   :  { %v3030_v6 = vrot.slane %v3029_v51, 4 }
 0x390   :  { %v3031_v45 = vadd.f32 %v3030_v6, %v3029_v51 }
 0x392   :  { %v3032_v2 = vrot.slane %v3031_v45, 2 }
 0x393   :  { %v3010_v23 = vpop.permute.xlu2 %3009 }
 0x394   :  { %v3012_v42 = vmul.f32 %v3010_v23, %v3007_v34  ;;  %v3033_v0 = vadd.f32 %v3032_v2, %v3031_v45 }
 0x396   :  { %v3013_v39 = vsel %vm2999_vm1, %v3012_v42, 0.0  ;;  %v3034_v49 = vrot.slane %v3033_v0, 1 }
 0x397   :  { %v3014_v29 = vrot.slane %v3013_v39, 4 }
 0x398   :  { %v3035_v28 = vadd.f32 %v3034_v49, %v3033_v0 }
 0x399   :  { %v3015_v48 = vadd.f32 %v3014_v29, %v3013_v39 }
 0x39b   :  { %v3016_v36 = vrot.slane %v3015_v48, 2 }
 0x39d   :  { %v3017_v8 = vadd.f32 %v3016_v36, %v3015_v48 }
 0x39f   :  { %v3018_v53 = vrot.slane %v3017_v8, 1 }
 0x3a1   :  { %v2996_v20 = vpop.permute.xlu1 %2995  ;;  %v3038_v50 = vpop.permute.xlu0 %3037  ;;  %v3019_v35 = vadd.f32 %v3018_v53, %v3017_v8 }
 0x3a2   :  { %v2998_v4 = vmul.f32 %v2996_v20, %v2992_v62  ;;  %v3040_v32 = vmul.f32 %v3038_v50, %v3007_v34 }
 0x3a4   :  { %v3000_v40 = vsel %vm2999_vm1, %v2998_v4, 0.0  ;;  %v3041_v55 = vsel %vm2999_vm1, %v3040_v32, 0.0 }
 0x3a5   :  { %v3001_v58 = vrot.slane %v3000_v40, 4  ;;  %v3042_v13 = vrot.slane %v3041_v55, 4 }
 0x3a7   :  { %v3002_v11 = vadd.f32 %v3001_v58, %v3000_v40  ;;  %v3043_v17 = vadd.f32 %v3042_v13, %v3041_v55 }
 0x3a9   :  { %v3003_v37 = vrot.slane %v3002_v11, 2  ;;  %v3044_v63 = vrot.slane %v3043_v17, 2 }
 0x3ab   :  { %v3004_v41 = vadd.f32 %v3003_v37, %v3002_v11  ;;  %v3045_v12 = vadd.f32 %v3044_v63, %v3043_v17 }
 0x3ad   :  { %v3005_v56 = vrot.slane %v3004_v41, 1  ;;  %v3046_v38 = vrot.slane %v3045_v12, 1 }
 0x3af   :  { %v3006_v46 = vadd.f32 %v3005_v56, %v3004_v41  ;;  %v3047_v44 = vadd.f32 %v3046_v38, %v3045_v12 }
 0x3b1   :  { %v3020_v52 = vadd.f32 %v3019_v35, %v3006_v46  ;;  %v3048_v19 = vadd.f32 %v3047_v44, %v3035_v28 }
 0x3b3   :  { %v3022_v27 = vadd.f32 %v3021_v24, %v3020_v52  ;;  %v3049_v61 = vadd.f32 %v3048_v19, %v3021_v24 }
 0x3b5   :  { %v3050_v26 = vmax.f32 %v3049_v61, 0.0  ;;  %v3023_v21 = vmax.f32 %v3022_v27, 0.0 }
 0x3b7   :  { %v3052_v33 = vrot.slane %v3050_v26, 7 }
 0x3b9   :  { %v3055_v54 = vsel %vm3054_vm2, %v3023_v21, %v3052_v33 }
 0x3ba   :  { %3120 = vmatmul.msk.f32.vlgmr.msra.gmra.mxu3 %vm2999_vm1, %v3055_v54 }
 0x43d   :  { %v3084_v14 = vpop.f32.mrf.mxu3 }
 0x43e   :  { %v3085_v57 = vadd.f32 %v3827_v3, %v3084_v14 }
 0x440   :  { %3087 = vst [vmem:[#allocation3] sm:$0x3] %v3085_v57 }
 0x441   :  { %3098 = dma.vmem_to_hbm [thread:$0]  %s3094_s24, 32, %s3096_s6, [#allocation4]  }
 0x442   :  { %3878 = dma.done.wait [#allocation4], 32  }
 0x443   :  { %3879 = vsyncadd [#allocation4], 4294967264 }
 0x444   :  { %3103 = vsyncpa [#allocation4], 1 }

</bundles_post_ra>
